<compile_context>
chip_gen: v6e
topology: v6e:2x2x1
jax: 0.10.0
libtpu: 0.0.40
codegen_flags: <defaults>
</compile_context>

<pallas_src>
import jax
import jax.numpy as jnp
from jax.experimental import pallas as pl
from jax.experimental.pallas import tpu as pltpu

CONST = 0.004375783195018279  # forward does  v1 - (-c)  ==  v1 + c


def conv_matmul_kernel(p_ref, w_ref, o_ref):
    # p_ref: (Mp, Kp)   zero-padded im2col patch matrix, f32, lane-dense
    # w_ref: (Kp, Cout) zero-padded flattened weights,    f32, lane-dense
    # o_ref: (Mp, Cout) flat output slab,                 f32, lane-dense
    o_ref[...] = jnp.dot(
        p_ref[...], w_ref[...],
        preferred_element_type=jnp.float32,
        precision=jax.lax.Precision.HIGHEST,
    ) + CONST


def _round_up(n, m):
    return ((n + m - 1) // m) * m


def conv2d_7x7_plus_const(x, weight):
    """x: (1, 1, H, W) f32 NCHW; weight: (Cout, 1, KH, KW) f32 OIHW."""
    _, _, H, W = x.shape
    Cout, _cin, KH, KW = weight.shape
    OH, OW = H - KH + 1, W - KW + 1
    M, K = OH * OW, KH * KW
    Mp, Kp = _round_up(M, 128), _round_up(K, 128)

    # ---- wrapper-side layout plumbing (tiny XLA ops, ~20 KB of patches) ----
    # Single-op im2col: (1, KH*KW, OH, OW); channel c <-> tap (c//KW, c%KW),
    # which matches weight.reshape(Cout, KH*KW)'s row-major (kh, kw) order.
    patches = jax.lax.conv_general_dilated_patches(
        x, filter_shape=(KH, KW), window_strides=(1, 1), padding="VALID",
        dimension_numbers=("NCHW", "OIHW", "NCHW"))
    p = patches.reshape(K, M).T                      # (M, K), row = oh*OW + ow
    p = jnp.pad(p, ((0, Mp - M), (0, Kp - K)))       # explicit zeros (correctness)
    w = weight.reshape(Cout, K).T                    # (K, Cout)
    w = jnp.pad(w, ((0, Kp - K), (0, 0)))            # explicit zeros (correctness)

    cost = pl.CostEstimate(
        flops=2 * Mp * Kp * Cout,
        transcendentals=0,
        bytes_accessed=(Mp * Kp + Kp * Cout + Mp * Cout) * 4,
    )

    out = pl.pallas_call(
        conv_matmul_kernel,
        out_shape=jax.ShapeDtypeStruct((Mp, Cout), jnp.float32),
        in_specs=[
            pl.BlockSpec((Mp, Kp), lambda: (0, 0),
                         memory_space=pltpu.MemorySpace.VMEM),
            pl.BlockSpec((Kp, Cout), lambda: (0, 0),
                         memory_space=pltpu.MemorySpace.VMEM),
        ],
        out_specs=pl.BlockSpec((Mp, Cout), lambda: (0, 0),
                               memory_space=pltpu.MemorySpace.VMEM),
        cost_estimate=cost,
    )(p, w)

    # (Mp, Cout) -> drop pad rows -> (OH, OW, Cout) -> NCHW (cheap XLA ops).
    return jnp.transpose(out[:M].reshape(OH, OW, Cout), (2, 0, 1))[None]


if __name__ == "__main__":
    key = jax.random.PRNGKey(0)
    kx, kw_ = jax.random.split(key)

    # Small shapes consistent with the module (batch=1, in_ch=1, spatial=16).
    H = W = 16
    Cout, KH, KW = 512, 7, 7

    x = jax.random.normal(kx, (1, 1, H, W), dtype=jnp.float32)
    weight = jax.random.normal(kw_, (Cout, 1, KH, KW), dtype=jnp.float32) * 0.02

    fwd = jax.jit(conv2d_7x7_plus_const)
    out = jax.block_until_ready(fwd(x, weight))

    # Reference check against XLA conv (valid padding, NCHW/OIHW), full f32.
    ref = jax.lax.conv_general_dilated(
        x, weight, window_strides=(1, 1), padding="VALID",
        dimension_numbers=("NCHW", "OIHW", "NCHW"),
        precision=jax.lax.Precision.HIGHEST,
    ) + CONST
    assert out.shape == (1, Cout, H - KH + 1, W - KW + 1)
    assert jnp.allclose(out, ref, atol=1e-4, rtol=1e-4)

    print("KERNEL_OK")
</pallas_src>

<mosaic_0001>
module attributes {stable_mosaic.version = 11 : i64} {
  func.func @conv_matmul_kernel(%arg0: memref<128x128xf32, #tpu.memory_space<vmem>>, %arg1: memref<128x512xf32, #tpu.memory_space<vmem>>, %arg2: memref<128x512xf32, #tpu.memory_space<vmem>>) attributes {dimension_semantics = [], scalar_prefetch = 0 : i64, scratch_operands = 0 : i64, tpu.core_type = #tpu.core_type<tc>} {
    %c0 = arith.constant 0 : index
    %c0_0 = arith.constant 0 : index
    %0 = vector.load %arg0[%c0, %c0_0] : memref<128x128xf32, #tpu.memory_space<vmem>>, vector<128x128xf32>
    %c0_1 = arith.constant 0 : index
    %c0_2 = arith.constant 0 : index
    %1 = vector.load %arg1[%c0_1, %c0_2] : memref<128x512xf32, #tpu.memory_space<vmem>>, vector<128x512xf32>
    %cst = arith.constant dense<0.000000e+00> : vector<128x512xf32>
    %2 = tpu.matmul %0, %1, %cst {dimension_numbers = #tpu.dot_dimension_numbers<[1], [0], [0], [1], [0, 0, 1, 1], [], []>, precision = #tpu.contract_precision<fp32>} : vector<128x128xf32>, vector<128x512xf32>, vector<128x512xf32> -> vector<128x512xf32>
    %cst_3 = arith.constant 0.00437578326 : f32
    %3 = vector.broadcast %cst_3 : f32 to vector<128x512xf32>
    %4 = arith.addf %2, %3 : vector<128x512xf32>
    %c0_4 = arith.constant 0 : index
    %c0_5 = arith.constant 0 : index
    %5 = vector.load %arg2[%c0_4, %c0_5] : memref<128x512xf32, #tpu.memory_space<vmem>>, vector<128x512xf32>
    tpu.vector_store %arg2[%c0_4, %c0_5], %4 {strides = array<i32>} : memref<128x512xf32, #tpu.memory_space<vmem>>, vector<128x512xf32>,
    return
  }
}

</mosaic_0001>

<bundles_post_ra>
// kernel: conv2d_7x7_plus_const.1
= control target key start
LH: loop header
LB: loop body
LE: loop exit
PB: predicated region body
PF: predicated region fallthrough
CT: control target
= control target key end

     0   :  { %v6009_v3 = vmov 0.0   ;;  %s5992_s1 = inlined_call_operand.vmem [shape: f32[128,512], index: 1, kind: input, shape index: {}]   ;;  %s5993_s0 = inlined_call_operand.vmem [shape: f32[128,128], index: 0, kind: input, shape index: {}]   ;;  %s5994_s2 = inlined_call_operand.vmem [shape: f32[128,512], index: 2, kind: output, shape index: {}]  }
   0x1   :  { %v88_v0 = vld [vmem:[%s5992_s1 + $0x1e8] sm:$0xff]  ;;  %v87_v1 = vld [vmem:[%s5992_s1 + $0x1e0] sm:$0xff]  ;;  %187 = vmatprep.mubr.f32.mxu0 %v6009_v3  ;;  %588 = vmatprep.mubr.f32.mxu1 %v6009_v3 }
   0x2   :  { %v84_v2 = vld [vmem:[%s5992_s1 + $0x1c8] sm:$0xff]  ;;  %v3367_v4 = vand.u32 4294901760, %v88_v0  ;;  %v3369_v5 = vand.u32 4294901760, %v87_v1  ;;  %v83_v7 = vld [vmem:[%s5992_s1 + $0x1c0] sm:$0xff] }
   0x3   :  { %v3371_v6 = vand.u32 4294901760, %v84_v2  ;;  %v80_v8 = vld [vmem:[%s5992_s1 + $0x1a8] sm:$0xff]  ;;  %v79_v9 = vld [vmem:[%s5992_s1 + $0x1a0] sm:$0xff]  ;;  %v3382_v10 = vand.u32 4294901760, %v83_v7 }
   0x4   :  { %v3384_v11 = vand.u32 4294901760, %v80_v8  ;;  %v3386_v12 = vand.u32 4294901760, %v79_v9  ;;  %v76_v13 = vld [vmem:[%s5992_s1 + $0x188] sm:$0xff]  ;;  %v75_v14 = vld [vmem:[%s5992_s1 + $0x180] sm:$0xff]  ;;  %92 = vmatprep.subr.mxu0 %v3367_v4  ;;  %v3405_v19 = vsub.f32 %v88_v0, %v3367_v4  ;;  %v3427_v24 = vsub.f32 %v87_v1, %v3369_v5 }
   0x5   :  { %v72_v15 = vld [vmem:[%s5992_s1 + $0x168] sm:$0xff]  ;;  %v3398_v16 = vand.u32 4294901760, %v76_v13  ;;  %v3400_v17 = vand.u32 4294901760, %v75_v14  ;;  %v3410_v20 = vld [vmem:[%s5992_s1 + $0x160] sm:$0xff]  ;;  %94 = vmatpush1.msra.mxu0 %v3369_v5  ;;  %v3433_v26 = vsub.f32 %v84_v2, %v3371_v6  ;;  %v3456_v32 = vsub.f32 %v83_v7, %v3382_v10 }
   0x6   :  { %v3402_v18 = vand.u32 4294901760, %v72_v15  ;;  %6247 = vst [vmem:[#allocation2_spill] sm:$0xff] %v3405_v19  ;;  %v3415_v21 = vld [vmem:[%s5992_s1 + $0x148] sm:$0xff]  ;;  %v3420_v22 = vld [vmem:[%s5992_s1 + $0x140] sm:$0xff]  ;;  %v3424_v23 = vand.u32 4294901760, %v3410_v20  ;;  %6248 = vst [vmem:[#allocation3_spill] sm:$0xff] %v3427_v24  ;;  %96 = vmatprep.subr.mxu0 %v3371_v6  ;;  %v3465_v36 = vsub.f32 %v80_v8, %v3384_v11  ;;  %v3481_v41 = vsub.f32 %v79_v9, %v3386_v12 }
   0x7   :  { %v3430_v25 = vand.u32 4294901760, %v3415_v21  ;;  %6249 = vst [vmem:[#allocation4_spill] sm:$0xff] %v3433_v26  ;;  %v3438_v27 = vld [vmem:[%s5992_s1 + $0x128] sm:$0xff]  ;;  %v3443_v28 = vld [vmem:[%s5992_s1 + $0x120] sm:$0xff]  ;;  %v6008_v30 = vand.u32 4294901760, %v3405_v19  ;;  %v3453_v31 = vand.u32 4294901760, %v3420_v22  ;;  %98 = vmatpush1.msra.mxu0 %v3382_v10  ;;  %v3495_v46 = vsub.f32 %v76_v13, %v3398_v16 }
   0x8   :  { %v3448_v29 = vld [vmem:[%s5992_s1 + $0x108] sm:$0xff]  ;;  %v3459_v33 = vand.u32 4294901760, %v3438_v27  ;;  %v6006_v34 = vand.u32 4294901760, %v3427_v24  ;;  %v6005_v35 = vand.u32 4294901760, %v3433_v26  ;;  %v3468_v37 = vand.u32 4294901760, %v3443_v28  ;;  %v3473_v38 = vld [vmem:[%s5992_s1 + $0x100] sm:$0xff]  ;;  %100 = vmatprep.subr.mxu0 %v3384_v11 }
   0x9   :  { %v367_v39 = vsub.f32 %v3405_v19, %v6008_v30  ;;  %v6003_v40 = vand.u32 4294901760, %v3456_v32  ;;  %v3484_v42 = vand.u32 4294901760, %v3448_v29  ;;  %102 = vmatpush1.msra.mxu0 %v3386_v12  ;;  %v6001_v45 = vand.u32 4294901760, %v3465_v36  ;;  %v3500_v47 = vld [vmem:[%s5992_s1 + $0xe8] sm:$0xff]  ;;  %v3513_v52 = vld [vmem:[%s5992_s1 + $0xe0] sm:$0xff] }
   0xa   :  { %6250 = vst [vmem:[#allocation5_spill] sm:$0xff] %v3468_v37  ;;  %v373_v43 = vsub.f32 %v3427_v24, %v6006_v34  ;;  %v379_v44 = vsub.f32 %v3433_v26, %v6005_v35  ;;  %104 = vmatprep.subr.mxu0 %v3398_v16  ;;  %v6000_v50 = vand.u32 4294901760, %v3481_v41  ;;  %v3508_v51 = vand.u32 4294901760, %v3473_v38  ;;  %v3523_v57 = vld [vmem:[%s5992_s1 + $0xc8] sm:$0xff]  ;;  %v3538_v62 = vld [vmem:[%s5992_s1 + $0xc0] sm:$0xff] }
   0xb   :  { %6251 = vst [vmem:[#allocation6_spill] sm:$0xff] %v3484_v42  ;;  %v368_v48 = vand.u32 4294901760, %v367_v39  ;;  %v385_v49 = vsub.f32 %v3456_v32, %v6003_v40  ;;  %106 = vmatpush1.msra.mxu0 %v3400_v17  ;;  %v391_v55 = vsub.f32 %v3465_v36, %v6001_v45  ;;  %v5998_v56 = vand.u32 4294901760, %v3495_v46  ;;  %v3553_v7 = vld [vmem:[%s5992_s1 + $0xa8] sm:$0xff]  ;;  %v3646_v45 = vld [vmem:[%s5992_s1 + $0x60] sm:$0xff] }
   0xc   :  { %6252 = vst [vmem:[#allocation7_spill] sm:$0xff] %v3508_v51  ;;  %v374_v53 = vand.u32 4294901760, %v373_v43  ;;  %v380_v54 = vand.u32 4294901760, %v379_v44  ;;  %108 = vmatprep.subr.mxu0 %v3402_v18  ;;  %v397_v59 = vsub.f32 %v3481_v41, %v6000_v50  ;;  %v3530_v60 = vsub.f32 %v75_v14, %v3400_v17  ;;  %v3662_v40 = vld [vmem:[%s5992_s1 + $0x48] sm:$0xff] }
   0xd   :  { %369 = vmatprep.subr.mxu1 %v368_v48  ;;  %v386_v58 = vand.u32 4294901760, %v385_v49  ;;  %v3533_v61 = vand.u32 4294901760, %v3500_v47  ;;  %110 = vmatpush1.msra.mxu0 %v3424_v23  ;;  %v392_v63 = vand.u32 4294901760, %v391_v55  ;;  %v403_v0 = vsub.f32 %v3495_v46, %v5998_v56  ;;  %v3689_v30 = vld [vmem:[%s5992_s1 + $0x28] sm:$0xff] }
   0xe   :  { %375 = vmatpush1.msra.mxu1 %v374_v53  ;;  %v3545_v1 = vsub.f32 %v72_v15, %v3402_v18  ;;  %v3548_v2 = vand.u32 4294901760, %v3513_v52  ;;  %112 = vmatprep.subr.mxu0 %v3430_v25  ;;  %v398_v8 = vand.u32 4294901760, %v397_v59  ;;  %v5996_v9 = vand.u32 4294901760, %v3530_v60  ;;  %v3567_v15 = vld [vmem:[%s5992_s1 + $0xa0] sm:$0xff] }
   0xf   :  { %6253 = vst [vmem:[#allocation8_spill] sm:$0xff] %v3533_v61  ;;  %381 = vmatprep.subr.mxu1 %v380_v54  ;;  %v3559_v13 = vsub.f32 %v3410_v20, %v3424_v23  ;;  %v3562_v14 = vand.u32 4294901760, %v3523_v57  ;;  %114 = vmatpush1.msra.mxu0 %v3453_v31  ;;  %v404_v39 = vand.u32 4294901760, %v403_v0  ;;  %v3573_v44 = vsub.f32 %v3415_v21, %v3430_v25  ;;  %v3593_v21 = vld [vmem:[%s5992_s1 + $0x88] sm:$0xff] }
  0x10   :  { %6254 = vst [vmem:[#allocation9_spill] sm:$0xff] %v3548_v2  ;;  %387 = vmatpush1.msra.mxu1 %v386_v58  ;;  %v5995_v43 = vand.u32 4294901760, %v3545_v1  ;;  %v3576_v20 = vand.u32 4294901760, %v3538_v62  ;;  %116 = vmatprep.subr.mxu0 %v3459_v33  ;;  %v409_v48 = vsub.f32 %v3530_v60, %v5996_v9  ;;  %v3585_v53 = vsub.f32 %v3420_v22, %v3453_v31 }
  0x11   :  { %6255 = vst [vmem:[#allocation10_spill] sm:$0xff] %v3562_v14  ;;  %393 = vmatprep.subr.mxu1 %v392_v63  ;;  %v5997_v49 = vand.u32 4294901760, %v3559_v13  ;;  %v3588_v54 = vand.u32 4294901760, %v3553_v7  ;;  %118 = vmatpush1.msra.mxu0 %v3468_v37  ;;  %v5999_v58 = vand.u32 4294901760, %v3573_v44  ;;  %v3602_v22 = vsub.f32 %v3438_v27, %v3459_v33  ;;  %v3619_v27 = vld [vmem:[%s5992_s1 + $0x80] sm:$0xff] }
  0x12   :  { %6256 = vst [vmem:[#allocation11_spill] sm:$0xff] %v3576_v20  ;;  %399 = vmatpush1.msra.mxu1 %v398_v8  ;;  %v415_v55 = vsub.f32 %v3545_v1, %v5995_v43  ;;  %v3605_v59 = vand.u32 4294901760, %v3567_v15  ;;  %120 = vmatprep.subr.mxu0 %v3484_v42  ;;  %v410_v63 = vand.u32 4294901760, %v409_v48  ;;  %v6002_v8 = vand.u32 4294901760, %v3585_v53 }
  0x13   :  { %6257 = vst [vmem:[#allocation12_spill] sm:$0xff] %v3588_v54  ;;  %405 = vmatprep.subr.mxu1 %v404_v39  ;;  %v421_v0 = vsub.f32 %v3559_v13, %v5997_v49  ;;  %v3614_v43 = vsub.f32 %v3443_v28, %v3468_v37  ;;  %122 = vmatpush1.msra.mxu0 %v3508_v51  ;;  %v6004_v48 = vand.u32 4294901760, %v3602_v22  ;;  %v3627_v49 = vand.u32 4294901760, %v3593_v21  ;;  %v3632_v28 = vld [vmem:[%s5992_s1 + $0x68] sm:$0xff] }
  0x14   :  { %6258 = vst [vmem:[#allocation13_spill] sm:$0xff] %v3605_v59  ;;  %v416_v9 = vand.u32 4294901760, %v415_v55  ;;  %v427_v39 = vsub.f32 %v3573_v44, %v5999_v58  ;;  %411 = vmatpush1.msra.mxu1 %v410_v63  ;;  %124 = vmatprep.subr.mxu0 %v3533_v61  ;;  %v433_v55 = vsub.f32 %v3585_v53, %v6002_v8  ;;  %v3653_v8 = vand.u32 4294901760, %v3619_v27 }
  0x15   :  { %6259 = vst [vmem:[#allocation14_spill] sm:$0xff] %v3627_v49  ;;  %v422_v56 = vand.u32 4294901760, %v421_v0  ;;  %v6007_v58 = vand.u32 4294901760, %v3614_v43  ;;  %v3641_v50 = vsub.f32 %v3448_v29, %v3484_v42  ;;  %126 = vmatpush1.msra.mxu0 %v3548_v2  ;;  %v439_v0 = vsub.f32 %v3602_v22, %v6004_v48 }
  0x16   :  { %417 = vmatprep.subr.mxu1 %v416_v9  ;;  %v428_v63 = vand.u32 4294901760, %v427_v39  ;;  %v3657_v29 = vsub.f32 %v3473_v38, %v3508_v51  ;;  %128 = vmatprep.subr.mxu0 %v3562_v14  ;;  %v434_v9 = vand.u32 4294901760, %v433_v55  ;;  %v3670_v35 = vand.u32 4294901760, %v3632_v28  ;;  %v3675_v38 = vld [vmem:[%s5992_s1 + $0x40] sm:$0xff] }
  0x17   :  { %423 = vmatpush1.msra.mxu1 %v422_v56  ;;  %v445_v39 = vsub.f32 %v3614_v43, %v6007_v58  ;;  %v6013_v48 = vand.u32 4294901760, %v3641_v50  ;;  %130 = vmatpush1.msra.mxu0 %v3576_v20  ;;  %v440_v56 = vand.u32 4294901760, %v439_v0  ;;  %v3681_v34 = vsub.f32 %v3500_v47, %v3533_v61 }
  0x18   :  { %6260 = vst [vmem:[#allocation15_spill] sm:$0xff] %v3657_v29  ;;  %429 = vmatprep.subr.mxu1 %v428_v63  ;;  %v6014_v55 = vand.u32 4294901760, %v3657_v29  ;;  %v3684_v58 = vand.u32 4294901760, %v3646_v45  ;;  %132 = vmatprep.subr.mxu0 %v3588_v54  ;;  %v3697_v47 = vsub.f32 %v3513_v52, %v3548_v2  ;;  %v3700_v3 = vand.u32 4294901760, %v3662_v40  ;;  %v3717_v52 = vld [vmem:[%s5992_s1 + $0x20] sm:$0xff] }
  0x19   :  { %6261 = vst [vmem:[#allocation16_spill] sm:$0xff] %v3681_v34  ;;  %435 = vmatpush1.msra.mxu1 %v434_v9  ;;  %v446_v63 = vand.u32 4294901760, %v445_v39  ;;  %v451_v0 = vsub.f32 %v3641_v50, %v6013_v48  ;;  %134 = vmatpush1.msra.mxu0 %v3605_v59  ;;  %v3709_v61 = vsub.f32 %v3523_v57, %v3562_v14  ;;  %v3712_v48 = vand.u32 4294901760, %v3675_v38  ;;  %v3731_v14 = vld [vmem:[%s5992_s1 + $0x8] sm:$0xff] }
  0x1a   :  { %6262 = vst [vmem:[#allocation17_spill] sm:$0xff] %v3684_v58  ;;  %6263 = vst [vmem:[#allocation18_spill] sm:$0xff] %v3697_v47  ;;  %441 = vmatprep.subr.mxu1 %v440_v56  ;;  %v457_v9 = vsub.f32 %v3657_v29, %v6014_v55  ;;  %136 = vmatprep.subr.mxu0 %v3627_v49  ;;  %v3723_v39 = vsub.f32 %v3538_v62, %v3576_v20  ;;  %v3726_v57 = vand.u32 4294901760, %v3689_v30 }
  0x1b   :  { %6264 = vst [vmem:[#allocation19_spill] sm:$0xff] %v3700_v3  ;;  %6265 = vst [vmem:[#allocation20_spill] sm:$0xff] %v3709_v61  ;;  %447 = vmatpush1.msra.mxu1 %v446_v63  ;;  %v452_v56 = vand.u32 4294901760, %v451_v0  ;;  %138 = vmatpush1.msra.mxu0 %v3653_v8  ;;  %v6269_v2 = vand.u32 4294901760, %v3681_v34  ;;  %v6031_v55 = vand.u32 4294901760, %v3709_v61  ;;  %v3740_v62 = vsub.f32 %v3553_v7, %v3588_v54  ;;  %v3757_v7 = vld [vmem:[%s5992_s1] sm:$0xff] }
  0x1c   :  { %6266 = vst [vmem:[#allocation21_spill] sm:$0xff] %v3712_v48  ;;  %6267 = vst [vmem:[#allocation22_spill] sm:$0xff] %v3723_v39  ;;  %v458_v63 = vand.u32 4294901760, %v457_v9  ;;  %140 = vmatprep.subr.mxu0 %v3670_v35  ;;  %v6271_v20 = vand.u32 4294901760, %v3697_v47  ;;  %v3748_v9 = vand.u32 4294901760, %v3717_v52  ;;  %v3765_v54 = vand.u32 4294901760, %v3731_v14 }
  0x1d   :  { %6268 = vst [vmem:[#allocation23_spill] sm:$0xff] %v3726_v57  ;;  %v463_v0 = vsub.f32 %v3681_v34, %v6269_v2  ;;  %6270 = vst [vmem:[#allocation24_spill] sm:$0xff] %v3740_v62  ;;  %453 = vmatprep.subr.mxu1 %v452_v56  ;;  %v3752_v2 = vsub.f32 %v3567_v15, %v3605_v59  ;;  %142 = vmatpush1.msra.mxu0 %v3684_v58  ;;  %v11_v15 = vld [vmem:[%s5993_s0] sm:$0xff] }
  0x1e   :  { %v469_v51 = vsub.f32 %v3697_v47, %v6271_v20  ;;  %6272 = vst [vmem:[#allocation25_spill] sm:$0xff] %v3748_v9  ;;  %459 = vmatpush1.msra.mxu1 %v458_v63  ;;  %v475_v20 = vsub.f32 %v3709_v61, %v6031_v55  ;;  %6273 = vst [vmem:[#allocation26_spill] sm:$0xff] %v3765_v54  ;;  %144 = vmatprep.subr.mxu0 %v3700_v3  ;;  %v6274_v63 = vand.u32 4294901760, %v3723_v39 }
  0x1f   :  { %v464_v56 = vand.u32 4294901760, %v463_v0  ;;  %v3777_v55 = vsub.f32 %v3593_v21, %v3627_v49  ;;  %146 = vmatpush1.msra.mxu0 %v3712_v48  ;;  %v6275_v61 = vand.u32 4294901760, %v3740_v62  ;;  %v3784_v47 = vand.u32 4294901760, %v3757_v7 }
  0x20   :  { %v470_v59 = vand.u32 4294901760, %v469_v51  ;;  %v481_v0 = vsub.f32 %v3723_v39, %v6274_v63  ;;  %v476_v42 = vand.u32 4294901760, %v475_v20  ;;  %v3788_v63 = vsub.f32 %v3619_v27, %v3653_v8  ;;  %148 = vmatprep.subr.mxu0 %v3726_v57 }
  0x21   :  { %465 = vmatprep.subr.mxu1 %v464_v56  ;;  %v487_v51 = vsub.f32 %v3740_v62, %v6275_v61  ;;  %6276 = vst [vmem:[#allocation27_spill] sm:$0xff] %v3784_v47  ;;  %v6277_v21 = vand.u32 4294901760, %v3752_v2  ;;  %v6040_v20 = vand.u32 4294901760, %v3777_v55  ;;  %v3795_v49 = vand.u32 4294901760, %v11_v15  ;;  %150 = vmatpush1.msra.mxu0 %v3748_v9 }
  0x22   :  { %471 = vmatpush1.msra.mxu1 %v470_v59  ;;  %v482_v37 = vand.u32 4294901760, %v481_v0  ;;  %v6043_v62 = vand.u32 4294901760, %v3788_v63  ;;  %v3801_v59 = vsub.f32 %v3632_v28, %v3670_v35  ;;  %v3805_v27 = vsub.f32 %v3646_v45, %v3684_v58  ;;  %v12_v0 = vld [vmem:[%s5993_s0 + $0x8] sm:$0xff]  ;;  %152 = vmatprep.subr.mxu0 %v3765_v54 }
  0x23   :  { %v493_v56 = vsub.f32 %v3752_v2, %v6277_v21  ;;  %6278 = vst [vmem:[#allocation28_spill] sm:$0xff] %v3795_v49  ;;  %477 = vmatprep.subr.mxu1 %v476_v42  ;;  %v488_v61 = vand.u32 4294901760, %v487_v51  ;;  %v499_v42 = vsub.f32 %v3777_v55, %v6040_v20  ;;  %v3815_v51 = vsub.f32 %v11_v15, %v3795_v49 }
  0x24   :  { %483 = vmatpush1.msra.mxu1 %v482_v37  ;;  %v3819_v28 = vsub.f32 %v3662_v40, %v3700_v3  ;;  %154 = vmatpush1.msra.mxu0 %v3784_v47  ;;  %v505_v37 = vsub.f32 %v3788_v63, %v6043_v62  ;;  %v6048_v45 = vand.u32 4294901760, %v3801_v59  ;;  %v3829_v20 = vsub.f32 %v3675_v38, %v3712_v48 }
  0x25   :  { %v494_v21 = vand.u32 4294901760, %v493_v56  ;;  %6279 = vst [vmem:[#allocation29_spill] sm:$0xff] %v3815_v51  ;;  %489 = vmatprep.subr.mxu1 %v488_v61  ;;  %v500_v15 = vand.u32 4294901760, %v499_v42  ;;  %v3832_v40 = vand.u32 4294901760, %v3815_v51  ;;  %v3835_v3 = vand.u32 4294901760, %v12_v0  ;;  %703 = vmatprep.subr.mxu0 %v3405_v19 }
  0x26   :  { %v6052_v61 = vand.u32 4294901760, %v3819_v28  ;;  %v506_v62 = vand.u32 4294901760, %v505_v37  ;;  %v511_v56 = vsub.f32 %v3801_v59, %v6048_v45  ;;  %v6282_v58 = vand.u32 4294901760, %v3805_v27 }
  0x27   :  { %495 = vmatpush1.msra.mxu1 %v494_v21  ;;  %6280 = vst [vmem:[#allocation30_spill] sm:$0xff] %v3832_v40  ;;  %6281 = vst [vmem:[#allocation31_spill] sm:$0xff] %v3835_v3  ;;  %v6053_v21 = vand.u32 4294901760, %v3829_v20  ;;  %v191_v42 = vsub.f32 %v3815_v51, %v3832_v40  ;;  %v3851_v37 = vsub.f32 %v12_v0, %v3835_v3  ;;  %v13_v0 = vld [vmem:[%s5993_s0 + $0x10] sm:$0xff] }
  0x28   :  { %v517_v38 = vsub.f32 %v3805_v27, %v6282_v58  ;;  %501 = vmatprep.subr.mxu1 %v500_v15  ;;  %v523_v48 = vsub.f32 %v3819_v28, %v6052_v61  ;;  %v3855_v45 = vsub.f32 %v3689_v30, %v3726_v57  ;;  %v512_v19 = vand.u32 4294901760, %v511_v56  ;;  %v14_v30 = vld [vmem:[%s5993_s0 + $0x18] sm:$0xff] }
  0x29   :  { %6283 = vst [vmem:[#allocation32_spill] sm:$0xff] %v3851_v37  ;;  %507 = vmatpush1.msra.mxu1 %v506_v62  ;;  %v529_v15 = vsub.f32 %v3829_v20, %v6053_v21  ;;  %v3862_v40 = vsub.f32 %v3717_v52, %v3748_v9  ;;  %v3870_v61 = vand.u32 4294901760, %v191_v42  ;;  %v3873_v56 = vand.u32 4294901760, %v3851_v37  ;;  %v15_v52 = vld [vmem:[%s5993_s0 + $0x20] sm:$0xff] }
  0x2a   :  { %v518_v58 = vand.u32 4294901760, %v517_v38  ;;  %v524_v62 = vand.u32 4294901760, %v523_v48  ;;  %v6063_v38 = vand.u32 4294901760, %v3855_v45  ;;  %513 = vmatprep.subr.mxu1 %v512_v19  ;;  %v3882_v51 = vsub.f32 %v3731_v14, %v3765_v54 }
  0x2b   :  { %6284 = vst [vmem:[#allocation33_spill] sm:$0xff] %v3870_v61  ;;  %6285 = vst [vmem:[#allocation34_spill] sm:$0xff] %v3873_v56  ;;  %v530_v21 = vand.u32 4294901760, %v529_v15  ;;  %v3886_v48 = vsub.f32 %v3757_v7, %v3784_v47  ;;  %193 = vmatmul.mubr.f32.vlgmr.msra.gmra.mxu0 %v3870_v61  ;;  %v202_v42 = vsub.f32 %v3851_v37, %v3873_v56  ;;  %v3894_v15 = vand.u32 4294901760, %v13_v0  ;;  %v17_v61 = vld [vmem:[%s5993_s0 + $0x30] sm:$0xff] }
  0x2c   :  { %519 = vmatpush1.msra.mxu1 %v518_v58  ;;  %v535_v19 = vsub.f32 %v3855_v45, %v6063_v38  ;;  %v3896_v9 = vand.u32 4294901760, %v14_v30  ;;  %v6289_v14 = vmov 0.0   ;;  %v6290_v7 = vand.u32 4294901760, %v3862_v40  ;;  %v16_v38 = vld [vmem:[%s5993_s0 + $0x28] sm:$0xff]  ;;  %706 = vmatpush1.msra.mxu0 %v3427_v24 }
  0x2d   :  { %6286 = vst [vmem:[#allocation35_spill] sm:$0xff] %v3886_v48  ;;  %6287 = vst [vmem:[#allocation36_spill] sm:$0xff] %v3894_v15  ;;  %525 = vmatprep.subr.mxu1 %v524_v62  ;;  %198 = vmatprep.mubr.f32.mxu0 %v6289_v14  ;;  %v3904_v56 = vand.u32 4294901760, %v15_v52  ;;  %v3909_v37 = vand.u32 4294901760, %v202_v42  ;;  %v3913_v54 = vsub.f32 %v13_v0, %v3894_v15  ;;  %v6295_v57 = vand.u32 4294901760, %v3882_v51 }
  0x2e   :  { %6288 = vst [vmem:[#allocation37_spill] sm:$0xff] %v3896_v9  ;;  %v541_v47 = vsub.f32 %v3862_v40, %v6290_v7  ;;  %531 = vmatpush1.msra.mxu1 %v530_v21  ;;  %v536_v62 = vand.u32 4294901760, %v535_v19  ;;  %v3916_v7 = vsub.f32 %v14_v30, %v3896_v9  ;;  %v6296_v42 = vand.u32 4294901760, %v3886_v48  ;;  %709 = vmatprep.subr.mxu0 %v3433_v26 }
  0x2f   :  { %6291 = vst [vmem:[#allocation38_spill] sm:$0xff] %v3904_v56  ;;  %6292 = vst [vmem:[#allocation39_spill] sm:$0xff] %v3909_v37  ;;  %v547_v21 = vsub.f32 %v3882_v51, %v6295_v57  ;;  %v3929_v0 = vsub.f32 %v15_v52, %v3904_v56  ;;  %204 = vmatmul.mubr.f32.gmra.mxu0 %v3909_v37  ;;  %v3933_v30 = vand.u32 4294901760, %v3913_v54  ;;  %v3938_v24 = vand.u32 4294901760, %v16_v38 }
  0x30   :  { %6293 = vst [vmem:[#allocation40_spill] sm:$0xff] %v3913_v54  ;;  %6294 = vst [vmem:[#allocation41_spill] sm:$0xff] %v3916_v7  ;;  %v542_v58 = vand.u32 4294901760, %v541_v47  ;;  %v553_v19 = vsub.f32 %v3886_v48, %v6296_v42  ;;  %537 = vmatprep.subr.mxu1 %v536_v62  ;;  %v3936_v47 = vand.u32 4294901760, %v3916_v7  ;;  %209 = vmatprep.mubr.f32.mxu0 %v6289_v14  ;;  %v3941_v26 = vand.u32 4294901760, %v17_v61 }
  0x31   :  { %6297 = vst [vmem:[#allocation42_spill] sm:$0xff] %v3929_v0  ;;  %6298 = vst [vmem:[#allocation43_spill] sm:$0xff] %v3933_v30  ;;  %v548_v57 = vand.u32 4294901760, %v547_v21  ;;  %v213_v52 = vsub.f32 %v3913_v54, %v3933_v30  ;;  %712 = vmatpush1.msra.mxu0 %v3456_v32  ;;  %v3949_v37 = vand.u32 4294901760, %v3929_v0  ;;  %v3952_v48 = vsub.f32 %v16_v38, %v3938_v24 }
  0x32   :  { %6299 = vst [vmem:[#allocation44_spill] sm:$0xff] %v3936_v47  ;;  %6300 = vst [vmem:[#allocation45_spill] sm:$0xff] %v3938_v24  ;;  %543 = vmatpush1.msra.mxu1 %v542_v58  ;;  %v554_v42 = vand.u32 4294901760, %v553_v19  ;;  %v224_v62 = vsub.f32 %v3916_v7, %v3936_v47  ;;  %v18_v58 = vld [vmem:[%s5993_s0 + $0x38] sm:$0xff]  ;;  %715 = vmatprep.subr.mxu0 %v3465_v36 }
  0x33   :  { %6301 = vst [vmem:[#allocation46_spill] sm:$0xff] %v3941_v26  ;;  %6302 = vst [vmem:[#allocation47_spill] sm:$0xff] %v3949_v37  ;;  %549 = vmatprep.subr.mxu1 %v548_v57  ;;  %v3958_v21 = vand.u32 4294901760, %v213_v52  ;;  %718 = vmatpush1.msra.mxu0 %v3481_v41  ;;  %v3963_v19 = vand.u32 4294901760, %v18_v58  ;;  %v235_v57 = vsub.f32 %v3929_v0, %v3949_v37 }
  0x34   :  { %6303 = vst [vmem:[#allocation48_spill] sm:$0xff] %v3952_v48  ;;  %555 = vmatpush1.msra.mxu1 %v554_v42  ;;  %v3967_v38 = vand.u32 4294901760, %v224_v62  ;;  %v3972_v42 = vand.u32 4294901760, %v3952_v48  ;;  %v3975_v52 = vsub.f32 %v17_v61, %v3941_v26  ;;  %721 = vmatprep.subr.mxu0 %v3495_v46 }
  0x35   :  { %6304 = vst [vmem:[#allocation49_spill] sm:$0xff] %v3958_v21  ;;  %590 = vmatmul.mubr.f32.vlgmr.msra.gmra.mxu1 %v3795_v49  ;;  %959 = vmatprep.subr.mxu1 %v3367_v4  ;;  %6305 = vst [vmem:[#allocation50_spill] sm:$0xff] %v3963_v19  ;;  %v3987_v62 = vsub.f32 %v18_v58, %v3963_v19  ;;  %v3991_v61 = vand.u32 4294901760, %v235_v57 }
  0x36   :  { %215 = vmatmul.mubr.f32.gmra.mxu0 %v3958_v21  ;;  %961 = vmatpush1.msra.mxu1 %v3369_v5  ;;  %6306 = vst [vmem:[#allocation51_spill] sm:$0xff] %v3967_v38  ;;  %6307 = vst [vmem:[#allocation52_spill] sm:$0xff] %v3972_v42  ;;  %v19_v21 = vld [vmem:[%s5993_s0 + $0x40] sm:$0xff]  ;;  %v246_v49 = vsub.f32 %v3952_v48, %v3972_v42  ;;  %v3996_v37 = vand.u32 4294901760, %v3975_v52 }
  0x37   :  { %6308 = vst [vmem:[#allocation53_spill] sm:$0xff] %v3975_v52  ;;  %220 = vmatprep.mubr.f32.mxu0 %v6289_v14  ;;  %595 = vmatprep.mubr.f32.mxu1 %v6289_v14  ;;  %6309 = vst [vmem:[#allocation54_spill] sm:$0xff] %v3987_v62  ;;  %v3998_v47 = vand.u32 4294901760, %v19_v21  ;;  %v4018_v42 = vand.u32 4294901760, %v3987_v62 }
  0x38   :  { %963 = vmatprep.subr.mxu1 %v3371_v6  ;;  %724 = vmatpush1.msra.mxu0 %v3530_v60  ;;  %6310 = vst [vmem:[#allocation55_spill] sm:$0xff] %v3991_v61  ;;  %6311 = vst [vmem:[#allocation56_spill] sm:$0xff] %v3996_v37  ;;  %v4013_v57 = vand.u32 4294901760, %v246_v49 }
  0x39   :  { %597 = vmatmul.mubr.f32.gmra.mxu1 %v3835_v3  ;;  %6312 = vst [vmem:[#allocation57_spill] sm:$0xff] %v3998_v47  ;;  %v20_v3 = vld [vmem:[%s5993_s0 + $0x48] sm:$0xff]  ;;  %727 = vmatprep.subr.mxu0 %v3545_v1  ;;  %6315 = vst [vmem:[#allocation60_spill] sm:$0xff] %v4018_v42  ;;  %v4021_v48 = vsub.f32 %v19_v21, %v3998_v47 }
  0x3a   :  { %226 = vmatmul.mubr.f32.gmra.mxu0 %v3967_v38  ;;  %965 = vmatpush1.msra.mxu1 %v3382_v10  ;;  %v4009_v58 = vand.u32 4294901760, %v20_v3  ;;  %6314 = vst [vmem:[#allocation59_spill] sm:$0xff] %v4013_v57  ;;  %v257_v38 = vsub.f32 %v3975_v52, %v3996_v37 }
  0x3b   :  { %231 = vmatprep.mubr.f32.mxu0 %v6289_v14  ;;  %602 = vmatprep.mubr.f32.mxu1 %v6289_v14  ;;  %6316 = vst [vmem:[#allocation61_spill] sm:$0xff] %v4021_v48  ;;  %v4042_v37 = vand.u32 4294901760, %v4021_v48 }
  0x3c   :  { %967 = vmatprep.subr.mxu1 %v3384_v11  ;;  %730 = vmatpush1.msra.mxu0 %v3559_v13  ;;  %6313 = vst [vmem:[#allocation58_spill] sm:$0xff] %v4009_v58  ;;  %v4033_v49 = vsub.f32 %v20_v3, %v4009_v58  ;;  %v4037_v21 = vand.u32 4294901760, %v257_v38 }
  0x3d   :  { %604 = vmatmul.mubr.f32.gmra.mxu1 %v3894_v15  ;;  %733 = vmatprep.subr.mxu0 %v3573_v44  ;;  %v268_v15 = vsub.f32 %v3987_v62, %v4018_v42  ;;  %6319 = vst [vmem:[#allocation64_spill] sm:$0xff] %v4042_v37 }
  0x3e   :  { %237 = vmatmul.mubr.f32.gmra.mxu0 %v3991_v61  ;;  %969 = vmatpush1.msra.mxu1 %v3386_v12  ;;  %v21_v61 = vld [vmem:[%s5993_s0 + $0x50] sm:$0xff]  ;;  %6317 = vst [vmem:[#allocation62_spill] sm:$0xff] %v4033_v49  ;;  %6318 = vst [vmem:[#allocation63_spill] sm:$0xff] %v4037_v21  ;;  %v4064_v42 = vand.u32 4294901760, %v4033_v49 }
  0x3f   :  { %242 = vmatprep.mubr.f32.mxu0 %v6289_v14  ;;  %609 = vmatprep.mubr.f32.mxu1 %v6289_v14  ;;  %v4044_v52 = vand.u32 4294901760, %v21_v61  ;;  %v4059_v38 = vand.u32 4294901760, %v268_v15 }
  0x40   :  { %971 = vmatprep.subr.mxu1 %v3398_v16  ;;  %736 = vmatpush1.msra.mxu0 %v3585_v53  ;;  %6323 = vst [vmem:[#allocation68_spill] sm:$0xff] %v4064_v42 }
  0x41   :  { %611 = vmatmul.mubr.f32.gmra.mxu1 %v3896_v9  ;;  %6320 = vst [vmem:[#allocation65_spill] sm:$0xff] %v4044_v52  ;;  %v22_v9 = vld [vmem:[%s5993_s0 + $0x58] sm:$0xff]  ;;  %739 = vmatprep.subr.mxu0 %v3602_v22  ;;  %6322 = vst [vmem:[#allocation67_spill] sm:$0xff] %v4059_v38  ;;  %v4067_v62 = vsub.f32 %v21_v61, %v4044_v52 }
  0x42   :  { %248 = vmatmul.mubr.f32.gmra.mxu0 %v4013_v57  ;;  %973 = vmatpush1.msra.mxu1 %v3400_v17  ;;  %v4055_v3 = vand.u32 4294901760, %v22_v9  ;;  %v279_v57 = vsub.f32 %v4021_v48, %v4042_v37 }
  0x43   :  { %253 = vmatprep.mubr.f32.mxu0 %v6289_v14  ;;  %616 = vmatprep.mubr.f32.mxu1 %v6289_v14  ;;  %6324 = vst [vmem:[#allocation69_spill] sm:$0xff] %v4067_v62  ;;  %v4087_v37 = vand.u32 4294901760, %v4067_v62 }
  0x44   :  { %975 = vmatprep.subr.mxu1 %v3402_v18  ;;  %742 = vmatpush1.msra.mxu0 %v3614_v43  ;;  %6321 = vst [vmem:[#allocation66_spill] sm:$0xff] %v4055_v3  ;;  %v4082_v61 = vand.u32 4294901760, %v279_v57  ;;  %v4090_v48 = vsub.f32 %v22_v9, %v4055_v3  ;;  %v6329_v57 = vld [vmem:[#allocation18_spill] sm:$0xff]  ;;  %v6331_v9 = vld [vmem:[#allocation5_spill] sm:$0xff] }
  0x45   :  { %618 = vmatmul.mubr.f32.gmra.mxu1 %v3904_v56  ;;  %v23_v56 = vld [vmem:[%s5993_s0 + $0x60] sm:$0xff]  ;;  %745 = vmatprep.subr.mxu0 %v3641_v50  ;;  %6327 = vst [vmem:[#allocation72_spill] sm:$0xff] %v4087_v37 }
  0x46   :  { %259 = vmatmul.mubr.f32.gmra.mxu0 %v4037_v21  ;;  %977 = vmatpush1.msra.mxu1 %v3424_v23  ;;  %v4078_v15 = vand.u32 4294901760, %v23_v56  ;;  %6326 = vst [vmem:[#allocation71_spill] sm:$0xff] %v4082_v61  ;;  %v290_v21 = vsub.f32 %v4033_v49, %v4064_v42  ;;  %6328 = vst [vmem:[#allocation73_spill] sm:$0xff] %v4090_v48  ;;  %v301_v49 = vsub.f32 %v4067_v62, %v4087_v37  ;;  %v6338_v37 = vld [vmem:[#allocation7_spill] sm:$0xff] }
  0x47   :  { %264 = vmatprep.mubr.f32.mxu0 %v6289_v14  ;;  %623 = vmatprep.mubr.f32.mxu1 %v6289_v14 }
  0x48   :  { %979 = vmatprep.subr.mxu1 %v3430_v25  ;;  %748 = vmatpush1.msra.mxu0 %v3657_v29  ;;  %6325 = vst [vmem:[#allocation70_spill] sm:$0xff] %v4078_v15  ;;  %v4106_v42 = vand.u32 4294901760, %v290_v21  ;;  %v4111_v29 = vand.u32 4294901760, %v4090_v48  ;;  %v6336_v21 = vld [vmem:[#allocation20_spill] sm:$0xff]  ;;  %v4128_v62 = vand.u32 4294901760, %v301_v49 }
  0x49   :  { %625 = vmatmul.mubr.f32.gmra.mxu1 %v3938_v24  ;;  %751 = vmatprep.subr.mxu0 %v3681_v34  ;;  %v4102_v24 = vsub.f32 %v23_v56, %v4078_v15  ;;  %v6335_v56 = vld [vmem:[#allocation6_spill] sm:$0xff]  ;;  %v6343_v49 = vld [vmem:[#allocation24_spill] sm:$0xff] }
  0x4a   :  { %270 = vmatmul.mubr.f32.gmra.mxu0 %v4059_v38  ;;  %981 = vmatpush1.msra.mxu1 %v3453_v31  ;;  %v24_v38 = vld [vmem:[%s5993_s0 + $0x68] sm:$0xff]  ;;  %6332 = vst [vmem:[#allocation75_spill] sm:$0xff] %v4106_v42  ;;  %6333 = vst [vmem:[#allocation76_spill] sm:$0xff] %v4111_v29 }
  0x4b   :  { %275 = vmatprep.mubr.f32.mxu0 %v6289_v14  ;;  %630 = vmatprep.mubr.f32.mxu1 %v6289_v14  ;;  %6330 = vst [vmem:[#allocation74_spill] sm:$0xff] %v4102_v24  ;;  %v4113_v34 = vand.u32 4294901760, %v24_v38  ;;  %6339 = vst [vmem:[#allocation78_spill] sm:$0xff] %v4128_v62 }
  0x4c   :  { %983 = vmatprep.subr.mxu1 %v3459_v33  ;;  %754 = vmatpush1.msra.mxu0 %v6329_v57  ;;  %v312_v57 = vsub.f32 %v4090_v48, %v4111_v29 }
  0x4d   :  { %632 = vmatmul.mubr.f32.gmra.mxu1 %v3941_v26  ;;  %6334 = vst [vmem:[#allocation77_spill] sm:$0xff] %v4113_v34  ;;  %v25_v26 = vld [vmem:[%s5993_s0 + $0x70] sm:$0xff]  ;;  %757 = vmatprep.subr.mxu0 %v6336_v21  ;;  %v4136_v21 = vsub.f32 %v24_v38, %v4113_v34  ;;  %v6345_v38 = vld [vmem:[#allocation9_spill] sm:$0xff] }
  0x4e   :  { %281 = vmatmul.mubr.f32.gmra.mxu0 %v4082_v61  ;;  %985 = vmatpush1.msra.mxu1 %v6331_v9  ;;  %v4124_v61 = vand.u32 4294901760, %v25_v26  ;;  %v4133_v9 = vand.u32 4294901760, %v4102_v24  ;;  %v4151_v48 = vand.u32 4294901760, %v312_v57  ;;  %v6350_v57 = vld [vmem:[#allocation11_spill] sm:$0xff] }
  0x4f   :  { %286 = vmatprep.mubr.f32.mxu0 %v6289_v14  ;;  %637 = vmatprep.mubr.f32.mxu1 %v6289_v14  ;;  %6341 = vst [vmem:[#allocation80_spill] sm:$0xff] %v4136_v21 }
  0x50   :  { %987 = vmatprep.subr.mxu1 %v6335_v56  ;;  %760 = vmatpush1.msra.mxu0 %v3723_v39  ;;  %6337 = vst [vmem:[#allocation6_spill] sm:$0xff] %v4124_v61  ;;  %6340 = vst [vmem:[#allocation79_spill] sm:$0xff] %v4133_v9  ;;  %v323_v39 = vsub.f32 %v4102_v24, %v4133_v9 }
  0x51   :  { %639 = vmatmul.mubr.f32.gmra.mxu1 %v3963_v19  ;;  %v26_v19 = vld [vmem:[%s5993_s0 + $0x78] sm:$0xff]  ;;  %763 = vmatprep.subr.mxu0 %v6343_v49  ;;  %6346 = vst [vmem:[#allocation9_spill] sm:$0xff] %v4151_v48  ;;  %v4159_v49 = vsub.f32 %v25_v26, %v4124_v61 }
  0x52   :  { %292 = vmatmul.mubr.f32.gmra.mxu0 %v4106_v42  ;;  %989 = vmatpush1.msra.mxu1 %v6338_v37  ;;  %v6342_v42 = vld [vmem:[#allocation8_spill] sm:$0xff]  ;;  %v4147_v29 = vand.u32 4294901760, %v26_v19  ;;  %v4156_v37 = vand.u32 4294901760, %v4136_v21 }
  0x53   :  { %297 = vmatprep.mubr.f32.mxu0 %v6289_v14  ;;  %644 = vmatprep.mubr.f32.mxu1 %v6289_v14  ;;  %6348 = vst [vmem:[#allocation82_spill] sm:$0xff] %v4159_v49  ;;  %v4174_v9 = vand.u32 4294901760, %v4159_v49 }
  0x54   :  { %991 = vmatprep.subr.mxu1 %v6342_v42  ;;  %766 = vmatpush1.msra.mxu0 %v3752_v2  ;;  %6344 = vst [vmem:[#allocation8_spill] sm:$0xff] %v4147_v29  ;;  %6347 = vst [vmem:[#allocation81_spill] sm:$0xff] %v4156_v37  ;;  %v334_v26 = vsub.f32 %v4136_v21, %v4156_v37  ;;  %v4177_v24 = vsub.f32 %v26_v19, %v4147_v29  ;;  %v6358_v21 = vld [vmem:[#allocation14_spill] sm:$0xff] }
  0x55   :  { %646 = vmatmul.mubr.f32.gmra.mxu1 %v3998_v47  ;;  %v6349_v47 = vld [vmem:[#allocation10_spill] sm:$0xff]  ;;  %769 = vmatprep.subr.mxu0 %v3777_v55  ;;  %6352 = vst [vmem:[#allocation11_spill] sm:$0xff] %v4174_v9  ;;  %v345_v19 = vsub.f32 %v4159_v49, %v4174_v9  ;;  %v6368_v9 = vld [vmem:[#allocation29_spill] sm:$0xff] }
  0x56   :  { %303 = vmatmul.mubr.f32.gmra.mxu0 %v4128_v62  ;;  %993 = vmatpush1.msra.mxu1 %v6345_v38  ;;  %v4169_v62 = vand.u32 4294901760, %v323_v39  ;;  %6353 = vst [vmem:[#allocation83_spill] sm:$0xff] %v4177_v24  ;;  %v6355_v39 = vld [vmem:[#allocation13_spill] sm:$0xff]  ;;  %v4192_v37 = vand.u32 4294901760, %v4177_v24 }
  0x57   :  { %308 = vmatprep.mubr.f32.mxu0 %v6289_v14  ;;  %651 = vmatprep.mubr.f32.mxu1 %v6289_v14 }
  0x58   :  { %995 = vmatprep.subr.mxu1 %v6349_v47  ;;  %772 = vmatpush1.msra.mxu0 %v3788_v63  ;;  %6351 = vst [vmem:[#allocation10_spill] sm:$0xff] %v4169_v62  ;;  %6357 = vst [vmem:[#allocation13_spill] sm:$0xff] %v4192_v37 }
  0x59   :  { %653 = vmatmul.mubr.f32.gmra.mxu1 %v4009_v58  ;;  %v6354_v58 = vld [vmem:[#allocation12_spill] sm:$0xff]  ;;  %775 = vmatprep.subr.mxu0 %v3801_v59 }
  0x5a   :  { %314 = vmatmul.mubr.f32.gmra.mxu0 %v4151_v48  ;;  %997 = vmatpush1.msra.mxu1 %v6350_v57  ;;  %v4187_v48 = vand.u32 4294901760, %v334_v26  ;;  %v4202_v26 = vand.u32 4294901760, %v345_v19 }
  0x5b   :  { %319 = vmatprep.mubr.f32.mxu0 %v6289_v14  ;;  %658 = vmatprep.mubr.f32.mxu1 %v6289_v14 }
  0x5c   :  { %999 = vmatprep.subr.mxu1 %v6354_v58  ;;  %778 = vmatpush1.msra.mxu0 %v3805_v27  ;;  %6356 = vst [vmem:[#allocation12_spill] sm:$0xff] %v4187_v48  ;;  %6359 = vst [vmem:[#allocation14_spill] sm:$0xff] %v4202_v26 }
  0x5d   :  { %660 = vmatmul.mubr.f32.gmra.mxu1 %v4044_v52  ;;  %781 = vmatprep.subr.mxu0 %v3819_v28  ;;  %v6363_v52 = vld [vmem:[#allocation35_spill] sm:$0xff] }
  0x5e   :  { %325 = vmatmul.mubr.f32.gmra.mxu0 %v4169_v62  ;;  %1001 = vmatpush1.msra.mxu1 %v6355_v39  ;;  %v356_v62 = vsub.f32 %v4177_v24, %v4192_v37 }
  0x5f   :  { %330 = vmatprep.mubr.f32.mxu0 %v6289_v14  ;;  %665 = vmatprep.mubr.f32.mxu1 %v6289_v14 }
  0x60   :  { %1003 = vmatprep.subr.mxu1 %v6358_v21  ;;  %784 = vmatpush1.msra.mxu0 %v3829_v20  ;;  %v4214_v19 = vand.u32 4294901760, %v356_v62  ;;  %v6365_v62 = vld [vmem:[#allocation23_spill] sm:$0xff] }
  0x61   :  { %667 = vmatmul.mubr.f32.gmra.mxu1 %v4055_v3  ;;  %787 = vmatprep.subr.mxu0 %v3855_v45  ;;  %v6362_v3 = vld [vmem:[#allocation19_spill] sm:$0xff] }
  0x62   :  { %336 = vmatmul.mubr.f32.gmra.mxu0 %v4187_v48  ;;  %1005 = vmatpush1.msra.mxu1 %v3653_v8  ;;  %v6360_v48 = vld [vmem:[#allocation17_spill] sm:$0xff] }
  0x63   :  { %341 = vmatprep.mubr.f32.mxu0 %v6289_v14  ;;  %672 = vmatprep.mubr.f32.mxu1 %v6289_v14  ;;  %6361 = vst [vmem:[#allocation17_spill] sm:$0xff] %v4214_v19 }
  0x64   :  { %1007 = vmatprep.subr.mxu1 %v3670_v35  ;;  %790 = vmatpush1.msra.mxu0 %v3862_v40 }
  0x65   :  { %674 = vmatmul.mubr.f32.gmra.mxu1 %v4078_v15  ;;  %793 = vmatprep.subr.mxu0 %v3882_v51  ;;  %v6364_v15 = vld [vmem:[#allocation21_spill] sm:$0xff] }
  0x66   :  { %347 = vmatmul.mubr.f32.gmra.mxu0 %v4202_v26  ;;  %1009 = vmatpush1.msra.mxu1 %v6360_v48  ;;  %v6366_v26 = vld [vmem:[#allocation2_spill] sm:$0xff] }
  0x67   :  { %352 = vmatprep.mubr.f32.mxu0 %v6289_v14  ;;  %679 = vmatprep.mubr.f32.mxu1 %v6289_v14  ;;  %v6367_v37 = vand.u32 4294901760, %v6366_v26 }
  0x68   :  { %1011 = vmatprep.subr.mxu1 %v6362_v3  ;;  %796 = vmatpush1.msra.mxu0 %v6363_v52  ;;  %v6371_v52 = vld [vmem:[#allocation3_spill] sm:$0xff] }
  0x69   :  { %681 = vmatmul.mubr.f32.gmra.mxu1 %v4113_v34  ;;  %1202 = vmatprep.subr.mxu0 %v6367_v37  ;;  %v6369_v34 = vld [vmem:[#allocation25_spill] sm:$0xff]  ;;  %v6375_v37 = vld [vmem:[#allocation32_spill] sm:$0xff] }
  0x6a   :  { %358 = vmatmul.mubr.f32.gmra.mxu0 %v4214_v19  ;;  %1013 = vmatpush1.msra.mxu1 %v6364_v15  ;;  %v6370_v19 = vld [vmem:[#allocation26_spill] sm:$0xff]  ;;  %v6372_v15 = vand.u32 4294901760, %v6371_v52 }
  0x6b   :  { %686 = vmatprep.mubr.f32.mxu1 %v6289_v14  ;;  %829 = vmatprep.mubr.f32.mxu0 %v6289_v14  ;;  %v6378_v52 = vld [vmem:[#allocation30_spill] sm:$0xff] }
  0x6c   :  { %1015 = vmatprep.subr.mxu1 %v6365_v62  ;;  %v6373_v62 = vld [vmem:[#allocation4_spill] sm:$0xff] }
  0x6d   :  { %688 = vmatmul.mubr.f32.gmra.mxu1 %v4124_v61  ;;  %v6374_v26 = vand.u32 4294901760, %v6373_v62  ;;  %v6376_v61 = vld [vmem:[#allocation27_spill] sm:$0xff]  ;;  %v6406_v62 = vld [vmem:[#allocation60_spill] sm:$0xff] }
  0x6e   :  { %832 = vmatmul.mubr.f32.vlgmr.msra.gmra.mxu0 %v6368_v9  ;;  %1017 = vmatpush1.msra.mxu1 %v6369_v34  ;;  %v6377_v9 = vand.u32 4294901760, %v3456_v32  ;;  %v6381_v32 = vld [vmem:[#allocation34_spill] sm:$0xff] }
  0x6f   :  { %693 = vmatprep.mubr.f32.mxu1 %v6289_v14  ;;  %837 = vmatprep.mubr.f32.mxu0 %v6289_v14 }
  0x70   :  { %1019 = vmatprep.subr.mxu1 %v6370_v19  ;;  %1206 = vmatpush1.msra.mxu0 %v6372_v15  ;;  %v6379_v15 = vand.u32 4294901760, %v3465_v36  ;;  %v6387_v36 = vand.u32 4294901760, %v3573_v44  ;;  %v6400_v44 = vld [vmem:[#allocation16_spill] sm:$0xff] }
  0x71   :  { %695 = vmatmul.mubr.f32.gmra.mxu1 %v4147_v29  ;;  %1210 = vmatprep.subr.mxu0 %v6374_v26  ;;  %v6407_v26 = vld [vmem:[#allocation20_spill] sm:$0xff] }
  0x72   :  { %840 = vmatmul.mubr.f32.gmra.mxu0 %v6375_v37  ;;  %1021 = vmatpush1.msra.mxu1 %v6376_v61 }
  0x73   :  { %845 = vmatprep.mubr.f32.mxu0 %v6289_v14  ;;  %1054 = vmatprep.mubr.f32.mxu1 %v6289_v14 }
  0x74   :  { %1473 = vmatprep.subr.mxu1 %v3367_v4  ;;  %1214 = vmatpush1.msra.mxu0 %v6377_v9  ;;  %v6380_v4 = vand.u32 4294901760, %v3481_v41  ;;  %v6382_v9 = vand.u32 4294901760, %v3495_v46  ;;  %v6388_v41 = vld [vmem:[#allocation48_spill] sm:$0xff]  ;;  %v6391_v46 = vand.u32 4294901760, %v3602_v22  ;;  %v6403_v22 = vld [vmem:[#allocation5_spill] sm:$0xff] }
  0x75   :  { %1058 = vmatmul.mubr.f32.vlgmr.msra.gmra.mxu1 %v6378_v52  ;;  %1218 = vmatprep.subr.mxu0 %v6379_v15  ;;  %v6408_v15 = vand.u32 4294901760, %v6407_v26  ;;  %v82_v26 = vld [vmem:[%s5992_s1 + $0x1b8] sm:$0xff] }
  0x76   :  { %848 = vmatmul.mubr.f32.gmra.mxu0 %v3913_v54  ;;  %1475 = vmatpush1.msra.mxu1 %v3369_v5  ;;  %v6383_v5 = vand.u32 4294901760, %v3530_v60  ;;  %v6392_v60 = vld [vmem:[#allocation53_spill] sm:$0xff]  ;;  %v6473_v54 = vld [vmem:[#allocation50_spill] sm:$0xff] }
  0x77   :  { %853 = vmatprep.mubr.f32.mxu0 %v6289_v14  ;;  %1063 = vmatprep.mubr.f32.mxu1 %v6289_v14 }
  0x78   :  { %1477 = vmatprep.subr.mxu1 %v3371_v6  ;;  %1222 = vmatpush1.msra.mxu0 %v6380_v4  ;;  %v6384_v6 = vand.u32 4294901760, %v3545_v1  ;;  %v6395_v1 = vand.u32 4294901760, %v3641_v50  ;;  %v6402_v50 = vld [vmem:[#allocation61_spill] sm:$0xff]  ;;  %v6409_v4 = vld [vmem:[#allocation62_spill] sm:$0xff] }
  0x79   :  { %1067 = vmatmul.mubr.f32.gmra.mxu1 %v6381_v32  ;;  %1226 = vmatprep.subr.mxu0 %v6382_v9  ;;  %v6410_v9 = vld [vmem:[#allocation7_spill] sm:$0xff] }
  0x7a   :  { %856 = vmatmul.mubr.f32.gmra.mxu0 %v3916_v7  ;;  %1479 = vmatpush1.msra.mxu1 %v3382_v10  ;;  %v6385_v10 = vand.u32 4294901760, %v3559_v13  ;;  %v6396_v13 = vld [vmem:[#allocation54_spill] sm:$0xff]  ;;  %v49_v7 = vld [vmem:[%s5992_s1 + $0xb0] sm:$0xff] }
  0x7b   :  { %861 = vmatprep.mubr.f32.mxu0 %v6289_v14  ;;  %1072 = vmatprep.mubr.f32.mxu1 %v6289_v14  ;;  %v4672_v37 = vand.u32 4294901760, %v49_v7 }
  0x7c   :  { %1481 = vmatprep.subr.mxu1 %v3384_v11  ;;  %1230 = vmatpush1.msra.mxu0 %v6383_v5  ;;  %v6386_v11 = vld [vmem:[#allocation44_spill] sm:$0xff]  ;;  %v6411_v5 = vld [vmem:[#allocation22_spill] sm:$0xff] }
  0x7d   :  { %1076 = vmatmul.mubr.f32.gmra.mxu1 %v3933_v30  ;;  %1234 = vmatprep.subr.mxu0 %v6384_v6  ;;  %v6413_v6 = vld [vmem:[#allocation64_spill] sm:$0xff] }
  0x7e   :  { %864 = vmatmul.mubr.f32.gmra.mxu0 %v3929_v0  ;;  %1483 = vmatpush1.msra.mxu1 %v3386_v12  ;;  %v6389_v12 = vand.u32 4294901760, %v3585_v53  ;;  %v6401_v53 = vand.u32 4294901760, %v6400_v44  ;;  %v6429_v44 = vld [vmem:[#allocation80_spill] sm:$0xff] }
  0x7f   :  { %869 = vmatprep.mubr.f32.mxu0 %v6289_v14  ;;  %1081 = vmatprep.mubr.f32.mxu1 %v6289_v14 }
  0x80   :  { %1485 = vmatprep.subr.mxu1 %v3398_v16  ;;  %1238 = vmatpush1.msra.mxu0 %v6385_v10  ;;  %v6390_v16 = vld [vmem:[#allocation47_spill] sm:$0xff]  ;;  %v6414_v10 = vld [vmem:[#allocation24_spill] sm:$0xff] }
  0x81   :  { %1085 = vmatmul.mubr.f32.gmra.mxu1 %v6386_v11  ;;  %1242 = vmatprep.subr.mxu0 %v6387_v36  ;;  %v6415_v36 = vand.u32 4294901760, %v6414_v10 }
  0x82   :  { %872 = vmatmul.mubr.f32.gmra.mxu0 %v6388_v41  ;;  %1487 = vmatpush1.msra.mxu1 %v3400_v17  ;;  %v6393_v17 = vand.u32 4294901760, %v3614_v43  ;;  %v6399_v43 = vld [vmem:[#allocation56_spill] sm:$0xff] }
  0x83   :  { %877 = vmatprep.mubr.f32.mxu0 %v6289_v14  ;;  %1090 = vmatprep.mubr.f32.mxu1 %v6289_v14 }
  0x84   :  { %1489 = vmatprep.subr.mxu1 %v3402_v18  ;;  %1246 = vmatpush1.msra.mxu0 %v6389_v12  ;;  %v6394_v18 = vld [vmem:[#allocation52_spill] sm:$0xff]  ;;  %v6416_v12 = vld [vmem:[#allocation69_spill] sm:$0xff] }
  0x85   :  { %1094 = vmatmul.mubr.f32.gmra.mxu1 %v6390_v16  ;;  %1250 = vmatprep.subr.mxu0 %v6391_v46  ;;  %v6418_v46 = vld [vmem:[#allocation68_spill] sm:$0xff] }
  0x86   :  { %880 = vmatmul.mubr.f32.gmra.mxu0 %v6392_v60  ;;  %1491 = vmatpush1.msra.mxu1 %v3424_v23  ;;  %v6397_v23 = vld [vmem:[#allocation15_spill] sm:$0xff] }
  0x87   :  { %885 = vmatprep.mubr.f32.mxu0 %v6289_v14  ;;  %1099 = vmatprep.mubr.f32.mxu1 %v6289_v14 }
  0x88   :  { %1493 = vmatprep.subr.mxu1 %v3430_v25  ;;  %1254 = vmatpush1.msra.mxu0 %v6393_v17  ;;  %v6398_v25 = vand.u32 4294901760, %v6397_v23  ;;  %v6419_v17 = vand.u32 4294901760, %v3777_v55  ;;  %v90_v55 = vld [vmem:[%s5992_s1 + $0x1f8] sm:$0xff]  ;;  %v6424_v23 = vld [vmem:[#allocation74_spill] sm:$0xff] }
  0x89   :  { %1103 = vmatmul.mubr.f32.gmra.mxu1 %v6394_v18  ;;  %1258 = vmatprep.subr.mxu0 %v6395_v1  ;;  %v6420_v1 = vld [vmem:[#allocation73_spill] sm:$0xff] }
  0x8a   :  { %888 = vmatmul.mubr.f32.gmra.mxu0 %v6396_v13  ;;  %1495 = vmatpush1.msra.mxu1 %v3453_v31  ;;  %v6404_v31 = vld [vmem:[#allocation18_spill] sm:$0xff] }
  0x8b   :  { %893 = vmatprep.mubr.f32.mxu0 %v6289_v14  ;;  %1108 = vmatprep.mubr.f32.mxu1 %v6289_v14 }
  0x8c   :  { %1497 = vmatprep.subr.mxu1 %v3459_v33  ;;  %1262 = vmatpush1.msra.mxu0 %v6398_v25  ;;  %v6405_v33 = vand.u32 4294901760, %v6404_v31  ;;  %v6428_v25 = vand.u32 4294901760, %v3819_v28  ;;  %v6430_v28 = vand.u32 4294901760, %v3829_v20  ;;  %v6432_v31 = vand.u32 4294901760, %v3855_v45  ;;  %v81_v45 = vld [vmem:[%s5992_s1 + $0x1b0] sm:$0xff] }
  0x8d   :  { %1112 = vmatmul.mubr.f32.gmra.mxu1 %v6399_v43  ;;  %1266 = vmatprep.subr.mxu0 %v6401_v53 }
  0x8e   :  { %896 = vmatmul.mubr.f32.gmra.mxu0 %v6402_v50  ;;  %1499 = vmatpush1.msra.mxu1 %v6403_v22  ;;  %v57_v50 = vld [vmem:[%s5992_s1 + $0xf0] sm:$0xff] }
  0x8f   :  { %901 = vmatprep.mubr.f32.mxu0 %v6289_v14  ;;  %1117 = vmatprep.mubr.f32.mxu1 %v6289_v14  ;;  %v4612_v60 = vand.u32 4294901760, %v57_v50 }
  0x90   :  { %1501 = vmatprep.subr.mxu1 %v6335_v56  ;;  %1270 = vmatpush1.msra.mxu0 %v6405_v33  ;;  %v6412_v56 = vand.u32 4294901760, %v6411_v5  ;;  %v6434_v5 = vld [vmem:[#allocation81_spill] sm:$0xff] }
  0x91   :  { %1121 = vmatmul.mubr.f32.gmra.mxu1 %v6406_v62  ;;  %1274 = vmatprep.subr.mxu0 %v6408_v15  ;;  %v6433_v15 = vand.u32 4294901760, %v3862_v40  ;;  %v6437_v40 = vld [vmem:[#allocation21_spill] sm:$0xff]  ;;  %6462 = vst [vmem:[#allocation15_spill] sm:$0xff] %v4612_v60  ;;  %v4640_v0 = vsub.f32 %v57_v50, %v4612_v60 }
  0x92   :  { %904 = vmatmul.mubr.f32.gmra.mxu0 %v6409_v4  ;;  %1503 = vmatpush1.msra.mxu1 %v6410_v9  ;;  %v4413_v9 = vand.u32 4294901760, %v82_v26  ;;  %6476 = vst [vmem:[#allocation21_spill] sm:$0xff] %v4672_v37 }
  0x93   :  { %909 = vmatprep.mubr.f32.mxu0 %v6289_v14  ;;  %1126 = vmatprep.mubr.f32.mxu1 %v6289_v14  ;;  %6468 = vst [vmem:[#allocation18_spill] sm:$0xff] %v4640_v0 }
  0x94   :  { %1505 = vmatprep.subr.mxu1 %v6342_v42  ;;  %1278 = vmatpush1.msra.mxu0 %v6412_v56  ;;  %v6417_v42 = vand.u32 4294901760, %v3752_v2  ;;  %v6422_v2 = vld [vmem:[#allocation72_spill] sm:$0xff]  ;;  %v6435_v56 = vand.u32 4294901760, %v3882_v51 }
  0x95   :  { %1130 = vmatmul.mubr.f32.gmra.mxu1 %v6413_v6  ;;  %1282 = vmatprep.subr.mxu0 %v6415_v36  ;;  %v78_v36 = vld [vmem:[%s5992_s1 + $0x198] sm:$0xff] }
  0x96   :  { %912 = vmatmul.mubr.f32.gmra.mxu0 %v6416_v12  ;;  %1507 = vmatpush1.msra.mxu1 %v6345_v38  ;;  %v6423_v38 = vand.u32 4294901760, %v3801_v59  ;;  %v6425_v59 = vand.u32 4294901760, %v3805_v27  ;;  %v85_v27 = vld [vmem:[%s5992_s1 + $0x1d0] sm:$0xff] }
  0x97   :  { %917 = vmatprep.mubr.f32.mxu0 %v6289_v14  ;;  %1135 = vmatprep.mubr.f32.mxu1 %v6289_v14  ;;  %v4391_v33 = vand.u32 4294901760, %v85_v27 }
  0x98   :  { %1509 = vmatprep.subr.mxu1 %v6349_v47  ;;  %1286 = vmatpush1.msra.mxu0 %v6417_v42  ;;  %v6421_v47 = vand.u32 4294901760, %v3788_v63  ;;  %v89_v63 = vld [vmem:[%s5992_s1 + $0x1f0] sm:$0xff]  ;;  %v4427_v42 = vand.u32 4294901760, %v81_v45 }
  0x99   :  { %1139 = vmatmul.mubr.f32.gmra.mxu1 %v6418_v46  ;;  %1290 = vmatprep.subr.mxu0 %v6419_v17  ;;  %v4373_v53 = vand.u32 4294901760, %v89_v63  ;;  %v4419_v10 = vsub.f32 %v85_v27, %v4391_v33  ;;  %v6438_v17 = vld [vmem:[#allocation35_spill] sm:$0xff] }
  0x9a   :  { %920 = vmatmul.mubr.f32.gmra.mxu0 %v6420_v1  ;;  %1511 = vmatpush1.msra.mxu1 %v6350_v57  ;;  %v86_v57 = vld [vmem:[%s5992_s1 + $0x1d8] sm:$0xff]  ;;  %v6439_v51 = vand.u32 4294901760, %v6438_v17 }
  0x9b   :  { %925 = vmatprep.mubr.f32.mxu0 %v6289_v14  ;;  %1144 = vmatprep.mubr.f32.mxu1 %v6289_v14  ;;  %6436 = vst [vmem:[#allocation2_spill] sm:$0xff] %v4419_v10  ;;  %v6169_v27 = vand.u32 4294901760, %v4419_v10 }
  0x9c   :  { %1513 = vmatprep.subr.mxu1 %v6354_v58  ;;  %1294 = vmatpush1.msra.mxu0 %v6421_v47  ;;  %v4363_v58 = vand.u32 4294901760, %v90_v55 }
  0x9d   :  { %1148 = vmatmul.mubr.f32.gmra.mxu1 %v6422_v2  ;;  %1298 = vmatprep.subr.mxu0 %v6423_v38  ;;  %v77_v38 = vld [vmem:[%s5992_s1 + $0x190] sm:$0xff] }
  0x9e   :  { %928 = vmatmul.mubr.f32.gmra.mxu0 %v6424_v23  ;;  %1515 = vmatpush1.msra.mxu1 %v6355_v39  ;;  %6426 = vst [vmem:[#allocation19_spill] sm:$0xff] %v4363_v58  ;;  %v6427_v39 = vld [vmem:[#allocation76_spill] sm:$0xff]  ;;  %v4386_v22 = vsub.f32 %v90_v55, %v4363_v58  ;;  %v6440_v55 = vld [vmem:[#allocation23_spill] sm:$0xff] }
  0x9f   :  { %933 = vmatprep.mubr.f32.mxu0 %v6289_v14  ;;  %1153 = vmatprep.mubr.f32.mxu1 %v6289_v14 }
  0xa0   :  { %1517 = vmatprep.subr.mxu1 %v6358_v21  ;;  %1302 = vmatpush1.msra.mxu0 %v6425_v59  ;;  %v4380_v21 = vand.u32 4294901760, %v86_v57  ;;  %v4442_v59 = vsub.f32 %v82_v26, %v4413_v9 }
  0xa1   :  { %1157 = vmatmul.mubr.f32.gmra.mxu1 %v6427_v39  ;;  %1306 = vmatprep.subr.mxu0 %v6428_v25  ;;  %v6441_v25 = vld [vmem:[#allocation11_spill] sm:$0xff] }
  0xa2   :  { %936 = vmatmul.mubr.f32.gmra.mxu0 %v6429_v44  ;;  %1519 = vmatpush1.msra.mxu1 %v3653_v8  ;;  %v6431_v8 = vld [vmem:[#allocation79_spill] sm:$0xff]  ;;  %v4404_v20 = vsub.f32 %v86_v57, %v4380_v21  ;;  %v4444_v57 = vand.u32 4294901760, %v78_v36 }
  0xa3   :  { %941 = vmatprep.mubr.f32.mxu0 %v6289_v14  ;;  %1162 = vmatprep.mubr.f32.mxu1 %v6289_v14 }
  0xa4   :  { %1521 = vmatprep.subr.mxu1 %v3670_v35  ;;  %1310 = vmatpush1.msra.mxu0 %v6430_v28  ;;  %v4399_v35 = vsub.f32 %v89_v63, %v4373_v53  ;;  %v6167_v47 = vand.u32 4294901760, %v4404_v20  ;;  %v74_v28 = vld [vmem:[%s5992_s1 + $0x178] sm:$0xff] }
  0xa5   :  { %1166 = vmatmul.mubr.f32.gmra.mxu1 %v6431_v8  ;;  %1314 = vmatprep.subr.mxu0 %v6432_v31  ;;  %v6442_v31 = vld [vmem:[#allocation28_spill] sm:$0xff] }
  0xa6   :  { %944 = vmatmul.mubr.f32.gmra.mxu0 %v4159_v49  ;;  %1523 = vmatpush1.msra.mxu1 %v6360_v48  ;;  %v6168_v48 = vand.u32 4294901760, %v4386_v22 }
  0xa7   :  { %949 = vmatprep.mubr.f32.mxu0 %v6289_v14  ;;  %1171 = vmatprep.mubr.f32.mxu1 %v6289_v14 }
  0xa8   :  { %1525 = vmatprep.subr.mxu1 %v6362_v3  ;;  %1318 = vmatpush1.msra.mxu0 %v6433_v15  ;;  %v6166_v3 = vand.u32 4294901760, %v4399_v35  ;;  %v1957_v63 = vsub.f32 %v4386_v22, %v6168_v48  ;;  %v4458_v15 = vsub.f32 %v81_v45, %v4427_v42 }
  0xa9   :  { %1175 = vmatmul.mubr.f32.gmra.mxu1 %v6434_v5  ;;  %1322 = vmatprep.subr.mxu0 %v6435_v56  ;;  %v4460_v56 = vand.u32 4294901760, %v77_v38  ;;  %v6446_v5 = vld [vmem:[#allocation36_spill] sm:$0xff] }
  0xaa   :  { %952 = vmatmul.mubr.f32.gmra.mxu0 %v4177_v24  ;;  %1527 = vmatpush1.msra.mxu1 %v6437_v40  ;;  %v1963_v26 = vsub.f32 %v4399_v35, %v6166_v3  ;;  %v1969_v40 = vsub.f32 %v4404_v20, %v6167_v47  ;;  %v1958_v45 = vand.u32 4294901760, %v1957_v63  ;;  %v6443_v3 = vld [vmem:[#allocation13_spill] sm:$0xff]  ;;  %v1975_v47 = vsub.f32 %v4419_v10, %v6169_v27  ;;  %v6444_v63 = vld [vmem:[#allocation31_spill] sm:$0xff] }
  0xab   :  { %1180 = vmatprep.mubr.f32.mxu1 %v6289_v14  ;;  %1326 = vmatpush1.msra.mxu0 %v6439_v51  ;;  %v4474_v51 = vsub.f32 %v78_v36, %v4444_v57  ;;  %v4490_v17 = vsub.f32 %v77_v38, %v4460_v56 }
  0xac   :  { %1359 = vmatprep.mubr.f32.mxu0 %v6289_v14  ;;  %1529 = vmatprep.subr.mxu1 %v6440_v55  ;;  %v4476_v55 = vand.u32 4294901760, %v74_v28  ;;  %v1964_v36 = vand.u32 4294901760, %v1963_v26  ;;  %v1970_v27 = vand.u32 4294901760, %v1969_v40  ;;  %v66_v40 = vld [vmem:[%s5992_s1 + $0x138] sm:$0xff] }
  0xad   :  { %1184 = vmatmul.mubr.f32.gmra.mxu1 %v6441_v25  ;;  %1682 = vmatprep.subr.mxu0 %v4363_v58  ;;  %v69_v25 = vld [vmem:[%s5992_s1 + $0x150] sm:$0xff] }
  0xae   :  { %1361 = vmatmul.mubr.f32.vlgmr.msra.gmra.mxu0 %v6442_v31  ;;  %1531 = vmatpush1.msra.mxu1 %v6369_v34  ;;  %v73_v34 = vld [vmem:[%s5992_s1 + $0x170] sm:$0xff]  ;;  %v4505_v48 = vsub.f32 %v74_v28, %v4476_v55  ;;  %v4522_v8 = vand.u32 4294901760, %v69_v25  ;;  %v6448_v28 = vand.u32 4294901760, %v4474_v51 }
  0xaf   :  { %1189 = vmatprep.mubr.f32.mxu1 %v6289_v14  ;;  %1366 = vmatprep.mubr.f32.mxu0 %v6289_v14 }
  0xb0   :  { %1533 = vmatprep.subr.mxu1 %v6370_v19  ;;  %1684 = vmatpush1.msra.mxu0 %v4373_v53  ;;  %v70_v19 = vld [vmem:[%s5992_s1 + $0x158] sm:$0xff]  ;;  %v4552_v1 = vsub.f32 %v69_v25, %v4522_v8 }
  0xb1   :  { %1193 = vmatmul.mubr.f32.gmra.mxu1 %v6443_v3  ;;  %1686 = vmatprep.subr.mxu0 %v4380_v21  ;;  %v4492_v3 = vand.u32 4294901760, %v73_v34  ;;  %v4507_v24 = vand.u32 4294901760, %v70_v19 }
  0xb2   :  { %1368 = vmatmul.mubr.f32.gmra.mxu0 %v6444_v63  ;;  %1535 = vmatpush1.msra.mxu1 %v6376_v61  ;;  %v6445_v61 = vand.u32 4294901760, %v4442_v59 }
  0xb3   :  { %1373 = vmatprep.mubr.f32.mxu0 %v6289_v14  ;;  %1568 = vmatprep.mubr.f32.mxu1 %v6289_v14  ;;  %v4520_v49 = vsub.f32 %v73_v34, %v4492_v3  ;;  %v1993_v34 = vsub.f32 %v4474_v51, %v6448_v28  ;;  %v4537_v39 = vsub.f32 %v70_v19, %v4507_v24  ;;  %v6451_v28 = vand.u32 4294901760, %v4490_v17 }
  0xb4   :  { %1959 = vmatprep.subr.mxu1 %v1958_v45  ;;  %1688 = vmatpush1.msra.mxu0 %v4391_v33  ;;  %v1981_v26 = vsub.f32 %v4442_v59, %v6445_v61  ;;  %v1976_v45 = vand.u32 4294901760, %v1975_v47  ;;  %v6447_v61 = vand.u32 4294901760, %v4458_v15  ;;  %v65_v47 = vld [vmem:[%s5992_s1 + $0x130] sm:$0xff] }
  0xb5   :  { %1570 = vmatmul.mubr.f32.vlgmr.msra.gmra.mxu1 %v6442_v31  ;;  %1690 = vmatprep.subr.mxu0 %v4413_v9  ;;  %v4541_v23 = vand.u32 4294901760, %v65_v47  ;;  %v1999_v44 = vsub.f32 %v4490_v17, %v6451_v28  ;;  %v6452_v28 = vand.u32 4294901760, %v4505_v48 }
  0xb6   :  { %1375 = vmatmul.mubr.f32.gmra.mxu0 %v6446_v5  ;;  %1965 = vmatpush1.msra.mxu1 %v1964_v36  ;;  %v1987_v38 = vsub.f32 %v4458_v15, %v6447_v61  ;;  %v4529_v36 = vand.u32 4294901760, %v66_v40  ;;  %v1982_v61 = vand.u32 4294901760, %v1981_v26  ;;  %v6450_v26 = vld [vmem:[#allocation37_spill] sm:$0xff] }
  0xb7   :  { %1380 = vmatprep.mubr.f32.mxu0 %v6289_v14  ;;  %1575 = vmatprep.mubr.f32.mxu1 %v6289_v14  ;;  %6449 = vst [vmem:[#allocation25_spill] sm:$0xff] %v4541_v23  ;;  %v2005_v25 = vsub.f32 %v4505_v48, %v6452_v28  ;;  %v2000_v6 = vand.u32 4294901760, %v1999_v44  ;;  %v6455_v28 = vand.u32 4294901760, %v4520_v49  ;;  %v6457_v44 = vand.u32 4294901760, %v4537_v39 }
  0xb8   :  { %1971 = vmatprep.subr.mxu1 %v1970_v27  ;;  %1692 = vmatpush1.msra.mxu0 %v4427_v42  ;;  %v62_v27 = vld [vmem:[%s5992_s1 + $0x118] sm:$0xff]  ;;  %v1988_v2 = vand.u32 4294901760, %v1987_v38  ;;  %v4557_v46 = vsub.f32 %v66_v40, %v4529_v36  ;;  %v61_v38 = vld [vmem:[%s5992_s1 + $0x110] sm:$0xff]  ;;  %v4572_v40 = vsub.f32 %v65_v47, %v4541_v23 }
  0xb9   :  { %1577 = vmatmul.mubr.f32.gmra.mxu1 %v6444_v63  ;;  %1694 = vmatprep.subr.mxu0 %v4444_v57  ;;  %v4567_v12 = vand.u32 4294901760, %v62_v27  ;;  %v2011_v19 = vsub.f32 %v4520_v49, %v6455_v28  ;;  %v4582_v62 = vand.u32 4294901760, %v61_v38  ;;  %v2017_v28 = vsub.f32 %v4537_v39, %v6457_v44 }
  0xba   :  { %1382 = vmatmul.mubr.f32.gmra.mxu0 %v6450_v26  ;;  %1977 = vmatpush1.msra.mxu1 %v1976_v45  ;;  %v1994_v45 = vand.u32 4294901760, %v1993_v34  ;;  %v6454_v34 = vld [vmem:[#allocation38_spill] sm:$0xff]  ;;  %v6460_v44 = vand.u32 4294901760, %v4552_v1  ;;  %v6463_v47 = vand.u32 4294901760, %v4557_v46 }
  0xbb   :  { %1387 = vmatprep.mubr.f32.mxu0 %v6289_v14  ;;  %1582 = vmatprep.mubr.f32.mxu1 %v6289_v14  ;;  %6453 = vst [vmem:[#allocation26_spill] sm:$0xff] %v4567_v12  ;;  %6456 = vst [vmem:[#allocation3_spill] sm:$0xff] %v4582_v62  ;;  %v4595_v4 = vsub.f32 %v62_v27, %v4567_v12  ;;  %v2012_v13 = vand.u32 4294901760, %v2011_v19  ;;  %v4610_v18 = vsub.f32 %v61_v38, %v4582_v62 }
  0xbc   :  { %1983 = vmatprep.subr.mxu1 %v1982_v61  ;;  %1696 = vmatpush1.msra.mxu0 %v4460_v56  ;;  %v58_v61 = vld [vmem:[%s5992_s1 + $0xf8] sm:$0xff]  ;;  %v2023_v27 = vsub.f32 %v4552_v1, %v6460_v44  ;;  %v2029_v16 = vsub.f32 %v4557_v46, %v6463_v47  ;;  %v2018_v19 = vand.u32 4294901760, %v2017_v28  ;;  %v6466_v47 = vand.u32 4294901760, %v4572_v40  ;;  %v6467_v28 = vld [vmem:[#allocation46_spill] sm:$0xff] }
  0xbd   :  { %1584 = vmatmul.mubr.f32.gmra.mxu1 %v6446_v5  ;;  %1698 = vmatprep.subr.mxu0 %v4476_v55  ;;  %v4597_v43 = vand.u32 4294901760, %v58_v61  ;;  %6461 = vst [vmem:[#allocation27_spill] sm:$0xff] %v4610_v18 }
  0xbe   :  { %1389 = vmatmul.mubr.f32.gmra.mxu0 %v6454_v34  ;;  %1989 = vmatpush1.msra.mxu1 %v1988_v2  ;;  %v2006_v2 = vand.u32 4294901760, %v2005_v25  ;;  %v6459_v25 = vld [vmem:[#allocation45_spill] sm:$0xff]  ;;  %v2035_v11 = vsub.f32 %v4572_v40, %v6466_v47  ;;  %v2024_v38 = vand.u32 4294901760, %v2023_v27  ;;  %v2030_v47 = vand.u32 4294901760, %v2029_v16 }
  0xbf   :  { %1394 = vmatprep.mubr.f32.mxu0 %v6289_v14  ;;  %1589 = vmatprep.mubr.f32.mxu1 %v6289_v14  ;;  %6458 = vst [vmem:[#allocation4_spill] sm:$0xff] %v4597_v43  ;;  %v4625_v44 = vsub.f32 %v58_v61, %v4597_v43  ;;  %v46_v16 = vld [vmem:[%s5992_s1 + $0x98] sm:$0xff] }
  0xc0   :  { %1995 = vmatprep.subr.mxu1 %v1994_v45  ;;  %1700 = vmatpush1.msra.mxu0 %v4492_v3  ;;  %v54_v45 = vld [vmem:[%s5992_s1 + $0xd8] sm:$0xff] }
  0xc1   :  { %1591 = vmatmul.mubr.f32.gmra.mxu1 %v6450_v26  ;;  %1702 = vmatprep.subr.mxu0 %v4507_v24  ;;  %6464 = vst [vmem:[#allocation16_spill] sm:$0xff] %v4625_v44  ;;  %v4627_v41 = vand.u32 4294901760, %v54_v45 }
  0xc2   :  { %1396 = vmatmul.mubr.f32.gmra.mxu0 %v6459_v25  ;;  %2001 = vmatpush1.msra.mxu1 %v2000_v6  ;;  %v53_v6 = vld [vmem:[%s5992_s1 + $0xd0] sm:$0xff] }
  0xc3   :  { %1401 = vmatprep.mubr.f32.mxu0 %v6289_v14  ;;  %1596 = vmatprep.mubr.f32.mxu1 %v6289_v14  ;;  %6465 = vst [vmem:[#allocation5_spill] sm:$0xff] %v4627_v41  ;;  %v4642_v30 = vand.u32 4294901760, %v53_v6  ;;  %v4655_v61 = vsub.f32 %v54_v45, %v4627_v41  ;;  %v6478_v45 = vand.u32 4294901760, %v4625_v44 }
  0xc4   :  { %2007 = vmatprep.subr.mxu1 %v2006_v2  ;;  %1704 = vmatpush1.msra.mxu0 %v4522_v8  ;;  %v50_v2 = vld [vmem:[%s5992_s1 + $0xb8] sm:$0xff] }
  0xc5   :  { %1598 = vmatmul.mubr.f32.gmra.mxu1 %v6454_v34  ;;  %1706 = vmatprep.subr.mxu0 %v4529_v36  ;;  %6469 = vst [vmem:[#allocation20_spill] sm:$0xff] %v4642_v30  ;;  %6471 = vst [vmem:[#allocation7_spill] sm:$0xff] %v4655_v61  ;;  %v4657_v32 = vand.u32 4294901760, %v50_v2  ;;  %v4670_v52 = vsub.f32 %v53_v6, %v4642_v30  ;;  %v2053_v6 = vsub.f32 %v4625_v44, %v6478_v45 }
  0xc6   :  { %1403 = vmatmul.mubr.f32.gmra.mxu0 %v6467_v28  ;;  %2013 = vmatpush1.msra.mxu1 %v2012_v13  ;;  %v6470_v13 = vand.u32 4294901760, %v4595_v4  ;;  %v6482_v45 = vand.u32 4294901760, %v4640_v0  ;;  %v4702_v44 = vsub.f32 %v49_v7, %v4672_v37 }
  0xc7   :  { %1408 = vmatprep.mubr.f32.mxu0 %v6289_v14  ;;  %1603 = vmatprep.mubr.f32.mxu1 %v6289_v14  ;;  %6472 = vst [vmem:[#allocation22_spill] sm:$0xff] %v4657_v32  ;;  %6475 = vst [vmem:[#allocation24_spill] sm:$0xff] %v4670_v52 }
  0xc8   :  { %2019 = vmatprep.subr.mxu1 %v2018_v19  ;;  %1708 = vmatpush1.msra.mxu0 %v4541_v23  ;;  %v2041_v27 = vsub.f32 %v4595_v4, %v6470_v13  ;;  %v2036_v19 = vand.u32 4294901760, %v2035_v11  ;;  %v6474_v13 = vand.u32 4294901760, %v4610_v18  ;;  %v45_v11 = vld [vmem:[%s5992_s1 + $0x90] sm:$0xff]  ;;  %v4687_v23 = vsub.f32 %v50_v2, %v4657_v32  ;;  %6483 = vst [vmem:[#allocation85_spill] sm:$0xff] %v4702_v44 }
  0xc9   :  { %1605 = vmatmul.mubr.f32.gmra.mxu1 %v6459_v25  ;;  %1710 = vmatprep.subr.mxu0 %v4567_v12  ;;  %v2059_v12 = vsub.f32 %v4640_v0, %v6482_v45  ;;  %v6485_v45 = vand.u32 4294901760, %v4655_v61 }
  0xca   :  { %1410 = vmatmul.mubr.f32.gmra.mxu0 %v6473_v54  ;;  %2025 = vmatpush1.msra.mxu1 %v2024_v38  ;;  %v2047_v50 = vsub.f32 %v4610_v18, %v6474_v13  ;;  %v4679_v38 = vand.u32 4294901760, %v46_v16  ;;  %v2042_v13 = vand.u32 4294901760, %v2041_v27  ;;  %6479 = vst [vmem:[#allocation23_spill] sm:$0xff] %v4687_v23  ;;  %v4691_v18 = vand.u32 4294901760, %v45_v11  ;;  %v6481_v27 = vld [vmem:[#allocation57_spill] sm:$0xff] }
  0xcb   :  { %1415 = vmatprep.mubr.f32.mxu0 %v6289_v14  ;;  %1610 = vmatprep.mubr.f32.mxu1 %v6289_v14  ;;  %v2065_v7 = vsub.f32 %v4655_v61, %v6485_v45  ;;  %v6489_v45 = vand.u32 4294901760, %v4670_v52 }
  0xcc   :  { %6477 = vst [vmem:[#allocation35_spill] sm:$0xff] %v4679_v38  ;;  %2031 = vmatprep.subr.mxu1 %v2030_v47  ;;  %1712 = vmatpush1.msra.mxu0 %v4582_v62  ;;  %6480 = vst [vmem:[#allocation84_spill] sm:$0xff] %v4691_v18  ;;  %v42_v47 = vld [vmem:[%s5992_s1 + $0x78] sm:$0xff]  ;;  %v2048_v62 = vand.u32 4294901760, %v2047_v50  ;;  %v41_v50 = vld [vmem:[%s5992_s1 + $0x70] sm:$0xff] }
  0xcd   :  { %1612 = vmatmul.mubr.f32.gmra.mxu1 %v6467_v28  ;;  %1714 = vmatprep.subr.mxu0 %v4597_v43  ;;  %v4707_v43 = vsub.f32 %v46_v16, %v4679_v38  ;;  %v4717_v0 = vand.u32 4294901760, %v42_v47  ;;  %v4722_v16 = vsub.f32 %v45_v11, %v4691_v18  ;;  %v2071_v2 = vsub.f32 %v4670_v52, %v6489_v45  ;;  %v6500_v28 = vld [vmem:[#allocation70_spill] sm:$0xff] }
  0xce   :  { %1417 = vmatmul.mubr.f32.gmra.mxu0 %v6481_v27  ;;  %2037 = vmatpush1.msra.mxu1 %v2036_v19  ;;  %v2054_v19 = vand.u32 4294901760, %v2053_v6  ;;  %v6488_v6 = vld [vmem:[#allocation58_spill] sm:$0xff] }
  0xcf   :  { %1422 = vmatprep.mubr.f32.mxu0 %v6289_v14  ;;  %1617 = vmatprep.mubr.f32.mxu1 %v6289_v14  ;;  %6484 = vst [vmem:[#allocation86_spill] sm:$0xff] %v4707_v43  ;;  %6486 = vst [vmem:[#allocation87_spill] sm:$0xff] %v4717_v0  ;;  %v4745_v61 = vsub.f32 %v42_v47, %v4717_v0  ;;  %v6495_v11 = vand.u32 4294901760, %v4707_v43 }
  0xd0   :  { %2043 = vmatprep.subr.mxu1 %v2042_v13  ;;  %1716 = vmatpush1.msra.mxu0 %v4612_v60  ;;  %6487 = vst [vmem:[#allocation88_spill] sm:$0xff] %v4722_v16  ;;  %v38_v13 = vld [vmem:[%s5992_s1 + $0x58] sm:$0xff]  ;;  %v2060_v60 = vand.u32 4294901760, %v2059_v12  ;;  %v6491_v12 = vand.u32 4294901760, %v4687_v23 }
  0xd1   :  { %1619 = vmatmul.mubr.f32.gmra.mxu1 %v6473_v54  ;;  %1718 = vmatprep.subr.mxu0 %v4627_v41  ;;  %v4732_v54 = vand.u32 4294901760, %v41_v50  ;;  %v37_v41 = vld [vmem:[%s5992_s1 + $0x50] sm:$0xff]  ;;  %6492 = vst [vmem:[#allocation90_spill] sm:$0xff] %v4745_v61  ;;  %v4747_v52 = vand.u32 4294901760, %v38_v13 }
  0xd2   :  { %1424 = vmatmul.mubr.f32.gmra.mxu0 %v6488_v6  ;;  %2049 = vmatpush1.msra.mxu1 %v2048_v62  ;;  %v2066_v62 = vand.u32 4294901760, %v2065_v7  ;;  %v2077_v45 = vsub.f32 %v4687_v23, %v6491_v12  ;;  %v6493_v7 = vld [vmem:[#allocation65_spill] sm:$0xff]  ;;  %v6494_v12 = vand.u32 4294901760, %v4702_v44 }
  0xd3   :  { %6490 = vst [vmem:[#allocation89_spill] sm:$0xff] %v4732_v54  ;;  %1429 = vmatprep.mubr.f32.mxu0 %v6289_v14  ;;  %1624 = vmatprep.mubr.f32.mxu1 %v6289_v14  ;;  %v4760_v23 = vsub.f32 %v41_v50, %v4732_v54 }
  0xd4   :  { %2055 = vmatprep.subr.mxu1 %v2054_v19  ;;  %1720 = vmatpush1.msra.mxu0 %v4642_v30  ;;  %v34_v19 = vld [vmem:[%s5992_s1 + $0x38] sm:$0xff]  ;;  %v2072_v30 = vand.u32 4294901760, %v2071_v2  ;;  %v2083_v47 = vsub.f32 %v4702_v44, %v6494_v12  ;;  %v2078_v2 = vand.u32 4294901760, %v2077_v45  ;;  %v4777_v44 = vsub.f32 %v38_v13, %v4747_v52  ;;  %v6498_v45 = vld [vmem:[#allocation66_spill] sm:$0xff] }
  0xd5   :  { %1626 = vmatmul.mubr.f32.gmra.mxu1 %v6481_v27  ;;  %1722 = vmatprep.subr.mxu0 %v4657_v32  ;;  %v4762_v27 = vand.u32 4294901760, %v37_v41  ;;  %v2089_v32 = vsub.f32 %v4707_v43, %v6495_v11  ;;  %v4774_v12 = vand.u32 4294901760, %v34_v19  ;;  %v6497_v11 = vand.u32 4294901760, %v4722_v16 }
  0xd6   :  { %1431 = vmatmul.mubr.f32.gmra.mxu0 %v6493_v7  ;;  %2061 = vmatpush1.msra.mxu1 %v2060_v60  ;;  %v33_v60 = vld [vmem:[%s5992_s1 + $0x30] sm:$0xff]  ;;  %v2084_v50 = vand.u32 4294901760, %v2083_v47 }
  0xd7   :  { %1436 = vmatprep.mubr.f32.mxu0 %v6289_v14  ;;  %1631 = vmatprep.mubr.f32.mxu1 %v6289_v14  ;;  %6496 = vst [vmem:[#allocation91_spill] sm:$0xff] %v4774_v12  ;;  %v2095_v43 = vsub.f32 %v4722_v16, %v6497_v11  ;;  %v4790_v13 = vsub.f32 %v37_v41, %v4762_v27  ;;  %v2090_v11 = vand.u32 4294901760, %v2089_v32  ;;  %v6503_v41 = vld [vmem:[#allocation77_spill] sm:$0xff] }
  0xd8   :  { %2067 = vmatprep.subr.mxu1 %v2066_v62  ;;  %1724 = vmatpush1.msra.mxu0 %v4672_v37  ;;  %v30_v62 = vld [vmem:[%s5992_s1 + $0x18] sm:$0xff]  ;;  %v4807_v16 = vsub.f32 %v34_v19, %v4774_v12  ;;  %v6502_v19 = vand.u32 4294901760, %v4777_v44 }
  0xd9   :  { %1633 = vmatmul.mubr.f32.gmra.mxu1 %v6488_v6  ;;  %1726 = vmatprep.subr.mxu0 %v4679_v38  ;;  %v4792_v6 = vand.u32 4294901760, %v33_v60  ;;  %v29_v38 = vld [vmem:[%s5992_s1 + $0x10] sm:$0xff]  ;;  %v4804_v37 = vand.u32 4294901760, %v30_v62  ;;  %v2096_v32 = vand.u32 4294901760, %v2095_v43 }
  0xda   :  { %1438 = vmatmul.mubr.f32.gmra.mxu0 %v6498_v45  ;;  %2073 = vmatpush1.msra.mxu1 %v2072_v30  ;;  %v6499_v30 = vand.u32 4294901760, %v4745_v61 }
  0xdb   :  { %1443 = vmatprep.mubr.f32.mxu0 %v6289_v14  ;;  %1638 = vmatprep.mubr.f32.mxu1 %v6289_v14 }
  0xdc   :  { %2079 = vmatprep.subr.mxu1 %v2078_v2  ;;  %1728 = vmatpush1.msra.mxu0 %v4691_v18  ;;  %v2101_v47 = vsub.f32 %v4745_v61, %v6499_v30  ;;  %v6501_v2 = vand.u32 4294901760, %v4760_v23  ;;  %v4816_v30 = vsub.f32 %v33_v60, %v4792_v6  ;;  %v4819_v61 = vand.u32 4294901760, %v29_v38 }
  0xdd   :  { %1640 = vmatmul.mubr.f32.gmra.mxu1 %v6493_v7  ;;  %1730 = vmatprep.subr.mxu0 %v4717_v0  ;;  %v4829_v60 = vsub.f32 %v30_v62, %v4804_v37 }
  0xde   :  { %1445 = vmatmul.mubr.f32.gmra.mxu0 %v6500_v28  ;;  %2085 = vmatpush1.msra.mxu1 %v2084_v50  ;;  %v2107_v18 = vsub.f32 %v4760_v23, %v6501_v2  ;;  %v2102_v43 = vand.u32 4294901760, %v2101_v47  ;;  %v2113_v50 = vsub.f32 %v4777_v44, %v6502_v19  ;;  %v6226_v2 = vand.u32 4294901760, %v4807_v16 }
  0xdf   :  { %1450 = vmatprep.mubr.f32.mxu0 %v6289_v14  ;;  %1645 = vmatprep.mubr.f32.mxu1 %v6289_v14  ;;  %v4838_v0 = vsub.f32 %v29_v38, %v4819_v61  ;;  %v6231_v19 = vand.u32 4294901760, %v4816_v30 }
  0xe0   :  { %2091 = vmatprep.subr.mxu1 %v2090_v11  ;;  %1732 = vmatpush1.msra.mxu0 %v4732_v54  ;;  %v2108_v11 = vand.u32 4294901760, %v2107_v18  ;;  %v6504_v54 = vand.u32 4294901760, %v4790_v13  ;;  %v2114_v62 = vand.u32 4294901760, %v2113_v50  ;;  %v2125_v18 = vsub.f32 %v4807_v16, %v6226_v2 }
  0xe1   :  { %1647 = vmatmul.mubr.f32.gmra.mxu1 %v6498_v45  ;;  %1734 = vmatprep.subr.mxu0 %v4747_v52  ;;  %v6230_v50 = vand.u32 4294901760, %v4838_v0 }
  0xe2   :  { %1452 = vmatmul.mubr.f32.gmra.mxu0 %v6503_v41  ;;  %2097 = vmatpush1.msra.mxu1 %v2096_v32  ;;  %v2119_v47 = vsub.f32 %v4790_v13, %v6504_v54  ;;  %v6229_v32 = vand.u32 4294901760, %v4829_v60  ;;  %v6505_v54 = vld [vmem:[#allocation6_spill] sm:$0xff]  ;;  %v2126_v2 = vand.u32 4294901760, %v2125_v18 }
  0xe3   :  { %1457 = vmatprep.mubr.f32.mxu0 %v6289_v14  ;;  %1652 = vmatprep.mubr.f32.mxu1 %v6289_v14 }
  0xe4   :  { %2103 = vmatprep.subr.mxu1 %v2102_v43  ;;  %1736 = vmatpush1.msra.mxu0 %v4762_v27  ;;  %v2120_v38 = vand.u32 4294901760, %v2119_v47  ;;  %v2131_v43 = vsub.f32 %v4816_v30, %v6231_v19  ;;  %v2143_v47 = vsub.f32 %v4838_v0, %v6230_v50 }
  0xe5   :  { %1654 = vmatmul.mubr.f32.gmra.mxu1 %v6500_v28  ;;  %1738 = vmatprep.subr.mxu0 %v4774_v12  ;;  %v2137_v12 = vsub.f32 %v4829_v60, %v6229_v32  ;;  %v6506_v32 = vld [vmem:[#allocation33_spill] sm:$0xff] }
  0xe6   :  { %1459 = vmatmul.mubr.f32.gmra.mxu0 %v6505_v54  ;;  %2109 = vmatpush1.msra.mxu1 %v2108_v11  ;;  %v2132_v11 = vand.u32 4294901760, %v2131_v43  ;;  %v2144_v43 = vand.u32 4294901760, %v2143_v47 }
  0xe7   :  { %1464 = vmatprep.mubr.f32.mxu0 %v6289_v14  ;;  %1659 = vmatprep.mubr.f32.mxu1 %v6289_v14  ;;  %v2138_v18 = vand.u32 4294901760, %v2137_v12 }
  0xe8   :  { %2115 = vmatprep.subr.mxu1 %v2114_v62  ;;  %1740 = vmatpush1.msra.mxu0 %v4792_v6 }
  0xe9   :  { %1661 = vmatmul.mubr.f32.gmra.mxu1 %v6503_v41  ;;  %1742 = vmatprep.subr.mxu0 %v4804_v37 }
  0xea   :  { %1466 = vmatmul.mubr.f32.gmra.mxu0 %v4147_v29  ;;  %2121 = vmatpush1.msra.mxu1 %v2120_v38 }
  0xeb   :  { %1666 = vmatprep.mubr.f32.mxu1 %v6289_v14  ;;  %1744 = vmatpush1.msra.mxu0 %v4819_v61  ;;  %v194_v62 = vpop.f32.mrf.mxu0 }
  0xec   :  { %1777 = vmatprep.mubr.f32.mxu0 %v6289_v14  ;;  %2127 = vmatprep.subr.mxu1 %v2126_v2  ;;  %v195_v12 = vadd.f32 0.0043757833, %v194_v62  ;;  %v6507_v2 = vld [vmem:[#allocation39_spill] sm:$0xff] }
  0xed   :  { %1668 = vmatmul.mubr.f32.gmra.mxu1 %v6505_v54  ;;  %2293 = vmatprep.subr.mxu0 %v4386_v22  ;;  %v196_v38 = vpop.f32.mrf.mxu0 }
  0xee   :  { %1783 = vmatmul.mubr.f32.vlgmr.msra.gmra.mxu0 %v6506_v32  ;;  %2133 = vmatpush1.msra.mxu1 %v2132_v11  ;;  %v197_v47 = vadd.f32 0.0043757833, %v196_v38 }
  0xef   :  { %1673 = vmatprep.mubr.f32.mxu1 %v6289_v14  ;;  %1788 = vmatprep.mubr.f32.mxu0 %v6289_v14  ;;  %v205_v50 = vpop.f32.mrf.mxu0 }
  0xf0   :  { %2139 = vmatprep.subr.mxu1 %v2138_v18  ;;  %2296 = vmatpush1.msra.mxu0 %v4399_v35  ;;  %v206_v18 = vadd.f32 0.0043757833, %v205_v50 }
  0xf1   :  { %1675 = vmatmul.mubr.f32.gmra.mxu1 %v4147_v29  ;;  %2299 = vmatprep.subr.mxu0 %v4404_v20  ;;  %v207_v32 = vpop.f32.mrf.mxu0 }
  0xf2   :  { %1794 = vmatmul.mubr.f32.gmra.mxu0 %v6507_v2  ;;  %2145 = vmatpush1.msra.mxu1 %v2144_v43  ;;  %v6509_v43 = vld [vmem:[#allocation49_spill] sm:$0xff]  ;;  %v208_v38 = vadd.f32 0.0043757833, %v207_v32 }
  0xf3   :  { %1799 = vmatprep.mubr.f32.mxu0 %v6289_v14  ;;  %2178 = vmatprep.mubr.f32.mxu1 %v6289_v14 }
  0xf4   :  { %2549 = vmatprep.subr.mxu1 %v4363_v58  ;;  %2302 = vmatpush1.msra.mxu0 %v4419_v10 }
  0xf5   :  { %v591_v11 = vpop.f32.mrf.mxu1  ;;  %2180 = vmatmul.mubr.f32.vlgmr.msra.gmra.mxu1 %v6442_v31  ;;  %2305 = vmatprep.subr.mxu0 %v4442_v59 }
  0xf6   :  { %v216_v62 = vpop.f32.mrf.mxu0  ;;  %v4885_v19 = vadd.f32 %v591_v11, %v195_v12  ;;  %1805 = vmatmul.mubr.f32.gmra.mxu0 %v6509_v43  ;;  %2551 = vmatpush1.msra.mxu1 %v4373_v53 }
  0xf7   :  { %v593_v2 = vpop.f32.mrf.mxu1  ;;  %1810 = vmatprep.mubr.f32.mxu0 %v6289_v14  ;;  %2185 = vmatprep.mubr.f32.mxu1 %v6289_v14  ;;  %v217_v12 = vadd.f32 0.0043757833, %v216_v62 }
  0xf8   :  { %6508 = vst [vmem:[#allocation33_spill] sm:$0xff] %v4885_v19  ;;  %v218_v10 = vpop.f32.mrf.mxu0  ;;  %v4891_v58 = vadd.f32 %v593_v2, %v197_v47  ;;  %2553 = vmatprep.subr.mxu1 %v4380_v21  ;;  %2308 = vmatpush1.msra.mxu0 %v4458_v15  ;;  %v6512_v19 = vld [vmem:[#allocation51_spill] sm:$0xff] }
  0xf9   :  { %v598_v50 = vpop.f32.mrf.mxu1  ;;  %2187 = vmatmul.mubr.f32.gmra.mxu1 %v6444_v63  ;;  %2311 = vmatprep.subr.mxu0 %v4474_v51  ;;  %v6534_v63 = vld [vmem:[#allocation18_spill] sm:$0xff] }
  0xfa   :  { %6510 = vst [vmem:[#allocation39_spill] sm:$0xff] %v4891_v58  ;;  %v227_v11 = vpop.f32.mrf.mxu0  ;;  %v4897_v43 = vadd.f32 %v598_v50, %v206_v18  ;;  %1816 = vmatmul.mubr.f32.gmra.mxu0 %v6512_v19  ;;  %2555 = vmatpush1.msra.mxu1 %v4391_v33  ;;  %v219_v19 = vadd.f32 0.0043757833, %v218_v10 }
  0xfb   :  { %v600_v47 = vpop.f32.mrf.mxu1  ;;  %1821 = vmatprep.mubr.f32.mxu0 %v6289_v14  ;;  %2192 = vmatprep.mubr.f32.mxu1 %v6289_v14  ;;  %v228_v18 = vadd.f32 0.0043757833, %v227_v11 }
  0xfc   :  { %6511 = vst [vmem:[#allocation49_spill] sm:$0xff] %v4897_v43  ;;  %v229_v2 = vpop.f32.mrf.mxu0  ;;  %v4903_v58 = vadd.f32 %v600_v47, %v208_v38  ;;  %2557 = vmatprep.subr.mxu1 %v4413_v9  ;;  %2314 = vmatpush1.msra.mxu0 %v4490_v17  ;;  %v6515_v43 = vld [vmem:[#allocation55_spill] sm:$0xff] }
  0xfd   :  { %v605_v32 = vpop.f32.mrf.mxu1  ;;  %2194 = vmatmul.mubr.f32.gmra.mxu1 %v6446_v5  ;;  %2317 = vmatprep.subr.mxu0 %v4505_v48  ;;  %v6531_v5 = vld [vmem:[#allocation25_spill] sm:$0xff] }
  0xfe   :  { %6513 = vst [vmem:[#allocation51_spill] sm:$0xff] %v4903_v58  ;;  %v238_v62 = vpop.f32.mrf.mxu0  ;;  %v4909_v50 = vadd.f32 %v605_v32, %v217_v12  ;;  %1827 = vmatmul.mubr.f32.gmra.mxu0 %v6515_v43  ;;  %2559 = vmatpush1.msra.mxu1 %v4427_v42  ;;  %v230_v12 = vadd.f32 0.0043757833, %v229_v2 }
  0xff   :  { %v607_v38 = vpop.f32.mrf.mxu1  ;;  %1832 = vmatprep.mubr.f32.mxu0 %v6289_v14  ;;  %2199 = vmatprep.mubr.f32.mxu1 %v6289_v14  ;;  %v239_v11 = vadd.f32 0.0043757833, %v238_v62 }
 0x100   :  { %6514 = vst [vmem:[#allocation92_spill] sm:$0xff] %v4909_v50  ;;  %v240_v47 = vpop.f32.mrf.mxu0  ;;  %v4915_v58 = vadd.f32 %v607_v38, %v219_v19  ;;  %2561 = vmatprep.subr.mxu1 %v4444_v57  ;;  %2320 = vmatpush1.msra.mxu0 %v4520_v49  ;;  %v6518_v50 = vld [vmem:[#allocation59_spill] sm:$0xff] }
 0x101   :  { %v612_v10 = vpop.f32.mrf.mxu1  ;;  %2201 = vmatmul.mubr.f32.gmra.mxu1 %v6450_v26  ;;  %2323 = vmatprep.subr.mxu0 %v4537_v39  ;;  %v6530_v26 = vld [vmem:[#allocation71_spill] sm:$0xff] }
 0x102   :  { %6516 = vst [vmem:[#allocation55_spill] sm:$0xff] %v4915_v58  ;;  %v249_v43 = vpop.f32.mrf.mxu0  ;;  %v4921_v32 = vadd.f32 %v612_v10, %v228_v18  ;;  %1838 = vmatmul.mubr.f32.gmra.mxu0 %v6518_v50  ;;  %2563 = vmatpush1.msra.mxu1 %v4460_v56  ;;  %v241_v18 = vadd.f32 0.0043757833, %v240_v47 }
 0x103   :  { %v614_v19 = vpop.f32.mrf.mxu1  ;;  %1843 = vmatprep.mubr.f32.mxu0 %v6289_v14  ;;  %2206 = vmatprep.mubr.f32.mxu1 %v6289_v14  ;;  %v250_v62 = vadd.f32 0.0043757833, %v249_v43 }
 0x104   :  { %6517 = vst [vmem:[#allocation93_spill] sm:$0xff] %v4921_v32  ;;  %v251_v38 = vpop.f32.mrf.mxu0  ;;  %v4927_v58 = vadd.f32 %v614_v19, %v230_v12  ;;  %2565 = vmatprep.subr.mxu1 %v4476_v55  ;;  %2326 = vmatpush1.msra.mxu0 %v4552_v1  ;;  %v6521_v32 = vld [vmem:[#allocation63_spill] sm:$0xff] }
 0x105   :  { %v619_v2 = vpop.f32.mrf.mxu1  ;;  %2208 = vmatmul.mubr.f32.gmra.mxu1 %v6454_v34  ;;  %2329 = vmatprep.subr.mxu0 %v4557_v46 }
 0x106   :  { %6519 = vst [vmem:[#allocation59_spill] sm:$0xff] %v4927_v58  ;;  %v260_v50 = vpop.f32.mrf.mxu0  ;;  %v4933_v10 = vadd.f32 %v619_v2, %v239_v11  ;;  %1849 = vmatmul.mubr.f32.gmra.mxu0 %v6521_v32  ;;  %2567 = vmatpush1.msra.mxu1 %v4492_v3  ;;  %v252_v11 = vadd.f32 0.0043757833, %v251_v38 }
 0x107   :  { %v621_v12 = vpop.f32.mrf.mxu1  ;;  %1854 = vmatprep.mubr.f32.mxu0 %v6289_v14  ;;  %2213 = vmatprep.mubr.f32.mxu1 %v6289_v14  ;;  %v261_v43 = vadd.f32 0.0043757833, %v260_v50  ;;  %v6527_v50 = vld [vmem:[#allocation46_spill] sm:$0xff] }
 0x108   :  { %6520 = vst [vmem:[#allocation94_spill] sm:$0xff] %v4933_v10  ;;  %v262_v19 = vpop.f32.mrf.mxu0  ;;  %v4939_v58 = vadd.f32 %v621_v12, %v241_v18  ;;  %2569 = vmatprep.subr.mxu1 %v4507_v24  ;;  %2332 = vmatpush1.msra.mxu0 %v4572_v40  ;;  %v6524_v10 = vld [vmem:[#allocation67_spill] sm:$0xff] }
 0x109   :  { %v626_v47 = vpop.f32.mrf.mxu1  ;;  %2215 = vmatmul.mubr.f32.gmra.mxu1 %v6459_v25  ;;  %2335 = vmatprep.subr.mxu0 %v4595_v4  ;;  %v6526_v25 = vld [vmem:[#allocation27_spill] sm:$0xff] }
 0x10a   :  { %6522 = vst [vmem:[#allocation63_spill] sm:$0xff] %v4939_v58  ;;  %v271_v32 = vpop.f32.mrf.mxu0  ;;  %v4945_v2 = vadd.f32 %v626_v47, %v250_v62  ;;  %1860 = vmatmul.mubr.f32.gmra.mxu0 %v6524_v10  ;;  %2571 = vmatpush1.msra.mxu1 %v4522_v8  ;;  %v6528_v62 = vld [vmem:[#allocation16_spill] sm:$0xff]  ;;  %v263_v10 = vadd.f32 0.0043757833, %v262_v19 }
 0x10b   :  { %v628_v18 = vpop.f32.mrf.mxu1  ;;  %1865 = vmatprep.mubr.f32.mxu0 %v6289_v14  ;;  %2220 = vmatprep.mubr.f32.mxu1 %v6289_v14  ;;  %v272_v47 = vadd.f32 0.0043757833, %v271_v32  ;;  %v6535_v32 = vld [vmem:[#allocation50_spill] sm:$0xff] }
 0x10c   :  { %6523 = vst [vmem:[#allocation95_spill] sm:$0xff] %v4945_v2  ;;  %v273_v12 = vpop.f32.mrf.mxu0  ;;  %v4951_v58 = vadd.f32 %v628_v18, %v252_v11  ;;  %2573 = vmatprep.subr.mxu1 %v4529_v36  ;;  %2338 = vmatpush1.msra.mxu0 %v6526_v25 }
 0x10d   :  { %v633_v38 = vpop.f32.mrf.mxu1  ;;  %2222 = vmatmul.mubr.f32.gmra.mxu1 %v6527_v50  ;;  %2341 = vmatprep.subr.mxu0 %v6528_v62  ;;  %v6533_v50 = vld [vmem:[#allocation26_spill] sm:$0xff]  ;;  %v6539_v62 = vld [vmem:[#allocation3_spill] sm:$0xff] }
 0x10e   :  { %6525 = vst [vmem:[#allocation67_spill] sm:$0xff] %v4951_v58  ;;  %v282_v2 = vpop.f32.mrf.mxu0  ;;  %v4957_v34 = vadd.f32 %v633_v38, %v261_v43  ;;  %1871 = vmatmul.mubr.f32.gmra.mxu0 %v6530_v26  ;;  %2575 = vmatpush1.msra.mxu1 %v6531_v5  ;;  %v6536_v43 = vld [vmem:[#allocation7_spill] sm:$0xff]  ;;  %v274_v26 = vadd.f32 0.0043757833, %v273_v12  ;;  %v6543_v12 = vld [vmem:[#allocation57_spill] sm:$0xff] }
 0x10f   :  { %v635_v11 = vpop.f32.mrf.mxu1  ;;  %1876 = vmatprep.mubr.f32.mxu0 %v6289_v14  ;;  %2227 = vmatprep.mubr.f32.mxu1 %v6289_v14  ;;  %v283_v38 = vadd.f32 0.0043757833, %v282_v2  ;;  %v6538_v5 = vld [vmem:[#allocation75_spill] sm:$0xff] }
 0x110   :  { %6529 = vst [vmem:[#allocation27_spill] sm:$0xff] %v4957_v34  ;;  %v284_v18 = vpop.f32.mrf.mxu0  ;;  %v4963_v58 = vadd.f32 %v635_v11, %v263_v10  ;;  %2577 = vmatprep.subr.mxu1 %v6533_v50  ;;  %2344 = vmatpush1.msra.mxu0 %v6534_v63  ;;  %v6546_v63 = vld [vmem:[#allocation78_spill] sm:$0xff]  ;;  %v6547_v50 = vld [vmem:[#allocation15_spill] sm:$0xff] }
 0x111   :  { %v640_v19 = vpop.f32.mrf.mxu1  ;;  %2229 = vmatmul.mubr.f32.gmra.mxu1 %v6535_v32  ;;  %2347 = vmatprep.subr.mxu0 %v6536_v43  ;;  %v6541_v32 = vld [vmem:[#allocation4_spill] sm:$0xff] }
 0x112   :  { %6532 = vst [vmem:[#allocation71_spill] sm:$0xff] %v4963_v58  ;;  %v293_v34 = vpop.f32.mrf.mxu0  ;;  %v4969_v31 = vadd.f32 %v640_v19, %v272_v47  ;;  %1882 = vmatmul.mubr.f32.gmra.mxu0 %v6538_v5  ;;  %2579 = vmatpush1.msra.mxu1 %v6539_v62  ;;  %v6542_v43 = vld [vmem:[#allocation24_spill] sm:$0xff]  ;;  %v6544_v47 = vld [vmem:[#allocation23_spill] sm:$0xff]  ;;  %v285_v5 = vadd.f32 0.0043757833, %v284_v18  ;;  %v6551_v18 = vld [vmem:[#allocation58_spill] sm:$0xff] }
 0x113   :  { %v642_v10 = vpop.f32.mrf.mxu1  ;;  %1887 = vmatprep.mubr.f32.mxu0 %v6289_v14  ;;  %2234 = vmatprep.mubr.f32.mxu1 %v6289_v14  ;;  %v294_v19 = vadd.f32 0.0043757833, %v293_v34 }
 0x114   :  { %6537 = vst [vmem:[#allocation96_spill] sm:$0xff] %v4969_v31  ;;  %v295_v11 = vpop.f32.mrf.mxu0  ;;  %v4975_v58 = vadd.f32 %v642_v10, %v274_v26  ;;  %2581 = vmatprep.subr.mxu1 %v6541_v32  ;;  %2350 = vmatpush1.msra.mxu0 %v6542_v43  ;;  %v6554_v43 = vld [vmem:[#allocation9_spill] sm:$0xff]  ;;  %v6555_v32 = vld [vmem:[#allocation20_spill] sm:$0xff] }
 0x115   :  { %v647_v2 = vpop.f32.mrf.mxu1  ;;  %2236 = vmatmul.mubr.f32.gmra.mxu1 %v6543_v12  ;;  %2353 = vmatprep.subr.mxu0 %v6544_v47  ;;  %v6549_v12 = vld [vmem:[#allocation5_spill] sm:$0xff] }
 0x116   :  { %6540 = vst [vmem:[#allocation75_spill] sm:$0xff] %v4975_v58  ;;  %v304_v31 = vpop.f32.mrf.mxu0  ;;  %v4981_v62 = vadd.f32 %v647_v2, %v283_v38  ;;  %1893 = vmatmul.mubr.f32.gmra.mxu0 %v6546_v63  ;;  %2583 = vmatpush1.msra.mxu1 %v6547_v50  ;;  %v6550_v47 = vld [vmem:[#allocation85_spill] sm:$0xff]  ;;  %v6552_v38 = vld [vmem:[#allocation86_spill] sm:$0xff]  ;;  %v296_v63 = vadd.f32 0.0043757833, %v295_v11 }
 0x117   :  { %v649_v26 = vpop.f32.mrf.mxu1  ;;  %1898 = vmatprep.mubr.f32.mxu0 %v6289_v14  ;;  %2241 = vmatprep.mubr.f32.mxu1 %v6289_v14  ;;  %v305_v2 = vadd.f32 0.0043757833, %v304_v31  ;;  %v6559_v11 = vld [vmem:[#allocation90_spill] sm:$0xff] }
 0x118   :  { %6545 = vst [vmem:[#allocation97_spill] sm:$0xff] %v4981_v62  ;;  %v306_v10 = vpop.f32.mrf.mxu0  ;;  %v4987_v58 = vadd.f32 %v649_v26, %v285_v5  ;;  %2585 = vmatprep.subr.mxu1 %v6549_v12  ;;  %2356 = vmatpush1.msra.mxu0 %v6550_v47  ;;  %v6562_v47 = vld [vmem:[#allocation21_spill] sm:$0xff] }
 0x119   :  { %v654_v34 = vpop.f32.mrf.mxu1  ;;  %2243 = vmatmul.mubr.f32.gmra.mxu1 %v6551_v18  ;;  %2359 = vmatprep.subr.mxu0 %v6552_v38  ;;  %v6557_v18 = vld [vmem:[#allocation22_spill] sm:$0xff]  ;;  %v6558_v38 = vld [vmem:[#allocation88_spill] sm:$0xff] }
 0x11a   :  { %6548 = vst [vmem:[#allocation78_spill] sm:$0xff] %v4987_v58  ;;  %v315_v62 = vpop.f32.mrf.mxu0  ;;  %v4993_v50 = vadd.f32 %v654_v34, %v294_v19  ;;  %1904 = vmatmul.mubr.f32.gmra.mxu0 %v6554_v43  ;;  %2587 = vmatpush1.msra.mxu1 %v6555_v32  ;;  %v307_v43 = vadd.f32 0.0043757833, %v306_v10  ;;  %v6561_v32 = vld [vmem:[#allocation10_spill] sm:$0xff] }
 0x11b   :  { %v656_v5 = vpop.f32.mrf.mxu1  ;;  %1909 = vmatprep.mubr.f32.mxu0 %v6289_v14  ;;  %2248 = vmatprep.mubr.f32.mxu1 %v6289_v14  ;;  %v316_v19 = vadd.f32 0.0043757833, %v315_v62 }
 0x11c   :  { %6553 = vst [vmem:[#allocation5_spill] sm:$0xff] %v4993_v50  ;;  %v317_v26 = vpop.f32.mrf.mxu0  ;;  %v4999_v58 = vadd.f32 %v656_v5, %v296_v63  ;;  %2589 = vmatprep.subr.mxu1 %v6557_v18  ;;  %2362 = vmatpush1.msra.mxu0 %v6558_v38 }
 0x11d   :  { %v661_v31 = vpop.f32.mrf.mxu1  ;;  %2250 = vmatmul.mubr.f32.gmra.mxu1 %v6493_v7  ;;  %2365 = vmatprep.subr.mxu0 %v6559_v11  ;;  %v6564_v7 = vld [vmem:[#allocation35_spill] sm:$0xff] }
 0x11e   :  { %6556 = vst [vmem:[#allocation9_spill] sm:$0xff] %v4999_v58  ;;  %v326_v34 = vpop.f32.mrf.mxu0  ;;  %v5005_v50 = vadd.f32 %v661_v31, %v305_v2  ;;  %1915 = vmatmul.mubr.f32.gmra.mxu0 %v6561_v32  ;;  %2591 = vmatpush1.msra.mxu1 %v6562_v47  ;;  %v318_v32 = vadd.f32 0.0043757833, %v317_v26  ;;  %v6567_v47 = vld [vmem:[#allocation84_spill] sm:$0xff] }
 0x11f   :  { %v663_v63 = vpop.f32.mrf.mxu1  ;;  %1920 = vmatprep.mubr.f32.mxu0 %v6289_v14  ;;  %2255 = vmatprep.mubr.f32.mxu1 %v6289_v14  ;;  %v327_v10 = vadd.f32 0.0043757833, %v326_v34 }
 0x120   :  { %6560 = vst [vmem:[#allocation22_spill] sm:$0xff] %v5005_v50  ;;  %v328_v5 = vpop.f32.mrf.mxu0  ;;  %v5011_v58 = vadd.f32 %v663_v63, %v307_v43  ;;  %2593 = vmatprep.subr.mxu1 %v6564_v7  ;;  %2368 = vmatpush1.msra.mxu0 %v4760_v23  ;;  %v6566_v50 = vld [vmem:[#allocation12_spill] sm:$0xff] }
 0x121   :  { %v668_v62 = vpop.f32.mrf.mxu1  ;;  %2257 = vmatmul.mubr.f32.gmra.mxu1 %v6498_v45  ;;  %2371 = vmatprep.subr.mxu0 %v4777_v44  ;;  %v6569_v45 = vld [vmem:[#allocation87_spill] sm:$0xff] }
 0x122   :  { %6563 = vst [vmem:[#allocation88_spill] sm:$0xff] %v5011_v58  ;;  %v337_v2 = vpop.f32.mrf.mxu0  ;;  %v5017_v31 = vadd.f32 %v668_v62, %v316_v19  ;;  %1926 = vmatmul.mubr.f32.gmra.mxu0 %v6566_v50  ;;  %2595 = vmatpush1.msra.mxu1 %v6567_v47  ;;  %v329_v50 = vadd.f32 0.0043757833, %v328_v5  ;;  %v6572_v47 = vld [vmem:[#allocation89_spill] sm:$0xff] }
 0x123   :  { %v670_v43 = vpop.f32.mrf.mxu1  ;;  %1931 = vmatprep.mubr.f32.mxu0 %v6289_v14  ;;  %2262 = vmatprep.mubr.f32.mxu1 %v6289_v14  ;;  %v338_v19 = vadd.f32 0.0043757833, %v337_v2 }
 0x124   :  { %6565 = vst [vmem:[#allocation90_spill] sm:$0xff] %v5017_v31  ;;  %v339_v63 = vpop.f32.mrf.mxu0  ;;  %v5023_v58 = vadd.f32 %v670_v43, %v318_v32  ;;  %2597 = vmatprep.subr.mxu1 %v6569_v45  ;;  %2374 = vmatpush1.msra.mxu0 %v4790_v13  ;;  %v6571_v31 = vld [vmem:[#allocation14_spill] sm:$0xff] }
 0x125   :  { %v675_v26 = vpop.f32.mrf.mxu1  ;;  %2264 = vmatmul.mubr.f32.gmra.mxu1 %v6500_v28  ;;  %2377 = vmatprep.subr.mxu0 %v4807_v16  ;;  %v6580_v28 = vld [vmem:[#allocation29_spill] sm:$0xff] }
 0x126   :  { %6568 = vst [vmem:[#allocation10_spill] sm:$0xff] %v5023_v58  ;;  %v348_v34 = vpop.f32.mrf.mxu0  ;;  %v5029_v62 = vadd.f32 %v675_v26, %v327_v10  ;;  %1937 = vmatmul.mubr.f32.gmra.mxu0 %v6571_v31  ;;  %2599 = vmatpush1.msra.mxu1 %v6572_v47  ;;  %v340_v10 = vadd.f32 0.0043757833, %v339_v63 }
 0x127   :  { %v677_v32 = vpop.f32.mrf.mxu1  ;;  %1942 = vmatprep.mubr.f32.mxu0 %v6289_v14  ;;  %2269 = vmatprep.mubr.f32.mxu1 %v6289_v14  ;;  %v349_v2 = vadd.f32 0.0043757833, %v348_v34 }
 0x128   :  { %6570 = vst [vmem:[#allocation35_spill] sm:$0xff] %v5029_v62  ;;  %v350_v43 = vpop.f32.mrf.mxu0  ;;  %v5035_v58 = vadd.f32 %v677_v32, %v329_v50  ;;  %2601 = vmatprep.subr.mxu1 %v4747_v52  ;;  %2380 = vmatpush1.msra.mxu0 %v4816_v30  ;;  %v6575_v62 = vld [vmem:[#allocation17_spill] sm:$0xff] }
 0x129   :  { %v682_v5 = vpop.f32.mrf.mxu1  ;;  %2271 = vmatmul.mubr.f32.gmra.mxu1 %v6503_v41  ;;  %2383 = vmatprep.subr.mxu0 %v4829_v60  ;;  %v6577_v41 = vld [vmem:[#allocation91_spill] sm:$0xff]  ;;  %v351_v34 = vadd.f32 0.0043757833, %v350_v43 }
 0x12a   :  { %6573 = vst [vmem:[#allocation12_spill] sm:$0xff] %v5035_v58  ;;  %v359_v31 = vpop.f32.mrf.mxu0  ;;  %v5041_v26 = vadd.f32 %v682_v5, %v338_v19  ;;  %1948 = vmatmul.mubr.f32.gmra.mxu0 %v6575_v62  ;;  %2603 = vmatpush1.msra.mxu1 %v4762_v27  ;;  %v6578_v19 = vand.u32 4294901760, %v4386_v22  ;;  %v6582_v22 = vand.u32 4294901760, %v4399_v35 }
 0x12b   :  { %v684_v50 = vpop.f32.mrf.mxu1  ;;  %2276 = vmatprep.mubr.f32.mxu1 %v6289_v14  ;;  %2386 = vmatpush1.msra.mxu0 %v4838_v0  ;;  %v360_v62 = vadd.f32 0.0043757833, %v359_v31 }
 0x12c   :  { %6574 = vst [vmem:[#allocation87_spill] sm:$0xff] %v5041_v26  ;;  %v361_v32 = vpop.f32.mrf.mxu0  ;;  %v5047_v58 = vadd.f32 %v684_v50, %v340_v10  ;;  %2419 = vmatprep.mubr.f32.mxu0 %v6289_v14  ;;  %2605 = vmatprep.subr.mxu1 %v6577_v41 }
 0x12d   :  { %v689_v63 = vpop.f32.mrf.mxu1  ;;  %2278 = vmatmul.mubr.f32.gmra.mxu1 %v6505_v54  ;;  %2792 = vmatprep.subr.mxu0 %v6578_v19  ;;  %v6585_v19 = vld [vmem:[#allocation32_spill] sm:$0xff] }
 0x12e   :  { %6576 = vst [vmem:[#allocation14_spill] sm:$0xff] %v5047_v58  ;;  %v5054_v5 = vadd.f32 %v689_v63, %v349_v2  ;;  %v5056_v26 = vpop.f32.mrf.mxu0  ;;  %2422 = vmatmul.mubr.f32.vlgmr.msra.gmra.mxu0 %v6580_v28  ;;  %2607 = vmatpush1.msra.mxu1 %v4792_v6  ;;  %v6583_v28 = vand.u32 4294901760, %v4404_v20  ;;  %v362_v2 = vadd.f32 0.0043757833, %v361_v32  ;;  %v6587_v20 = vld [vmem:[#allocation19_spill] sm:$0xff]  ;;  %v6588_v32 = vld [vmem:[#allocation2_spill] sm:$0xff] }
 0x12f   :  { %v691_v10 = vpop.f32.mrf.mxu1  ;;  %2283 = vmatprep.mubr.f32.mxu1 %v6289_v14  ;;  %2427 = vmatprep.mubr.f32.mxu0 %v6289_v14 }
 0x130   :  { %6579 = vst [vmem:[#allocation89_spill] sm:$0xff] %v5054_v5  ;;  %v5062_v50 = vadd.f32 %v691_v10, %v351_v34  ;;  %v5064_v54 = vpop.f32.mrf.mxu0  ;;  %2609 = vmatprep.subr.mxu1 %v4804_v37  ;;  %2796 = vmatpush1.msra.mxu0 %v6582_v22  ;;  %v6629_v5 = vld [vmem:[#allocation3_spill] sm:$0xff] }
 0x131   :  { %v696_v43 = vpop.f32.mrf.mxu1  ;;  %2285 = vmatmul.mubr.f32.gmra.mxu1 %v4147_v29  ;;  %2800 = vmatprep.subr.mxu0 %v6583_v28  ;;  %v6591_v28 = vand.u32 4294901760, %v4442_v59 }
 0x132   :  { %6581 = vst [vmem:[#allocation17_spill] sm:$0xff] %v5062_v50  ;;  %v5072_v31 = vadd.f32 %v696_v43, %v360_v62  ;;  %v5074_v63 = vpop.f32.mrf.mxu0  ;;  %2430 = vmatmul.mubr.f32.gmra.mxu0 %v6585_v19  ;;  %2611 = vmatpush1.msra.mxu1 %v4819_v61  ;;  %v6589_v62 = vand.u32 4294901760, %v6588_v32  ;;  %v6590_v43 = vld [vmem:[#allocation30_spill] sm:$0xff] }
 0x133   :  { %v698_v34 = vpop.f32.mrf.mxu1  ;;  %2435 = vmatprep.mubr.f32.mxu0 %v6289_v14  ;;  %2644 = vmatprep.mubr.f32.mxu1 %v6289_v14  ;;  %v6594_v32 = vld [vmem:[#allocation34_spill] sm:$0xff] }
 0x134   :  { %6584 = vst [vmem:[#allocation91_spill] sm:$0xff] %v5072_v31  ;;  %v5080_v35 = vadd.f32 %v698_v34, %v362_v2  ;;  %v5082_v10 = vpop.f32.mrf.mxu0  ;;  %3063 = vmatprep.subr.mxu1 %v6587_v20  ;;  %2804 = vmatpush1.msra.mxu0 %v6589_v62  ;;  %v6592_v31 = vld [vmem:[#allocation40_spill] sm:$0xff]  ;;  %v6593_v20 = vand.u32 4294901760, %v4458_v15  ;;  %v6596_v62 = vld [vmem:[#allocation41_spill] sm:$0xff]  ;;  %v6597_v15 = vand.u32 4294901760, %v4490_v17  ;;  %v6601_v17 = vand.u32 4294901760, %v4520_v49 }
 0x135   :  { %v5087_v22 = vpop.f32.mrf.mxu1  ;;  %2648 = vmatmul.mubr.f32.vlgmr.msra.gmra.mxu1 %v6590_v43  ;;  %2808 = vmatprep.subr.mxu0 %v6591_v28  ;;  %v6598_v28 = vld [vmem:[#allocation43_spill] sm:$0xff]  ;;  %v6628_v50 = vld [vmem:[#allocation62_spill] sm:$0xff] }
 0x136   :  { %6586 = vst [vmem:[#allocation29_spill] sm:$0xff] %v5080_v35  ;;  %v5092_v19 = vpop.f32.mrf.mxu0  ;;  %2438 = vmatmul.mubr.f32.gmra.mxu0 %v6592_v31  ;;  %3065 = vmatpush1.msra.mxu1 %v4373_v53  ;;  %v6595_v31 = vand.u32 4294901760, %v4474_v51 }
 0x137   :  { %v5096_v2 = vpop.f32.mrf.mxu1  ;;  %2443 = vmatprep.mubr.f32.mxu0 %v6289_v14  ;;  %2653 = vmatprep.mubr.f32.mxu1 %v6289_v14 }
 0x138   :  { %v5100_v34 = vpop.f32.mrf.mxu0  ;;  %3067 = vmatprep.subr.mxu1 %v4380_v21  ;;  %2812 = vmatpush1.msra.mxu0 %v6593_v20  ;;  %v6599_v20 = vand.u32 4294901760, %v4505_v48 }
 0x139   :  { %v5105_v59 = vpop.f32.mrf.mxu1  ;;  %2657 = vmatmul.mubr.f32.gmra.mxu1 %v6594_v32  ;;  %2816 = vmatprep.subr.mxu0 %v6595_v31  ;;  %v6600_v32 = vld [vmem:[#allocation42_spill] sm:$0xff] }
 0x13a   :  { %v5110_v53 = vpop.f32.mrf.mxu0  ;;  %2446 = vmatmul.mubr.f32.gmra.mxu0 %v6596_v62  ;;  %3069 = vmatpush1.msra.mxu1 %v4391_v33  ;;  %v6602_v62 = vld [vmem:[#allocation44_spill] sm:$0xff] }
 0x13b   :  { %v5114_v43 = vpop.f32.mrf.mxu1  ;;  %2451 = vmatprep.mubr.f32.mxu0 %v6289_v14  ;;  %2662 = vmatprep.mubr.f32.mxu1 %v6289_v14 }
 0x13c   :  { %v5118_v21 = vpop.f32.mrf.mxu0  ;;  %3071 = vmatprep.subr.mxu1 %v4413_v9  ;;  %2820 = vmatpush1.msra.mxu0 %v6597_v15  ;;  %v6603_v15 = vand.u32 4294901760, %v4537_v39 }
 0x13d   :  { %v5123_v51 = vpop.f32.mrf.mxu1  ;;  %2666 = vmatmul.mubr.f32.gmra.mxu1 %v6598_v28  ;;  %2824 = vmatprep.subr.mxu0 %v6599_v20  ;;  %v6604_v28 = vld [vmem:[#allocation48_spill] sm:$0xff] }
 0x13e   :  { %v5128_v33 = vpop.f32.mrf.mxu0  ;;  %2454 = vmatmul.mubr.f32.gmra.mxu0 %v6600_v32  ;;  %3073 = vmatpush1.msra.mxu1 %v4427_v42  ;;  %v6606_v32 = vld [vmem:[#allocation47_spill] sm:$0xff] }
 0x13f   :  { %v5132_v31 = vpop.f32.mrf.mxu1  ;;  %2459 = vmatprep.mubr.f32.mxu0 %v6289_v14  ;;  %2671 = vmatprep.mubr.f32.mxu1 %v6289_v14 }
 0x140   :  { %v5136_v9 = vpop.f32.mrf.mxu0  ;;  %3075 = vmatprep.subr.mxu1 %v4444_v57  ;;  %2828 = vmatpush1.msra.mxu0 %v6601_v17  ;;  %v6605_v57 = vand.u32 4294901760, %v4552_v1  ;;  %v6607_v17 = vand.u32 4294901760, %v4557_v46 }
 0x141   :  { %v5141_v48 = vpop.f32.mrf.mxu1  ;;  %2675 = vmatmul.mubr.f32.gmra.mxu1 %v6602_v62  ;;  %2832 = vmatprep.subr.mxu0 %v6603_v15  ;;  %v6608_v62 = vld [vmem:[#allocation53_spill] sm:$0xff] }
 0x142   :  { %v5146_v42 = vpop.f32.mrf.mxu0  ;;  %2462 = vmatmul.mubr.f32.gmra.mxu0 %v6604_v28  ;;  %3077 = vmatpush1.msra.mxu1 %v4460_v56  ;;  %v6610_v28 = vld [vmem:[#allocation52_spill] sm:$0xff] }
 0x143   :  { %v5150_v20 = vpop.f32.mrf.mxu1  ;;  %2467 = vmatprep.mubr.f32.mxu0 %v6289_v14  ;;  %2680 = vmatprep.mubr.f32.mxu1 %v6289_v14 }
 0x144   :  { %v5154_v49 = vpop.f32.mrf.mxu0  ;;  %3079 = vmatprep.subr.mxu1 %v4476_v55  ;;  %2836 = vmatpush1.msra.mxu0 %v6605_v57  ;;  %v6609_v55 = vand.u32 4294901760, %v4572_v40  ;;  %v6611_v57 = vand.u32 4294901760, %v4595_v4  ;;  %v6613_v40 = vand.u32 4294901760, %v6526_v25  ;;  %v6621_v25 = vld [vmem:[#allocation26_spill] sm:$0xff] }
 0x145   :  { %v5159_v39 = vpop.f32.mrf.mxu1  ;;  %2684 = vmatmul.mubr.f32.gmra.mxu1 %v6606_v32  ;;  %2840 = vmatprep.subr.mxu0 %v6607_v17  ;;  %v6612_v32 = vld [vmem:[#allocation54_spill] sm:$0xff] }
 0x146   :  { %v5164_v56 = vpop.f32.mrf.mxu0  ;;  %2470 = vmatmul.mubr.f32.gmra.mxu0 %v6608_v62  ;;  %3081 = vmatpush1.msra.mxu1 %v4492_v3  ;;  %v6614_v62 = vld [vmem:[#allocation56_spill] sm:$0xff] }
 0x147   :  { %v5168_v15 = vpop.f32.mrf.mxu1  ;;  %2475 = vmatprep.mubr.f32.mxu0 %v6289_v14  ;;  %2689 = vmatprep.mubr.f32.mxu1 %v6289_v14 }
 0x148   :  { %v5172_v1 = vpop.f32.mrf.mxu0  ;;  %3083 = vmatprep.subr.mxu1 %v4507_v24  ;;  %2844 = vmatpush1.msra.mxu0 %v6609_v55  ;;  %v6615_v55 = vld [vmem:[#allocation16_spill] sm:$0xff] }
 0x149   :  { %v5177_v46 = vpop.f32.mrf.mxu1  ;;  %2693 = vmatmul.mubr.f32.gmra.mxu1 %v6610_v28  ;;  %2848 = vmatprep.subr.mxu0 %v6611_v57  ;;  %v6616_v28 = vand.u32 4294901760, %v6615_v55  ;;  %v6618_v57 = vld [vmem:[#allocation61_spill] sm:$0xff] }
 0x14a   :  { %v5182_v3 = vpop.f32.mrf.mxu0  ;;  %2478 = vmatmul.mubr.f32.gmra.mxu0 %v6612_v32  ;;  %3085 = vmatpush1.msra.mxu1 %v4522_v8  ;;  %v6619_v32 = vld [vmem:[#allocation25_spill] sm:$0xff] }
 0x14b   :  { %v5186_v17 = vpop.f32.mrf.mxu1  ;;  %2483 = vmatprep.mubr.f32.mxu0 %v6289_v14  ;;  %2698 = vmatprep.mubr.f32.mxu1 %v6289_v14 }
 0x14c   :  { %v5190_v24 = vpop.f32.mrf.mxu0  ;;  %3087 = vmatprep.subr.mxu1 %v4529_v36  ;;  %2852 = vmatpush1.msra.mxu0 %v6613_v40  ;;  %v6622_v40 = vld [vmem:[#allocation18_spill] sm:$0xff] }
 0x14d   :  { %v5195_v4 = vpop.f32.mrf.mxu1  ;;  %2702 = vmatmul.mubr.f32.gmra.mxu1 %v6614_v62  ;;  %2856 = vmatprep.subr.mxu0 %v6616_v28  ;;  %v6623_v62 = vand.u32 4294901760, %v6622_v40  ;;  %v6624_v28 = vld [vmem:[#allocation60_spill] sm:$0xff] }
 0x14e   :  { %v5200_v8 = vpop.f32.mrf.mxu0  ;;  %2486 = vmatmul.mubr.f32.gmra.mxu0 %v6618_v57  ;;  %3089 = vmatpush1.msra.mxu1 %v6619_v32  ;;  %v6625_v57 = vld [vmem:[#allocation7_spill] sm:$0xff]  ;;  %v6632_v40 = vld [vmem:[#allocation4_spill] sm:$0xff] }
 0x14f   :  { %6617 = vst [vmem:[#allocation32_spill] sm:$0xff] %v5200_v8  ;;  %v5204_v35 = vpop.f32.mrf.mxu1  ;;  %2491 = vmatprep.mubr.f32.mxu0 %v6289_v14  ;;  %2707 = vmatprep.mubr.f32.mxu1 %v6289_v14  ;;  %v6626_v29 = vand.u32 4294901760, %v6625_v57  ;;  %v6635_v57 = vld [vmem:[#allocation64_spill] sm:$0xff] }
 0x150   :  { %v5208_v36 = vpop.f32.mrf.mxu0  ;;  %3091 = vmatprep.subr.mxu1 %v6621_v25  ;;  %2860 = vmatpush1.msra.mxu0 %v6623_v62  ;;  %v6633_v62 = vld [vmem:[#allocation24_spill] sm:$0xff] }
 0x151   :  { %6620 = vst [vmem:[#allocation19_spill] sm:$0xff] %v5208_v36  ;;  %v5213_v55 = vpop.f32.mrf.mxu1  ;;  %2711 = vmatmul.mubr.f32.gmra.mxu1 %v6624_v28  ;;  %2864 = vmatprep.subr.mxu0 %v6626_v29  ;;  %v6634_v28 = vand.u32 4294901760, %v6633_v62  ;;  %v6639_v36 = vld [vmem:[#allocation69_spill] sm:$0xff] }
 0x152   :  { %v5218_v32 = vpop.f32.mrf.mxu0  ;;  %2494 = vmatmul.mubr.f32.gmra.mxu0 %v6628_v50  ;;  %3093 = vmatpush1.msra.mxu1 %v6629_v5  ;;  %v6636_v50 = vld [vmem:[#allocation23_spill] sm:$0xff]  ;;  %v6642_v62 = vld [vmem:[#allocation85_spill] sm:$0xff] }
 0x153   :  { %6627 = vst [vmem:[#allocation2_spill] sm:$0xff] %v5218_v32  ;;  %v5222_v58 = vpop.f32.mrf.mxu1  ;;  %2499 = vmatprep.mubr.f32.mxu0 %v6289_v14  ;;  %2716 = vmatprep.mubr.f32.mxu1 %v6289_v14  ;;  %v6637_v32 = vand.u32 4294901760, %v6636_v50 }
 0x154   :  { %6630 = vst [vmem:[#allocation30_spill] sm:$0xff] %v5222_v58  ;;  %v5226_v25 = vpop.f32.mrf.mxu0  ;;  %3095 = vmatprep.subr.mxu1 %v6632_v40  ;;  %2868 = vmatpush1.msra.mxu0 %v6634_v28  ;;  %v6640_v58 = vld [vmem:[#allocation15_spill] sm:$0xff]  ;;  %v6643_v28 = vand.u32 4294901760, %v6642_v62  ;;  %v6650_v62 = vand.u32 4294901760, %v6558_v38  ;;  %v6656_v38 = vand.u32 4294901760, %v4760_v23 }
 0x155   :  { %6631 = vst [vmem:[#allocation40_spill] sm:$0xff] %v5226_v25  ;;  %v5231_v29 = vpop.f32.mrf.mxu1  ;;  %2720 = vmatmul.mubr.f32.gmra.mxu1 %v6635_v57  ;;  %2872 = vmatprep.subr.mxu0 %v6637_v32  ;;  %v6644_v57 = vld [vmem:[#allocation68_spill] sm:$0xff] }
 0x156   :  { %v5236_v5 = vpop.f32.mrf.mxu0  ;;  %2502 = vmatmul.mubr.f32.gmra.mxu0 %v6639_v36  ;;  %3097 = vmatpush1.msra.mxu1 %v6640_v58  ;;  %v6645_v36 = vld [vmem:[#allocation86_spill] sm:$0xff]  ;;  %v6649_v25 = vld [vmem:[#allocation20_spill] sm:$0xff] }
 0x157   :  { %6638 = vst [vmem:[#allocation34_spill] sm:$0xff] %v5236_v5  ;;  %v5240_v8 = vpop.f32.mrf.mxu1  ;;  %2507 = vmatprep.mubr.f32.mxu0 %v6289_v14  ;;  %2725 = vmatprep.mubr.f32.mxu1 %v6289_v14  ;;  %v6646_v50 = vand.u32 4294901760, %v6645_v36  ;;  %v6648_v5 = vld [vmem:[#allocation73_spill] sm:$0xff]  ;;  %v6654_v36 = vld [vmem:[#allocation74_spill] sm:$0xff] }
 0x158   :  { %6641 = vst [vmem:[#allocation41_spill] sm:$0xff] %v5240_v8  ;;  %v5244_v40 = vpop.f32.mrf.mxu0  ;;  %3099 = vmatprep.subr.mxu1 %v6549_v12  ;;  %2876 = vmatpush1.msra.mxu0 %v6643_v28 }
 0x159   :  { %v5249_v32 = vpop.f32.mrf.mxu1  ;;  %2729 = vmatmul.mubr.f32.gmra.mxu1 %v6644_v57  ;;  %2880 = vmatprep.subr.mxu0 %v6646_v50  ;;  %v6651_v57 = vld [vmem:[#allocation72_spill] sm:$0xff]  ;;  %v6655_v50 = vld [vmem:[#allocation21_spill] sm:$0xff] }
 0x15a   :  { %v5254_v58 = vpop.f32.mrf.mxu0  ;;  %2510 = vmatmul.mubr.f32.gmra.mxu0 %v6648_v5  ;;  %3101 = vmatpush1.msra.mxu1 %v6649_v25  ;;  %v6652_v5 = vand.u32 4294901760, %v6559_v11 }
 0x15b   :  { %6647 = vst [vmem:[#allocation43_spill] sm:$0xff] %v5254_v58  ;;  %v5258_v8 = vpop.f32.mrf.mxu1  ;;  %2515 = vmatprep.mubr.f32.mxu0 %v6289_v14  ;;  %2734 = vmatprep.mubr.f32.mxu1 %v6289_v14 }
 0x15c   :  { %v5262_v12 = vpop.f32.mrf.mxu0  ;;  %3103 = vmatprep.subr.mxu1 %v6557_v18  ;;  %2884 = vmatpush1.msra.mxu0 %v6650_v62  ;;  %v6657_v62 = vld [vmem:[#allocation76_spill] sm:$0xff] }
 0x15d   :  { %v5267_v28 = vpop.f32.mrf.mxu1  ;;  %2738 = vmatmul.mubr.f32.gmra.mxu1 %v6651_v57  ;;  %2888 = vmatprep.subr.mxu0 %v6652_v5  ;;  %v6658_v57 = vand.u32 4294901760, %v4777_v44 }
 0x15e   :  { %v5272_v25 = vpop.f32.mrf.mxu0  ;;  %2518 = vmatmul.mubr.f32.gmra.mxu0 %v6654_v36  ;;  %3105 = vmatpush1.msra.mxu1 %v6655_v50  ;;  %v6659_v36 = vld [vmem:[#allocation80_spill] sm:$0xff] }
 0x15f   :  { %6653 = vst [vmem:[#allocation42_spill] sm:$0xff] %v5272_v25  ;;  %v5276_v58 = vpop.f32.mrf.mxu1  ;;  %2523 = vmatprep.mubr.f32.mxu0 %v6289_v14  ;;  %2743 = vmatprep.mubr.f32.mxu1 %v6289_v14  ;;  %v6660_v50 = vld [vmem:[#allocation84_spill] sm:$0xff] }
 0x160   :  { %v5280_v18 = vpop.f32.mrf.mxu0  ;;  %3107 = vmatprep.subr.mxu1 %v6564_v7  ;;  %2892 = vmatpush1.msra.mxu0 %v6656_v38  ;;  %v6661_v7 = vand.u32 4294901760, %v4790_v13  ;;  %v6662_v38 = vld [vmem:[#allocation79_spill] sm:$0xff]  ;;  %v6667_v13 = vand.u32 4294901760, %v4816_v30 }
 0x161   :  { %v5285_v11 = vpop.f32.mrf.mxu1  ;;  %2747 = vmatmul.mubr.f32.gmra.mxu1 %v6657_v62  ;;  %2896 = vmatprep.subr.mxu0 %v6658_v57  ;;  %v6663_v62 = vand.u32 4294901760, %v4807_v16 }
 0x162   :  { %v5290_v5 = vpop.f32.mrf.mxu0  ;;  %2526 = vmatmul.mubr.f32.gmra.mxu0 %v6659_v36  ;;  %3109 = vmatpush1.msra.mxu1 %v6660_v50  ;;  %v6665_v36 = vld [vmem:[#allocation82_spill] sm:$0xff] }
 0x163   :  { %v5294_v25 = vpop.f32.mrf.mxu1  ;;  %2531 = vmatprep.mubr.f32.mxu0 %v6289_v14  ;;  %2752 = vmatprep.mubr.f32.mxu1 %v6289_v14 }
 0x164   :  { %v5298_v23 = vpop.f32.mrf.mxu0  ;;  %3111 = vmatprep.subr.mxu1 %v6569_v45  ;;  %2900 = vmatpush1.msra.mxu0 %v6661_v7  ;;  %v6668_v7 = vld [vmem:[#allocation81_spill] sm:$0xff] }
 0x165   :  { %v5303_v44 = vpop.f32.mrf.mxu1  ;;  %2756 = vmatmul.mubr.f32.gmra.mxu1 %v6662_v38  ;;  %2904 = vmatprep.subr.mxu0 %v6663_v62  ;;  %v6669_v38 = vand.u32 4294901760, %v4829_v60  ;;  %v6671_v62 = vld [vmem:[#allocation83_spill] sm:$0xff] }
 0x166   :  { %v5308_v57 = vpop.f32.mrf.mxu0  ;;  %2534 = vmatmul.mubr.f32.gmra.mxu0 %v6665_v36  ;;  %3113 = vmatpush1.msra.mxu1 %v6572_v47 }
 0x167   :  { %6664 = vst [vmem:[#allocation44_spill] sm:$0xff] %v5308_v57  ;;  %v5312_v50 = vpop.f32.mrf.mxu1  ;;  %2539 = vmatprep.mubr.f32.mxu0 %v6289_v14  ;;  %2761 = vmatprep.mubr.f32.mxu1 %v6289_v14  ;;  %v6687_v57 = vld [vmem:[#allocation36_spill] sm:$0xff] }
 0x168   :  { %v5316_v45 = vpop.f32.mrf.mxu0  ;;  %3115 = vmatprep.subr.mxu1 %v4747_v52  ;;  %2908 = vmatpush1.msra.mxu0 %v6667_v13  ;;  %v6673_v52 = vand.u32 4294901760, %v4838_v0  ;;  %v6676_v13 = vld [vmem:[#allocation11_spill] sm:$0xff]  ;;  %v6679_v0 = vld [vmem:[#allocation33_spill] sm:$0xff] }
 0x169   :  { %6666 = vst [vmem:[#allocation48_spill] sm:$0xff] %v5316_v45  ;;  %v5321_v16 = vpop.f32.mrf.mxu1  ;;  %2765 = vmatmul.mubr.f32.gmra.mxu1 %v6668_v7  ;;  %2912 = vmatprep.subr.mxu0 %v6669_v38  ;;  %v6677_v38 = vld [vmem:[#allocation28_spill] sm:$0xff] }
 0x16a   :  { %v5326_v47 = vpop.f32.mrf.mxu0  ;;  %2542 = vmatmul.mubr.f32.gmra.mxu0 %v6671_v62  ;;  %3117 = vmatpush1.msra.mxu1 %v4762_v27  ;;  %v834_v62 = vadd.f32 %v5056_v26, %v6679_v0 }
 0x16b   :  { %6670 = vst [vmem:[#allocation47_spill] sm:$0xff] %v5326_v47  ;;  %v5330_v36 = vpop.f32.mrf.mxu1  ;;  %2770 = vmatprep.mubr.f32.mxu1 %v6289_v14  ;;  %2916 = vmatpush1.msra.mxu0 %v6673_v52 }
 0x16c   :  { %6672 = vst [vmem:[#allocation53_spill] sm:$0xff] %v5330_v36  ;;  %v5335_v30 = vpop.f32.mrf.mxu0  ;;  %2949 = vmatprep.mubr.f32.mxu0 %v6289_v14  ;;  %3119 = vmatprep.subr.mxu1 %v6577_v41 }
 0x16d   :  { %6674 = vst [vmem:[#allocation52_spill] sm:$0xff] %v5335_v30  ;;  %v5339_v60 = vpop.f32.mrf.mxu1  ;;  %2774 = vmatmul.mubr.f32.gmra.mxu1 %v6676_v13  ;;  %v6681_v13 = vld [vmem:[#allocation13_spill] sm:$0xff]  ;;  %v6682_v30 = vld [vmem:[#allocation39_spill] sm:$0xff] }
 0x16e   :  { %6675 = vst [vmem:[#allocation54_spill] sm:$0xff] %v5339_v60  ;;  %v1362_v7 = vpop.f32.mrf.mxu0  ;;  %2951 = vmatmul.mubr.f32.vlgmr.msra.gmra.mxu0 %v6677_v38  ;;  %3121 = vmatpush1.msra.mxu1 %v4792_v6  ;;  %v836_v47 = vadd.f32 %v5064_v54, %v6682_v30  ;;  %v1060_v6 = vadd.f32 %v5087_v22, %v834_v62  ;;  %v6683_v60 = vld [vmem:[#allocation31_spill] sm:$0xff] }
 0x16f   :  { %v5344_v27 = vpop.f32.mrf.mxu1  ;;  %2779 = vmatprep.mubr.f32.mxu1 %v6289_v14  ;;  %2956 = vmatprep.mubr.f32.mxu0 %v6289_v14  ;;  %v6686_v30 = vld [vmem:[#allocation51_spill] sm:$0xff] }
 0x170   :  { %6678 = vst [vmem:[#allocation56_spill] sm:$0xff] %v5344_v27  ;;  %v1364_v52 = vpop.f32.mrf.mxu0  ;;  %3123 = vmatprep.subr.mxu1 %v4804_v37  ;;  %v6685_v37 = vld [vmem:[#allocation49_spill] sm:$0xff]  ;;  %v1062_v0 = vadd.f32 %v5096_v2, %v836_v47  ;;  %v844_v22 = vadd.f32 %v5082_v10, %v6686_v30  ;;  %v6688_v2 = vld [vmem:[#allocation92_spill] sm:$0xff]  ;;  %v6692_v30 = vld [vmem:[#allocation59_spill] sm:$0xff] }
 0x171   :  { %v5351_v41 = vpop.f32.mrf.mxu1  ;;  %2783 = vmatmul.mubr.f32.gmra.mxu1 %v6681_v13  ;;  %v842_v26 = vadd.f32 %v5074_v63, %v6685_v37  ;;  %v1363_v13 = vadd.f32 %v1362_v7, %v1060_v6  ;;  %v850_v47 = vadd.f32 %v5092_v19, %v6688_v2 }
 0x172   :  { %6680 = vst [vmem:[#allocation16_spill] sm:$0xff] %v5351_v41  ;;  %v1369_v27 = vpop.f32.mrf.mxu0  ;;  %2958 = vmatmul.mubr.f32.gmra.mxu0 %v6683_v60  ;;  %3125 = vmatpush1.msra.mxu1 %v4819_v61  ;;  %v1071_v10 = vadd.f32 %v5114_v43, %v844_v22  ;;  %v860_v22 = vadd.f32 %v5118_v21, %v6692_v30  ;;  %v6694_v21 = vld [vmem:[#allocation94_spill] sm:$0xff] }
 0x173   :  { %v5359_v45 = vpop.f32.mrf.mxu1  ;;  %2963 = vmatprep.mubr.f32.mxu0 %v6289_v14  ;;  %3158 = vmatprep.mubr.f32.mxu1 %v6289_v14  ;;  %v1069_v61 = vadd.f32 %v5105_v59, %v842_v26  ;;  %v1078_v26 = vadd.f32 %v5123_v51, %v850_v47  ;;  %v866_v47 = vadd.f32 %v5128_v33, %v6694_v21 }
 0x174   :  { %6684 = vst [vmem:[#allocation61_spill] sm:$0xff] %v5359_v45  ;;  %v1371_v54 = vpop.f32.mrf.mxu0  ;;  %v1365_v45 = vadd.f32 %v1364_v52, %v1062_v0  ;;  %v6689_v52 = vld [vmem:[#allocation55_spill] sm:$0xff] }
 0x175   :  { %v1571_v62 = vpop.f32.mrf.mxu1  ;;  %3160 = vmatmul.mubr.f32.vlgmr.msra.gmra.mxu1 %v6677_v38  ;;  %v1370_v7 = vadd.f32 %v1369_v27, %v1069_v61  ;;  %v852_v6 = vadd.f32 %v5100_v34, %v6689_v52  ;;  %v1372_v0 = vadd.f32 %v1371_v54, %v1071_v10  ;;  %v6690_v27 = vld [vmem:[#allocation37_spill] sm:$0xff] }
 0x176   :  { %v1376_v41 = vpop.f32.mrf.mxu0  ;;  %v1572_v36 = vadd.f32 %v1571_v62, %v1363_v13  ;;  %2965 = vmatmul.mubr.f32.gmra.mxu0 %v6687_v57  ;;  %3165 = vmatprep.mubr.f32.mxu1 %v6289_v14  ;;  %v6691_v34 = vld [vmem:[#allocation93_spill] sm:$0xff] }
 0x177   :  { %v1573_v63 = vpop.f32.mrf.mxu1  ;;  %2970 = vmatprep.mubr.f32.mxu0 %v6289_v14  ;;  %v1377_v51 = vadd.f32 %v1376_v41, %v1078_v26  ;;  %v6693_v41 = vld [vmem:[#allocation38_spill] sm:$0xff]  ;;  %v6696_v26 = vld [vmem:[#allocation45_spill] sm:$0xff] }
 0x178   :  { %3271 = vst [vmem:[%s5994_s2] sm:$0xff] %v1572_v36  ;;  %v1378_v59 = vpop.f32.mrf.mxu0  ;;  %v1574_v38 = vadd.f32 %v1573_v63, %v1365_v45  ;;  %v858_v36 = vadd.f32 %v5110_v53, %v6691_v34  ;;  %v6698_v34 = vld [vmem:[#allocation67_spill] sm:$0xff] }
 0x179   :  { %v1578_v37 = vpop.f32.mrf.mxu1  ;;  %3167 = vmatmul.mubr.f32.gmra.mxu1 %v6683_v60  ;;  %v1080_v60 = vadd.f32 %v5132_v31, %v852_v6  ;;  %v1096_v6 = vadd.f32 %v5159_v39, %v866_v47  ;;  %v6702_v47 = vld [vmem:[#allocation50_spill] sm:$0xff] }
 0x17a   :  { %3272 = vst [vmem:[%s5994_s2 + $0x8] sm:$0xff] %v1574_v38  ;;  %v1383_v19 = vpop.f32.mrf.mxu0  ;;  %v1579_v43 = vadd.f32 %v1578_v37, %v1370_v7  ;;  %2972 = vmatmul.mubr.f32.gmra.mxu0 %v6690_v27  ;;  %3172 = vmatprep.mubr.f32.mxu1 %v6289_v14  ;;  %v1087_v61 = vadd.f32 %v5141_v48, %v858_v36 }
 0x17b   :  { %v1580_v45 = vpop.f32.mrf.mxu1  ;;  %2977 = vmatprep.mubr.f32.mxu0 %v6289_v14  ;;  %v1379_v63 = vadd.f32 %v1378_v59, %v1080_v60  ;;  %v6695_v59 = vld [vmem:[#allocation63_spill] sm:$0xff]  ;;  %v876_v36 = vadd.f32 %v5154_v49, %v6698_v34 }
 0x17c   :  { %3275 = vst [vmem:[%s5994_s2 + $0x20] sm:$0xff] %v1579_v43  ;;  %v1385_v13 = vpop.f32.mrf.mxu0  ;;  %v1581_v54 = vadd.f32 %v1580_v45, %v1372_v0  ;;  %v1384_v48 = vadd.f32 %v1383_v19, %v1087_v61  ;;  %v868_v38 = vadd.f32 %v5136_v9, %v6695_v59  ;;  %v6697_v9 = vld [vmem:[#allocation95_spill] sm:$0xff] }
 0x17d   :  { %v1585_v62 = vpop.f32.mrf.mxu1  ;;  %3174 = vmatmul.mubr.f32.gmra.mxu1 %v6687_v57  ;;  %v1089_v57 = vadd.f32 %v5150_v20, %v860_v22  ;;  %v874_v19 = vadd.f32 %v5146_v42, %v6697_v9  ;;  %v6700_v49 = vld [vmem:[#allocation27_spill] sm:$0xff] }
 0x17e   :  { %3276 = vst [vmem:[%s5994_s2 + $0x28] sm:$0xff] %v1581_v54  ;;  %v1390_v53 = vpop.f32.mrf.mxu0  ;;  %v1586_v31 = vadd.f32 %v1585_v62, %v1377_v51  ;;  %2979 = vmatmul.mubr.f32.gmra.mxu0 %v6693_v41  ;;  %3179 = vmatprep.mubr.f32.mxu1 %v6289_v14  ;;  %v1098_v43 = vadd.f32 %v5168_v15, %v868_v38  ;;  %v6699_v54 = vld [vmem:[#allocation46_spill] sm:$0xff]  ;;  %v6704_v38 = vld [vmem:[#allocation75_spill] sm:$0xff] }
 0x17f   :  { %v1587_v2 = vpop.f32.mrf.mxu1  ;;  %2984 = vmatprep.mubr.f32.mxu0 %v6289_v14  ;;  %v1386_v37 = vadd.f32 %v1385_v13, %v1089_v57  ;;  %v1391_v39 = vadd.f32 %v1390_v53, %v1096_v6  ;;  %v1105_v51 = vadd.f32 %v5177_v46, %v874_v19  ;;  %v882_v22 = vadd.f32 %v5164_v56, %v6700_v49  ;;  %v6701_v53 = vld [vmem:[#allocation71_spill] sm:$0xff]  ;;  %v6708_v19 = vld [vmem:[#allocation30_spill] sm:$0xff]  ;;  %v6712_v49 = vld [vmem:[#allocation5_spill] sm:$0xff] }
 0x180   :  { %3279 = vst [vmem:[%s5994_s2 + $0x40] sm:$0xff] %v1586_v31  ;;  %v1392_v10 = vpop.f32.mrf.mxu0  ;;  %v1588_v7 = vadd.f32 %v1587_v2, %v1379_v63  ;;  %v1107_v62 = vadd.f32 %v5186_v17, %v876_v36  ;;  %v884_v31 = vadd.f32 %v5172_v1, %v6701_v53  ;;  %v6703_v1 = vld [vmem:[#allocation96_spill] sm:$0xff]  ;;  %v6710_v34 = vld [vmem:[#allocation19_spill] sm:$0xff] }
 0x181   :  { %v1592_v52 = vpop.f32.mrf.mxu1  ;;  %3181 = vmatmul.mubr.f32.gmra.mxu1 %v6690_v27  ;;  %v1393_v13 = vadd.f32 %v1392_v10, %v1098_v43  ;;  %v1114_v2 = vadd.f32 %v5195_v4, %v882_v22  ;;  %v6713_v22 = vld [vmem:[#allocation2_spill] sm:$0xff] }
 0x182   :  { %3280 = vst [vmem:[%s5994_s2 + $0x48] sm:$0xff] %v1588_v7  ;;  %v1397_v33 = vpop.f32.mrf.mxu0  ;;  %v1593_v20 = vadd.f32 %v1592_v52, %v1384_v48  ;;  %2986 = vmatmul.mubr.f32.gmra.mxu0 %v6696_v26  ;;  %3186 = vmatprep.mubr.f32.mxu1 %v6289_v14  ;;  %v890_v48 = vadd.f32 %v5182_v3, %v6703_v1  ;;  %v6717_v1 = vld [vmem:[#allocation65_spill] sm:$0xff] }
 0x183   :  { %v1594_v0 = vpop.f32.mrf.mxu1  ;;  %2991 = vmatprep.mubr.f32.mxu0 %v6289_v14  ;;  %v1398_v46 = vadd.f32 %v1397_v33, %v1105_v51  ;;  %v1116_v10 = vadd.f32 %v5204_v35, %v884_v31  ;;  %v892_v52 = vadd.f32 %v5190_v24, %v6704_v38  ;;  %v6706_v24 = vld [vmem:[#allocation97_spill] sm:$0xff] }
 0x184   :  { %3283 = vst [vmem:[%s5994_s2 + $0x60] sm:$0xff] %v1593_v20  ;;  %v1399_v27 = vpop.f32.mrf.mxu0  ;;  %v1595_v45 = vadd.f32 %v1594_v0, %v1386_v37  ;;  %v1123_v37 = vadd.f32 %v5213_v55, %v890_v48  ;;  %v6705_v20 = vld [vmem:[#allocation57_spill] sm:$0xff]  ;;  %v6707_v0 = vld [vmem:[#allocation32_spill] sm:$0xff] }
 0x185   :  { %v1599_v60 = vpop.f32.mrf.mxu1  ;;  %3188 = vmatmul.mubr.f32.gmra.mxu1 %v6693_v41  ;;  %v1400_v21 = vadd.f32 %v1399_v27, %v1107_v62  ;;  %v898_v9 = vadd.f32 %v6707_v0, %v6706_v24  ;;  %v1125_v43 = vadd.f32 %v6708_v19, %v892_v52  ;;  %v906_v62 = vadd.f32 %v6713_v22, %v6712_v49  ;;  %v6715_v31 = vld [vmem:[#allocation9_spill] sm:$0xff]  ;;  %v6723_v0 = vld [vmem:[#allocation43_spill] sm:$0xff]  ;;  %v6728_v22 = vld [vmem:[#allocation12_spill] sm:$0xff] }
 0x186   :  { %3284 = vst [vmem:[%s5994_s2 + $0x68] sm:$0xff] %v1595_v45  ;;  %v1404_v42 = vpop.f32.mrf.mxu0  ;;  %v1600_v15 = vadd.f32 %v1599_v60, %v1391_v39  ;;  %2993 = vmatmul.mubr.f32.gmra.mxu0 %v6699_v54  ;;  %3193 = vmatprep.mubr.f32.mxu1 %v6289_v14  ;;  %v6709_v45 = vld [vmem:[#allocation78_spill] sm:$0xff] }
 0x187   :  { %v1601_v30 = vpop.f32.mrf.mxu1  ;;  %2998 = vmatprep.mubr.f32.mxu0 %v6289_v14  ;;  %v1405_v4 = vadd.f32 %v1404_v42, %v1114_v2  ;;  %v900_v36 = vadd.f32 %v6710_v34, %v6709_v45  ;;  %v1132_v51 = vadd.f32 %v5231_v29, %v898_v9 }
 0x188   :  { %3287 = vst [vmem:[%s5994_s2 + $0x80] sm:$0xff] %v1600_v15  ;;  %v1406_v61 = vpop.f32.mrf.mxu0  ;;  %v1602_v63 = vadd.f32 %v1601_v30, %v1393_v13 }
 0x189   :  { %v1606_v41 = vpop.f32.mrf.mxu1  ;;  %3195 = vmatmul.mubr.f32.gmra.mxu1 %v6696_v26  ;;  %v1407_v33 = vadd.f32 %v1406_v61, %v1116_v10  ;;  %v6718_v10 = vld [vmem:[#allocation22_spill] sm:$0xff] }
 0x18a   :  { %3288 = vst [vmem:[%s5994_s2 + $0x88] sm:$0xff] %v1602_v63  ;;  %v1411_v56 = vpop.f32.mrf.mxu0  ;;  %v1607_v17 = vadd.f32 %v1606_v41, %v1398_v46  ;;  %3000 = vmatmul.mubr.f32.gmra.mxu0 %v6702_v47  ;;  %3200 = vmatprep.mubr.f32.mxu1 %v6289_v14  ;;  %v6714_v46 = vld [vmem:[#allocation41_spill] sm:$0xff]  ;;  %v6716_v41 = vld [vmem:[#allocation40_spill] sm:$0xff] }
 0x18b   :  { %v1608_v57 = vpop.f32.mrf.mxu1  ;;  %3005 = vmatprep.mubr.f32.mxu0 %v6289_v14  ;;  %v1412_v55 = vadd.f32 %v1411_v56, %v1123_v37  ;;  %v1134_v61 = vadd.f32 %v6714_v46, %v900_v36  ;;  %v908_v2 = vadd.f32 %v6716_v41, %v6715_v31  ;;  %v1141_v56 = vadd.f32 %v5249_v32, %v906_v62 }
 0x18c   :  { %3291 = vst [vmem:[%s5994_s2 + $0xa0] sm:$0xff] %v1607_v17  ;;  %v1413_v7 = vpop.f32.mrf.mxu0  ;;  %v1609_v59 = vadd.f32 %v1608_v57, %v1400_v21  ;;  %v932_v62 = vadd.f32 %v5280_v18, %v6728_v22  ;;  %v6730_v18 = vld [vmem:[#allocation87_spill] sm:$0xff] }
 0x18d   :  { %v1613_v6 = vpop.f32.mrf.mxu1  ;;  %3202 = vmatmul.mubr.f32.gmra.mxu1 %v6699_v54  ;;  %v1414_v13 = vadd.f32 %v1413_v7, %v1125_v43  ;;  %v6711_v54 = vld [vmem:[#allocation58_spill] sm:$0xff]  ;;  %v938_v41 = vadd.f32 %v5290_v5, %v6730_v18 }
 0x18e   :  { %3292 = vst [vmem:[%s5994_s2 + $0xa8] sm:$0xff] %v1609_v59  ;;  %v1418_v35 = vpop.f32.mrf.mxu0  ;;  %v1614_v3 = vadd.f32 %v1613_v6, %v1405_v4  ;;  %3007 = vmatmul.mubr.f32.gmra.mxu0 %v6705_v20  ;;  %3207 = vmatprep.mubr.f32.mxu1 %v6289_v14  ;;  %v6719_v4 = vld [vmem:[#allocation34_spill] sm:$0xff]  ;;  %v1143_v59 = vadd.f32 %v5258_v8, %v908_v2  ;;  %v6720_v6 = vld [vmem:[#allocation88_spill] sm:$0xff] }
 0x18f   :  { %v1615_v26 = vpop.f32.mrf.mxu1  ;;  %3012 = vmatprep.mubr.f32.mxu0 %v6289_v14  ;;  %v1419_v29 = vadd.f32 %v1418_v35, %v1132_v51  ;;  %v914_v7 = vadd.f32 %v6719_v4, %v6718_v10  ;;  %v916_v37 = vadd.f32 %v5244_v40, %v6720_v6  ;;  %v6722_v40 = vld [vmem:[#allocation90_spill] sm:$0xff]  ;;  %v1170_v2 = vadd.f32 %v5312_v50, %v932_v62 }
 0x190   :  { %3295 = vst [vmem:[%s5994_s2 + $0xc0] sm:$0xff] %v1614_v3  ;;  %v1420_v39 = vpop.f32.mrf.mxu0  ;;  %v1616_v27 = vadd.f32 %v1615_v26, %v1407_v33  ;;  %v6721_v26 = vld [vmem:[#allocation66_spill] sm:$0xff]  ;;  %v922_v9 = vadd.f32 %v6723_v0, %v6722_v40  ;;  %v6739_v0 = vld [vmem:[#allocation8_spill] sm:$0xff] }
 0x191   :  { %v1620_v60 = vpop.f32.mrf.mxu1  ;;  %3209 = vmatmul.mubr.f32.gmra.mxu1 %v6702_v47  ;;  %v1421_v17 = vadd.f32 %v1420_v39, %v1134_v61  ;;  %v1150_v35 = vadd.f32 %v5267_v28, %v914_v7  ;;  %v1152_v19 = vadd.f32 %v5276_v58, %v916_v37  ;;  %v6724_v39 = vld [vmem:[#allocation10_spill] sm:$0xff]  ;;  %v6734_v7 = vld [vmem:[#allocation44_spill] sm:$0xff]  ;;  %v6736_v37 = vld [vmem:[#allocation17_spill] sm:$0xff] }
 0x192   :  { %3296 = vst [vmem:[%s5994_s2 + $0xc8] sm:$0xff] %v1616_v27  ;;  %v1425_v42 = vpop.f32.mrf.mxu0  ;;  %v1621_v15 = vadd.f32 %v1620_v60, %v1412_v55  ;;  %3014 = vmatmul.mubr.f32.gmra.mxu0 %v6711_v54  ;;  %3214 = vmatprep.mubr.f32.mxu1 %v6289_v14  ;;  %v924_v27 = vadd.f32 %v5262_v12, %v6724_v39  ;;  %v6725_v51 = vld [vmem:[#allocation70_spill] sm:$0xff]  ;;  %v6726_v12 = vld [vmem:[#allocation35_spill] sm:$0xff] }
 0x193   :  { %v1622_v30 = vpop.f32.mrf.mxu1  ;;  %3019 = vmatprep.mubr.f32.mxu0 %v6289_v14  ;;  %v1426_v32 = vadd.f32 %v1425_v42, %v1141_v56  ;;  %v1159_v34 = vadd.f32 %v5285_v11, %v922_v9  ;;  %v6727_v42 = vld [vmem:[#allocation42_spill] sm:$0xff] }
 0x194   :  { %3299 = vst [vmem:[%s5994_s2 + $0xe0] sm:$0xff] %v1621_v15  ;;  %v1427_v63 = vpop.f32.mrf.mxu0  ;;  %v1623_v53 = vadd.f32 %v1622_v30, %v1414_v13  ;;  %v930_v15 = vadd.f32 %v6727_v42, %v6726_v12  ;;  %v6732_v10 = vld [vmem:[#allocation6_spill] sm:$0xff] }
 0x195   :  { %v1627_v21 = vpop.f32.mrf.mxu1  ;;  %3216 = vmatmul.mubr.f32.gmra.mxu1 %v6705_v20  ;;  %v1428_v3 = vadd.f32 %v1427_v63, %v1143_v59 }
 0x196   :  { %3300 = vst [vmem:[%s5994_s2 + $0xe8] sm:$0xff] %v1623_v53  ;;  %v1432_v47 = vpop.f32.mrf.mxu0  ;;  %v1628_v57 = vadd.f32 %v1627_v21, %v1419_v29  ;;  %3021 = vmatmul.mubr.f32.gmra.mxu0 %v6717_v1  ;;  %3221 = vmatprep.mubr.f32.mxu1 %v6289_v14  ;;  %v1168_v61 = vadd.f32 %v5303_v44, %v930_v15  ;;  %v6729_v53 = vld [vmem:[#allocation77_spill] sm:$0xff] }
 0x197   :  { %v1629_v48 = vpop.f32.mrf.mxu1  ;;  %3026 = vmatprep.mubr.f32.mxu0 %v6289_v14  ;;  %v1433_v28 = vadd.f32 %v1432_v47, %v1150_v35 }
 0x198   :  { %3303 = vst [vmem:[%s5994_s2 + $0x100] sm:$0xff] %v1628_v57  ;;  %v1434_v38 = vpop.f32.mrf.mxu0  ;;  %v1630_v52 = vadd.f32 %v1629_v48, %v1421_v17  ;;  %v6731_v17 = vld [vmem:[#allocation14_spill] sm:$0xff] }
 0x199   :  { %v1634_v33 = vpop.f32.mrf.mxu1  ;;  %3223 = vmatmul.mubr.f32.gmra.mxu1 %v6711_v54  ;;  %v1435_v36 = vadd.f32 %v1434_v38, %v1152_v19  ;;  %v1161_v54 = vadd.f32 %v5294_v25, %v924_v27  ;;  %v940_v47 = vadd.f32 %v5298_v23, %v6731_v17  ;;  %v6733_v23 = vld [vmem:[#allocation89_spill] sm:$0xff]  ;;  %v6740_v19 = vld [vmem:[#allocation91_spill] sm:$0xff] }
 0x19a   :  { %3304 = vst [vmem:[%s5994_s2 + $0x108] sm:$0xff] %v1630_v52  ;;  %v1439_v8 = vpop.f32.mrf.mxu0  ;;  %v1635_v20 = vadd.f32 %v1634_v33, %v1426_v32  ;;  %3028 = vmatmul.mubr.f32.gmra.mxu0 %v6721_v26  ;;  %3228 = vmatprep.mubr.f32.mxu1 %v6289_v14  ;;  %v946_v59 = vadd.f32 %v6734_v7, %v6733_v23  ;;  %v6735_v32 = vld [vmem:[#allocation53_spill] sm:$0xff]  ;;  %v6737_v33 = vld [vmem:[#allocation48_spill] sm:$0xff] }
 0x19b   :  { %v1636_v24 = vpop.f32.mrf.mxu1  ;;  %3033 = vmatprep.mubr.f32.mxu0 %v6289_v14  ;;  %v1440_v11 = vadd.f32 %v1439_v8, %v1159_v34  ;;  %v1179_v38 = vadd.f32 %v6735_v32, %v940_v47  ;;  %v948_v35 = vadd.f32 %v6737_v33, %v6736_v37  ;;  %v6738_v8 = vld [vmem:[#allocation54_spill] sm:$0xff] }
 0x19c   :  { %3307 = vst [vmem:[%s5994_s2 + $0x120] sm:$0xff] %v1635_v20  ;;  %v1441_v43 = vpop.f32.mrf.mxu0  ;;  %v1637_v55 = vadd.f32 %v1636_v24, %v1428_v3  ;;  %v1186_v20 = vadd.f32 %v6738_v8, %v946_v59 }
 0x19d   :  { %v1641_v45 = vpop.f32.mrf.mxu1  ;;  %3230 = vmatmul.mubr.f32.gmra.mxu1 %v6717_v1  ;;  %v1442_v29 = vadd.f32 %v1441_v43, %v1161_v54  ;;  %v1177_v1 = vadd.f32 %v5321_v16, %v938_v41 }
 0x19e   :  { %3308 = vst [vmem:[%s5994_s2 + $0x128] sm:$0xff] %v1637_v55  ;;  %v1446_v58 = vpop.f32.mrf.mxu0  ;;  %v1642_v60 = vadd.f32 %v1641_v45, %v1433_v28  ;;  %3035 = vmatmul.mubr.f32.gmra.mxu0 %v6725_v51  ;;  %3235 = vmatprep.mubr.f32.mxu1 %v6289_v14  ;;  %v6741_v28 = vld [vmem:[#allocation47_spill] sm:$0xff]  ;;  %v6742_v55 = vld [vmem:[#allocation56_spill] sm:$0xff] }
 0x19f   :  { %v1643_v13 = vpop.f32.mrf.mxu1  ;;  %3040 = vmatprep.mubr.f32.mxu0 %v6289_v14  ;;  %v1447_v44 = vadd.f32 %v1446_v58, %v1168_v61  ;;  %v954_v43 = vadd.f32 %v6741_v28, %v6740_v19  ;;  %v1188_v39 = vadd.f32 %v6742_v55, %v948_v35  ;;  %v6743_v58 = vld [vmem:[#allocation29_spill] sm:$0xff] }
 0x1a0   :  { %3311 = vst [vmem:[%s5994_s2 + $0x140] sm:$0xff] %v1642_v60  ;;  %v1448_v30 = vpop.f32.mrf.mxu0  ;;  %v1644_v49 = vadd.f32 %v1643_v13, %v1435_v36  ;;  %v6744_v60 = vld [vmem:[#allocation52_spill] sm:$0xff] }
 0x1a1   :  { %v1648_v46 = vpop.f32.mrf.mxu1  ;;  %3237 = vmatmul.mubr.f32.gmra.mxu1 %v6721_v26  ;;  %v1449_v48 = vadd.f32 %v1448_v30, %v1170_v2  ;;  %v6745_v13 = vld [vmem:[#allocation16_spill] sm:$0xff]  ;;  %v6746_v30 = vld [vmem:[#allocation61_spill] sm:$0xff] }
 0x1a2   :  { %3312 = vst [vmem:[%s5994_s2 + $0x148] sm:$0xff] %v1644_v49  ;;  %v1453_v25 = vpop.f32.mrf.mxu0  ;;  %v1649_v63 = vadd.f32 %v1648_v46, %v1440_v11  ;;  %3042 = vmatmul.mubr.f32.gmra.mxu0 %v6729_v53  ;;  %3242 = vmatprep.mubr.f32.mxu1 %v6289_v14  ;;  %v1195_v12 = vadd.f32 %v6745_v13, %v954_v43 }
 0x1a3   :  { %v1650_v31 = vpop.f32.mrf.mxu1  ;;  %3047 = vmatprep.mubr.f32.mxu0 %v6289_v14  ;;  %v1454_v16 = vadd.f32 %v1453_v25, %v1177_v1 }
 0x1a4   :  { %3315 = vst [vmem:[%s5994_s2 + $0x160] sm:$0xff] %v1649_v63  ;;  %v1455_v21 = vpop.f32.mrf.mxu0  ;;  %v1651_v56 = vadd.f32 %v1650_v31, %v1442_v29 }
 0x1a5   :  { %v1655_v57 = vpop.f32.mrf.mxu1  ;;  %3244 = vmatmul.mubr.f32.gmra.mxu1 %v6725_v51  ;;  %v1456_v26 = vadd.f32 %v1455_v21, %v1179_v38  ;;  %v956_v51 = vadd.f32 %v6744_v60, %v6743_v58 }
 0x1a6   :  { %3316 = vst [vmem:[%s5994_s2 + $0x168] sm:$0xff] %v1651_v56  ;;  %v1460_v5 = vpop.f32.mrf.mxu0  ;;  %v1656_v50 = vadd.f32 %v1655_v57, %v1447_v44  ;;  %3049 = vmatmul.mubr.f32.gmra.mxu0 %v6732_v10  ;;  %3249 = vmatprep.mubr.f32.mxu1 %v6289_v14 }
 0x1a7   :  { %v1657_v4 = vpop.f32.mrf.mxu1  ;;  %3054 = vmatprep.mubr.f32.mxu0 %v6289_v14  ;;  %v1461_v27 = vadd.f32 %v1460_v5, %v1186_v20  ;;  %v1197_v49 = vadd.f32 %v6746_v30, %v956_v51 }
 0x1a8   :  { %3319 = vst [vmem:[%s5994_s2 + $0x180] sm:$0xff] %v1656_v50  ;;  %v1462_v52 = vpop.f32.mrf.mxu0  ;;  %v1658_v6 = vadd.f32 %v1657_v4, %v1449_v48 }
 0x1a9   :  { %v1662_v3 = vpop.f32.mrf.mxu1  ;;  %3251 = vmatmul.mubr.f32.gmra.mxu1 %v6729_v53  ;;  %v1463_v42 = vadd.f32 %v1462_v52, %v1188_v39 }
 0x1aa   :  { %3320 = vst [vmem:[%s5994_s2 + $0x188] sm:$0xff] %v1658_v6  ;;  %v1467_v24 = vpop.f32.mrf.mxu0  ;;  %v1663_v40 = vadd.f32 %v1662_v3, %v1454_v16  ;;  %3056 = vmatmul.mubr.f32.gmra.mxu0 %v6739_v0  ;;  %3256 = vmatprep.mubr.f32.mxu1 %v6289_v14 }
 0x1ab   :  { %v1664_v9 = vpop.f32.mrf.mxu1  ;;  %v1468_v22 = vadd.f32 %v1467_v24, %v1195_v12 }
 0x1ac   :  { %3323 = vst [vmem:[%s5994_s2 + $0x1a0] sm:$0xff] %v1663_v40  ;;  %v1469_v45 = vpop.f32.mrf.mxu0  ;;  %v1665_v34 = vadd.f32 %v1664_v9, %v1456_v26 }
 0x1ad   :  { %v1669_v36 = vpop.f32.mrf.mxu1  ;;  %3258 = vmatmul.mubr.f32.gmra.mxu1 %v6732_v10  ;;  %v1470_v29 = vadd.f32 %v1469_v45, %v1197_v49 }
 0x1ae   :  { %3324 = vst [vmem:[%s5994_s2 + $0x1a8] sm:$0xff] %v1665_v34  ;;  %v1670_v15 = vadd.f32 %v1669_v36, %v1461_v27  ;;  %v1784_v54 = vpop.f32.mrf.mxu0  ;;  %3263 = vmatprep.mubr.f32.mxu1 %v6289_v14 }
 0x1af   :  { %v1671_v11 = vpop.f32.mrf.mxu1  ;;  %v1785_v25 = vadd.f32 0.0043757833, %v1784_v54 }
 0x1b0   :  { %3327 = vst [vmem:[%s5994_s2 + $0x1c0] sm:$0xff] %v1670_v15  ;;  %v1672_v62 = vadd.f32 %v1671_v11, %v1463_v42  ;;  %v1786_v46 = vpop.f32.mrf.mxu0 }
 0x1b1   :  { %v1676_v61 = vpop.f32.mrf.mxu1  ;;  %3265 = vmatmul.mubr.f32.gmra.mxu1 %v6739_v0  ;;  %v1787_v2 = vadd.f32 0.0043757833, %v1786_v46 }
 0x1b2   :  { %3328 = vst [vmem:[%s5994_s2 + $0x1c8] sm:$0xff] %v1672_v62  ;;  %v1677_v14 = vadd.f32 %v1676_v61, %v1468_v22  ;;  %v1795_v63 = vpop.f32.mrf.mxu0 }
 0x1b3   :  { %v1678_v53 = vpop.f32.mrf.mxu1  ;;  %v1796_v44 = vadd.f32 0.0043757833, %v1795_v63 }
 0x1b4   :  { %3331 = vst [vmem:[%s5994_s2 + $0x1e0] sm:$0xff] %v1677_v14  ;;  %v1679_v31 = vadd.f32 %v1678_v53, %v1470_v29  ;;  %v1797_v18 = vpop.f32.mrf.mxu0 }
 0x1b5   :  { %v2181_v41 = vpop.f32.mrf.mxu1  ;;  %v1798_v48 = vadd.f32 0.0043757833, %v1797_v18 }
 0x1b6   :  { %3332 = vst [vmem:[%s5994_s2 + $0x1e8] sm:$0xff] %v1679_v31  ;;  %v1806_v21 = vpop.f32.mrf.mxu0  ;;  %v5608_v56 = vadd.f32 %v2181_v41, %v1785_v25 }
 0x1b7   :  { %v2183_v17 = vpop.f32.mrf.mxu1  ;;  %v1807_v5 = vadd.f32 0.0043757833, %v1806_v21 }
 0x1b8   :  { %v1808_v47 = vpop.f32.mrf.mxu0  ;;  %v5610_v57 = vadd.f32 %v2183_v17, %v1787_v2 }
 0x1b9   :  { %v2188_v1 = vpop.f32.mrf.mxu1  ;;  %v1809_v32 = vadd.f32 0.0043757833, %v1808_v47 }
 0x1ba   :  { %v1817_v50 = vpop.f32.mrf.mxu0  ;;  %v5612_v10 = vadd.f32 %v2188_v1, %v1796_v44 }
 0x1bb   :  { %v2190_v4 = vpop.f32.mrf.mxu1  ;;  %v1818_v38 = vadd.f32 0.0043757833, %v1817_v50 }
 0x1bc   :  { %v1819_v23 = vpop.f32.mrf.mxu0  ;;  %v5614_v7 = vadd.f32 %v2190_v4, %v1798_v48 }
 0x1bd   :  { %v2195_v59 = vpop.f32.mrf.mxu1  ;;  %v1820_v3 = vadd.f32 0.0043757833, %v1819_v23 }
 0x1be   :  { %v1828_v16 = vpop.f32.mrf.mxu0  ;;  %v5616_v52 = vadd.f32 %v2195_v59, %v1807_v5 }
 0x1bf   :  { %v2197_v6 = vpop.f32.mrf.mxu1  ;;  %v1829_v8 = vadd.f32 0.0043757833, %v1828_v16 }
 0x1c0   :  { %v1830_v37 = vpop.f32.mrf.mxu0  ;;  %v5618_v33 = vadd.f32 %v2197_v6, %v1809_v32 }
 0x1c1   :  { %v2202_v35 = vpop.f32.mrf.mxu1  ;;  %v1831_v19 = vadd.f32 0.0043757833, %v1830_v37 }
 0x1c2   :  { %v1839_v20 = vpop.f32.mrf.mxu0  ;;  %v5620_v26 = vadd.f32 %v2202_v35, %v1818_v38 }
 0x1c3   :  { %v2204_v24 = vpop.f32.mrf.mxu1  ;;  %v1840_v28 = vadd.f32 0.0043757833, %v1839_v20 }
 0x1c4   :  { %v1841_v40 = vpop.f32.mrf.mxu0  ;;  %v5622_v0 = vadd.f32 %v2204_v24, %v1820_v3 }
 0x1c5   :  { %v2209_v9 = vpop.f32.mrf.mxu1  ;;  %v1842_v36 = vadd.f32 0.0043757833, %v1841_v40 }
 0x1c6   :  { %v1850_v43 = vpop.f32.mrf.mxu0  ;;  %v5624_v55 = vadd.f32 %v2209_v9, %v1829_v8 }
 0x1c7   :  { %v2211_v39 = vpop.f32.mrf.mxu1  ;;  %v1851_v58 = vadd.f32 0.0043757833, %v1850_v43 }
 0x1c8   :  { %v1852_v27 = vpop.f32.mrf.mxu0  ;;  %v5626_v45 = vadd.f32 %v2211_v39, %v1831_v19 }
 0x1c9   :  { %v2216_v34 = vpop.f32.mrf.mxu1  ;;  %v1853_v54 = vadd.f32 0.0043757833, %v1852_v27 }
 0x1ca   :  { %v1861_v60 = vpop.f32.mrf.mxu0  ;;  %v5628_v51 = vadd.f32 %v2216_v34, %v1840_v28 }
 0x1cb   :  { %v2218_v13 = vpop.f32.mrf.mxu1  ;;  %v1862_v11 = vadd.f32 0.0043757833, %v1861_v60 }
 0x1cc   :  { %v1863_v12 = vpop.f32.mrf.mxu0  ;;  %v5630_v42 = vadd.f32 %v2218_v13, %v1842_v36 }
 0x1cd   :  { %v2223_v15 = vpop.f32.mrf.mxu1  ;;  %v1864_v29 = vadd.f32 0.0043757833, %v1863_v12 }
 0x1ce   :  { %v1872_v30 = vpop.f32.mrf.mxu0  ;;  %v5632_v49 = vadd.f32 %v2223_v15, %v1851_v58 }
 0x1cf   :  { %v2225_v22 = vpop.f32.mrf.mxu1  ;;  %v1873_v25 = vadd.f32 0.0043757833, %v1872_v30 }
 0x1d0   :  { %v1874_v62 = vpop.f32.mrf.mxu0  ;;  %v5634_v46 = vadd.f32 %v2225_v22, %v1853_v54 }
 0x1d1   :  { %v2230_v61 = vpop.f32.mrf.mxu1  ;;  %v1875_v2 = vadd.f32 0.0043757833, %v1874_v62 }
 0x1d2   :  { %v1883_v14 = vpop.f32.mrf.mxu0  ;;  %v5636_v63 = vadd.f32 %v2230_v61, %v1862_v11 }
 0x1d3   :  { %v2232_v53 = vpop.f32.mrf.mxu1  ;;  %v1884_v44 = vadd.f32 0.0043757833, %v1883_v14 }
 0x1d4   :  { %v1885_v31 = vpop.f32.mrf.mxu0  ;;  %v5638_v18 = vadd.f32 %v2232_v53, %v1864_v29 }
 0x1d5   :  { %v2237_v41 = vpop.f32.mrf.mxu1  ;;  %v1886_v50 = vadd.f32 0.0043757833, %v1885_v31 }
 0x1d6   :  { %v1894_v21 = vpop.f32.mrf.mxu0  ;;  %v5640_v17 = vadd.f32 %v2237_v41, %v1873_v25 }
 0x1d7   :  { %v2239_v47 = vpop.f32.mrf.mxu1  ;;  %v1895_v4 = vadd.f32 0.0043757833, %v1894_v21 }
 0x1d8   :  { %v1896_v1 = vpop.f32.mrf.mxu0  ;;  %v5642_v48 = vadd.f32 %v2239_v47, %v1875_v2 }
 0x1d9   :  { %v2244_v5 = vpop.f32.mrf.mxu1  ;;  %v1897_v37 = vadd.f32 0.0043757833, %v1896_v1 }
 0x1da   :  { %v1905_v23 = vpop.f32.mrf.mxu0  ;;  %v5644_v59 = vadd.f32 %v2244_v5, %v1884_v44 }
 0x1db   :  { %v2246_v32 = vpop.f32.mrf.mxu1  ;;  %v1906_v35 = vadd.f32 0.0043757833, %v1905_v23 }
 0x1dc   :  { %6747 = vst [vmem:[#allocation25_spill] sm:$0xff] %v5644_v59  ;;  %v1907_v38 = vpop.f32.mrf.mxu0  ;;  %v5646_v16 = vadd.f32 %v2246_v32, %v1886_v50 }
 0x1dd   :  { %v2251_v6 = vpop.f32.mrf.mxu1  ;;  %v1908_v19 = vadd.f32 0.0043757833, %v1907_v38 }
 0x1de   :  { %6748 = vst [vmem:[#allocation26_spill] sm:$0xff] %v5646_v16  ;;  %v1916_v3 = vpop.f32.mrf.mxu0  ;;  %v5648_v8 = vadd.f32 %v2251_v6, %v1895_v4 }
 0x1df   :  { %v2253_v20 = vpop.f32.mrf.mxu1  ;;  %v1917_v28 = vadd.f32 0.0043757833, %v1916_v3 }
 0x1e0   :  { %6749 = vst [vmem:[#allocation18_spill] sm:$0xff] %v5648_v8  ;;  %v1918_v24 = vpop.f32.mrf.mxu0  ;;  %v5650_v40 = vadd.f32 %v2253_v20, %v1897_v37 }
 0x1e1   :  { %v2258_v9 = vpop.f32.mrf.mxu1  ;;  %v1919_v60 = vadd.f32 0.0043757833, %v1918_v24 }
 0x1e2   :  { %6750 = vst [vmem:[#allocation60_spill] sm:$0xff] %v5650_v40  ;;  %v1927_v43 = vpop.f32.mrf.mxu0  ;;  %v5652_v39 = vadd.f32 %v2258_v9, %v1906_v35 }
 0x1e3   :  { %v2260_v27 = vpop.f32.mrf.mxu1  ;;  %v1928_v13 = vadd.f32 0.0043757833, %v1927_v43 }
 0x1e4   :  { %6751 = vst [vmem:[#allocation7_spill] sm:$0xff] %v5652_v39  ;;  %v1929_v34 = vpop.f32.mrf.mxu0  ;;  %v5654_v36 = vadd.f32 %v2260_v27, %v1908_v19 }
 0x1e5   :  { %v2265_v58 = vpop.f32.mrf.mxu1  ;;  %v1930_v62 = vadd.f32 0.0043757833, %v1929_v34 }
 0x1e6   :  { %6752 = vst [vmem:[#allocation62_spill] sm:$0xff] %v5654_v36  ;;  %v1938_v12 = vpop.f32.mrf.mxu0  ;;  %v5656_v15 = vadd.f32 %v2265_v58, %v1917_v28 }
 0x1e7   :  { %v2267_v54 = vpop.f32.mrf.mxu1  ;;  %v1939_v61 = vadd.f32 0.0043757833, %v1938_v12 }
 0x1e8   :  { %6753 = vst [vmem:[#allocation3_spill] sm:$0xff] %v5656_v15  ;;  %v1940_v11 = vpop.f32.mrf.mxu0  ;;  %v5658_v30 = vadd.f32 %v2267_v54, %v1919_v60 }
 0x1e9   :  { %v2272_v22 = vpop.f32.mrf.mxu1  ;;  %v1941_v2 = vadd.f32 0.0043757833, %v1940_v11 }
 0x1ea   :  { %6754 = vst [vmem:[#allocation4_spill] sm:$0xff] %v5658_v30  ;;  %v1949_v29 = vpop.f32.mrf.mxu0  ;;  %v5660_v25 = vadd.f32 %v2272_v22, %v1928_v13 }
 0x1eb   :  { %v2274_v14 = vpop.f32.mrf.mxu1  ;;  %v1950_v44 = vadd.f32 0.0043757833, %v1949_v29 }
 0x1ec   :  { %6755 = vst [vmem:[#allocation24_spill] sm:$0xff] %v5660_v25  ;;  %v1951_v53 = vpop.f32.mrf.mxu0  ;;  %v5662_v31 = vadd.f32 %v2274_v14, %v1930_v62 }
 0x1ed   :  { %v2279_v41 = vpop.f32.mrf.mxu1  ;;  %v1952_v23 = vadd.f32 0.0043757833, %v1951_v53 }
 0x1ee   :  { %6756 = vst [vmem:[#allocation64_spill] sm:$0xff] %v5662_v31  ;;  %v5664_v21 = vadd.f32 %v2279_v41, %v1939_v61  ;;  %v5666_v47 = vpop.f32.mrf.mxu0 }
 0x1ef   :  { %v2281_v1 = vpop.f32.mrf.mxu1 }
 0x1f0   :  { %6757 = vst [vmem:[#allocation23_spill] sm:$0xff] %v5664_v21  ;;  %v5668_v5 = vadd.f32 %v2281_v1, %v1941_v2  ;;  %v5670_v50 = vpop.f32.mrf.mxu0 }
 0x1f1   :  { %v2286_v4 = vpop.f32.mrf.mxu1 }
 0x1f2   :  { %6758 = vst [vmem:[#allocation69_spill] sm:$0xff] %v5668_v5  ;;  %v5672_v32 = vadd.f32 %v2286_v4, %v1950_v44  ;;  %v5674_v38 = vpop.f32.mrf.mxu0 }
 0x1f3   :  { %v2288_v6 = vpop.f32.mrf.mxu1 }
 0x1f4   :  { %6759 = vst [vmem:[#allocation15_spill] sm:$0xff] %v5672_v32  ;;  %v5676_v37 = vadd.f32 %v2288_v6, %v1952_v23  ;;  %v5678_v35 = vpop.f32.mrf.mxu0 }
 0x1f5   :  { %v5680_v3 = vpop.f32.mrf.mxu1 }
 0x1f6   :  { %6760 = vst [vmem:[#allocation85_spill] sm:$0xff] %v5676_v37  ;;  %v5682_v20 = vpop.f32.mrf.mxu0 }
 0x1f7   :  { %v5684_v24 = vpop.f32.mrf.mxu1 }
 0x1f8   :  { %v5686_v9 = vpop.f32.mrf.mxu0 }
 0x1f9   :  { %v5688_v19 = vpop.f32.mrf.mxu1 }
 0x1fa   :  { %v5690_v28 = vpop.f32.mrf.mxu0 }
 0x1fb   :  { %v5692_v43 = vpop.f32.mrf.mxu1 }
 0x1fc   :  { %v5694_v27 = vpop.f32.mrf.mxu0 }
 0x1fd   :  { %v5696_v34 = vpop.f32.mrf.mxu1 }
 0x1fe   :  { %v5698_v58 = vpop.f32.mrf.mxu0 }
 0x1ff   :  { %v5700_v60 = vpop.f32.mrf.mxu1 }
 0x200   :  { %v5702_v13 = vpop.f32.mrf.mxu0 }
 0x201   :  { %v5704_v12 = vpop.f32.mrf.mxu1 }
 0x202   :  { %v5706_v54 = vpop.f32.mrf.mxu0 }
 0x203   :  { %v5708_v11 = vpop.f32.mrf.mxu1 }
 0x204   :  { %v5710_v22 = vpop.f32.mrf.mxu0 }
 0x205   :  { %v5712_v62 = vpop.f32.mrf.mxu1 }
 0x206   :  { %v5714_v61 = vpop.f32.mrf.mxu0 }
 0x207   :  { %v5716_v29 = vpop.f32.mrf.mxu1 }
 0x208   :  { %v5718_v14 = vpop.f32.mrf.mxu0 }
 0x209   :  { %v5720_v53 = vpop.f32.mrf.mxu1 }
 0x20a   :  { %v5722_v41 = vpop.f32.mrf.mxu0 }
 0x20b   :  { %v5724_v2 = vpop.f32.mrf.mxu1 }
 0x20c   :  { %v5726_v44 = vpop.f32.mrf.mxu0 }
 0x20d   :  { %v5728_v1 = vpop.f32.mrf.mxu1 }
 0x20e   :  { %v5730_v4 = vpop.f32.mrf.mxu0 }
 0x20f   :  { %v5732_v23 = vpop.f32.mrf.mxu1 }
 0x210   :  { %v5734_v6 = vpop.f32.mrf.mxu0 }
 0x211   :  { %6761 = vst [vmem:[#allocation68_spill] sm:$0xff] %v5734_v6  ;;  %v5736_v37 = vpop.f32.mrf.mxu1 }
 0x212   :  { %v5738_v32 = vpop.f32.mrf.mxu0 }
 0x213   :  { %6762 = vst [vmem:[#allocation86_spill] sm:$0xff] %v5738_v32  ;;  %v5740_v5 = vpop.f32.mrf.mxu1 }
 0x214   :  { %v5742_v21 = vpop.f32.mrf.mxu0 }
 0x215   :  { %6763 = vst [vmem:[#allocation73_spill] sm:$0xff] %v5742_v21  ;;  %v5744_v31 = vpop.f32.mrf.mxu1 }
 0x216   :  { %6764 = vst [vmem:[#allocation20_spill] sm:$0xff] %v5744_v31  ;;  %v5746_v25 = vpop.f32.mrf.mxu0 }
 0x217   :  { %6765 = vst [vmem:[#allocation72_spill] sm:$0xff] %v5746_v25  ;;  %v5748_v30 = vpop.f32.mrf.mxu1 }
 0x218   :  { %6766 = vst [vmem:[#allocation74_spill] sm:$0xff] %v5748_v30  ;;  %v5750_v15 = vpop.f32.mrf.mxu0 }
 0x219   :  { %6767 = vst [vmem:[#allocation21_spill] sm:$0xff] %v5750_v15  ;;  %v5752_v36 = vpop.f32.mrf.mxu1 }
 0x21a   :  { %6768 = vst [vmem:[#allocation76_spill] sm:$0xff] %v5752_v36  ;;  %v5754_v39 = vpop.f32.mrf.mxu0 }
 0x21b   :  { %6769 = vst [vmem:[#allocation80_spill] sm:$0xff] %v5754_v39  ;;  %v5756_v40 = vpop.f32.mrf.mxu1 }
 0x21c   :  { %6770 = vst [vmem:[#allocation84_spill] sm:$0xff] %v5756_v40  ;;  %v5758_v8 = vpop.f32.mrf.mxu0 }
 0x21d   :  { %6771 = vst [vmem:[#allocation79_spill] sm:$0xff] %v5758_v8  ;;  %v5760_v16 = vpop.f32.mrf.mxu1 }
 0x21e   :  { %6772 = vst [vmem:[#allocation82_spill] sm:$0xff] %v5760_v16  ;;  %v5762_v32 = vpop.f32.mrf.mxu0 }
 0x21f   :  { %6773 = vst [vmem:[#allocation81_spill] sm:$0xff] %v5762_v32  ;;  %v5764_v21 = vpop.f32.mrf.mxu1 }
 0x220   :  { %6774 = vst [vmem:[#allocation83_spill] sm:$0xff] %v5764_v21  ;;  %v5766_v59 = vpop.f32.mrf.mxu0 }
 0x221   :  { %6775 = vst [vmem:[#allocation11_spill] sm:$0xff] %v5766_v59  ;;  %v5768_v25 = vpop.f32.mrf.mxu1 }
 0x222   :  { %6776 = vst [vmem:[#allocation28_spill] sm:$0xff] %v5768_v25  ;;  %v5770_v30 = vpop.f32.mrf.mxu0 }
 0x223   :  { %6777 = vst [vmem:[#allocation33_spill] sm:$0xff] %v5770_v30  ;;  %v5772_v15 = vpop.f32.mrf.mxu1 }
 0x224   :  { %6778 = vst [vmem:[#allocation13_spill] sm:$0xff] %v5772_v15  ;;  %v5774_v36 = vpop.f32.mrf.mxu0 }
 0x225   :  { %6779 = vst [vmem:[#allocation39_spill] sm:$0xff] %v5774_v36  ;;  %v5776_v39 = vpop.f32.mrf.mxu1 }
 0x226   :  { %6780 = vst [vmem:[#allocation31_spill] sm:$0xff] %v5776_v39  ;;  %v5778_v40 = vpop.f32.mrf.mxu0 }
 0x227   :  { %6781 = vst [vmem:[#allocation49_spill] sm:$0xff] %v5778_v40  ;;  %v5780_v8 = vpop.f32.mrf.mxu1  ;;  %v2424_v40 = vadd.f32 %v5666_v47, %v5608_v56  ;;  %v2434_v56 = vadd.f32 %v5678_v35, %v5614_v7  ;;  %v2442_v7 = vadd.f32 %v5686_v9, %v5618_v33 }
 0x228   :  { %6782 = vst [vmem:[#allocation51_spill] sm:$0xff] %v5780_v8  ;;  %v5782_v16 = vpop.f32.mrf.mxu0 }
 0x229   :  { %6783 = vst [vmem:[#allocation36_spill] sm:$0xff] %v5782_v16  ;;  %v5784_v32 = vpop.f32.mrf.mxu1  ;;  %v2426_v16 = vadd.f32 %v5670_v50, %v5610_v57 }
 0x22a   :  { %6784 = vst [vmem:[#allocation92_spill] sm:$0xff] %v5784_v32  ;;  %v5786_v21 = vpop.f32.mrf.mxu0 }
 0x22b   :  { %6785 = vst [vmem:[#allocation55_spill] sm:$0xff] %v5786_v21  ;;  %v5788_v59 = vpop.f32.mrf.mxu1  ;;  %v2650_v21 = vadd.f32 %v5680_v3, %v2424_v40  ;;  %v2440_v3 = vadd.f32 %v5682_v20, %v5616_v52 }
 0x22c   :  { %6786 = vst [vmem:[#allocation37_spill] sm:$0xff] %v5788_v59  ;;  %v5790_v25 = vpop.f32.mrf.mxu0 }
 0x22d   :  { %6787 = vst [vmem:[#allocation93_spill] sm:$0xff] %v5790_v25  ;;  %v5792_v30 = vpop.f32.mrf.mxu1  ;;  %v2432_v25 = vadd.f32 %v5674_v38, %v5612_v10  ;;  %v2670_v38 = vadd.f32 %v5700_v60, %v2442_v7  ;;  %v2474_v7 = vadd.f32 %v5718_v14, %v5634_v46 }
 0x22e   :  { %6788 = vst [vmem:[#allocation59_spill] sm:$0xff] %v5792_v30  ;;  %v2952_v15 = vpop.f32.mrf.mxu0  ;;  %v2652_v30 = vadd.f32 %v5684_v24, %v2426_v16 }
 0x22f   :  { %v5794_v36 = vpop.f32.mrf.mxu1  ;;  %v2659_v47 = vadd.f32 %v5688_v19, %v2432_v25 }
 0x230   :  { %6789 = vst [vmem:[#allocation38_spill] sm:$0xff] %v5794_v36  ;;  %v2954_v39 = vpop.f32.mrf.mxu0  ;;  %v2953_v36 = vadd.f32 %v2952_v15, %v2650_v21 }
 0x231   :  { %v5798_v8 = vpop.f32.mrf.mxu1 }
 0x232   :  { %6790 = vst [vmem:[#allocation94_spill] sm:$0xff] %v5798_v8  ;;  %v2959_v32 = vpop.f32.mrf.mxu0  ;;  %v2955_v8 = vadd.f32 %v2954_v39, %v2652_v30  ;;  %v2668_v39 = vadd.f32 %v5696_v34, %v2440_v3 }
 0x233   :  { %v5803_v59 = vpop.f32.mrf.mxu1  ;;  %v2960_v10 = vadd.f32 %v2959_v32, %v2659_v47  ;;  %v2448_v32 = vadd.f32 %v5690_v28, %v5620_v26  ;;  %v2456_v28 = vadd.f32 %v5698_v58, %v5624_v55  ;;  %v2464_v47 = vadd.f32 %v5706_v54, %v5628_v51 }
 0x234   :  { %6791 = vst [vmem:[#allocation63_spill] sm:$0xff] %v5803_v59  ;;  %v2961_v31 = vpop.f32.mrf.mxu0  ;;  %v2661_v59 = vadd.f32 %v5692_v43, %v2434_v56 }
 0x235   :  { %v3161_v6 = vpop.f32.mrf.mxu1  ;;  %v2677_v20 = vadd.f32 %v5704_v12, %v2448_v32  ;;  %v2458_v12 = vadd.f32 %v5702_v13, %v5626_v45  ;;  %v2695_v3 = vadd.f32 %v5720_v53, %v2464_v47  ;;  %v2482_v32 = vadd.f32 %v5726_v44, %v5638_v18 }
 0x236   :  { %v2966_v57 = vpop.f32.mrf.mxu0  ;;  %v3162_v50 = vadd.f32 %v3161_v6, %v2953_v36  ;;  %v2962_v36 = vadd.f32 %v2961_v31, %v2661_v59  ;;  %v2450_v31 = vadd.f32 %v5694_v27, %v5622_v0  ;;  %v2686_v6 = vadd.f32 %v5712_v62, %v2456_v28  ;;  %v6795_v28 = vld [vmem:[#allocation86_spill] sm:$0xff] }
 0x237   :  { %v3163_v40 = vpop.f32.mrf.mxu1 }
 0x238   :  { %3273 = vst [vmem:[%s5994_s2 + $0x10] sm:$0xff] %v3162_v50  ;;  %v2968_v16 = vpop.f32.mrf.mxu0  ;;  %v3164_v15 = vadd.f32 %v3163_v40, %v2955_v8  ;;  %v2967_v8 = vadd.f32 %v2966_v57, %v2668_v39  ;;  %v2679_v43 = vadd.f32 %v5708_v11, %v2450_v31  ;;  %v2688_v57 = vadd.f32 %v5716_v29, %v2458_v12  ;;  %v6792_v31 = vld [vmem:[#allocation68_spill] sm:$0xff] }
 0x239   :  { %v3168_v21 = vpop.f32.mrf.mxu1  ;;  %v2969_v24 = vadd.f32 %v2968_v16, %v2670_v38  ;;  %v2466_v40 = vadd.f32 %v5710_v22, %v5630_v42  ;;  %v2472_v16 = vadd.f32 %v5714_v61, %v5632_v49 }
 0x23a   :  { %3274 = vst [vmem:[%s5994_s2 + $0x18] sm:$0xff] %v3164_v15  ;;  %v2973_v52 = vpop.f32.mrf.mxu0  ;;  %v3169_v30 = vadd.f32 %v3168_v21, %v2960_v10 }
 0x23b   :  { %v3170_v25 = vpop.f32.mrf.mxu1  ;;  %v2974_v34 = vadd.f32 %v2973_v52, %v2677_v20  ;;  %v2697_v15 = vadd.f32 %v5724_v2, %v2466_v40  ;;  %v2704_v39 = vadd.f32 %v5728_v1, %v2472_v16  ;;  %v2480_v52 = vadd.f32 %v5722_v41, %v5636_v63 }
 0x23c   :  { %3277 = vst [vmem:[%s5994_s2 + $0x30] sm:$0xff] %v3169_v30  ;;  %v2975_v33 = vpop.f32.mrf.mxu0  ;;  %v3171_v35 = vadd.f32 %v3170_v25, %v2962_v36  ;;  %v2706_v30 = vadd.f32 %v5732_v23, %v2474_v7  ;;  %v2490_v20 = vadd.f32 %v6792_v31, %v5642_v48 }
 0x23d   :  { %v3175_v59 = vpop.f32.mrf.mxu1  ;;  %v2976_v56 = vadd.f32 %v2975_v33, %v2679_v43  ;;  %v2713_v38 = vadd.f32 %v5736_v37, %v2480_v52  ;;  %v2488_v33 = vadd.f32 %v5730_v4, %v5640_v17 }
 0x23e   :  { %3278 = vst [vmem:[%s5994_s2 + $0x38] sm:$0xff] %v3171_v35  ;;  %v2980_v26 = vpop.f32.mrf.mxu0  ;;  %v3176_v9 = vadd.f32 %v3175_v59, %v2967_v8  ;;  %v2715_v35 = vadd.f32 %v5740_v5, %v2482_v32 }
 0x23f   :  { %v3177_v19 = vpop.f32.mrf.mxu1  ;;  %v2981_v50 = vadd.f32 %v2980_v26, %v2686_v6  ;;  %v6797_v6 = vld [vmem:[#allocation26_spill] sm:$0xff] }
 0x240   :  { %3281 = vst [vmem:[%s5994_s2 + $0x50] sm:$0xff] %v3176_v9  ;;  %v2982_v0 = vpop.f32.mrf.mxu0  ;;  %v3178_v27 = vadd.f32 %v3177_v19, %v2969_v24  ;;  %v6793_v24 = vld [vmem:[#allocation20_spill] sm:$0xff]  ;;  %v6794_v19 = vld [vmem:[#allocation25_spill] sm:$0xff] }
 0x241   :  { %v3182_v60 = vpop.f32.mrf.mxu1  ;;  %v2983_v10 = vadd.f32 %v2982_v0, %v2688_v57  ;;  %v2722_v26 = vadd.f32 %v6793_v24, %v2488_v33  ;;  %v2496_v43 = vadd.f32 %v6795_v28, %v6794_v19  ;;  %v6816_v19 = vld [vmem:[#allocation11_spill] sm:$0xff] }
 0x242   :  { %3282 = vst [vmem:[%s5994_s2 + $0x58] sm:$0xff] %v3178_v27  ;;  %v2987_v55 = vpop.f32.mrf.mxu0  ;;  %v3183_v58 = vadd.f32 %v3182_v60, %v2974_v34  ;;  %v6796_v34 = vld [vmem:[#allocation74_spill] sm:$0xff] }
 0x243   :  { %v3184_v11 = vpop.f32.mrf.mxu1  ;;  %v2988_v21 = vadd.f32 %v2987_v55, %v2695_v3  ;;  %v2724_v0 = vadd.f32 %v6796_v34, %v2490_v20  ;;  %v6802_v3 = vld [vmem:[#allocation84_spill] sm:$0xff]  ;;  %v6814_v20 = vld [vmem:[#allocation13_spill] sm:$0xff] }
 0x244   :  { %3285 = vst [vmem:[%s5994_s2 + $0x70] sm:$0xff] %v3183_v58  ;;  %v2989_v45 = vpop.f32.mrf.mxu0  ;;  %v3185_v13 = vadd.f32 %v3184_v11, %v2976_v56  ;;  %v6798_v56 = vld [vmem:[#allocation73_spill] sm:$0xff]  ;;  %v6799_v58 = vld [vmem:[#allocation76_spill] sm:$0xff] }
 0x245   :  { %v3189_v62 = vpop.f32.mrf.mxu1  ;;  %v2990_v36 = vadd.f32 %v2989_v45, %v2697_v15  ;;  %v2498_v55 = vadd.f32 %v6798_v56, %v6797_v6  ;;  %v2731_v11 = vadd.f32 %v6799_v58, %v2496_v43  ;;  %v6803_v15 = vld [vmem:[#allocation60_spill] sm:$0xff]  ;;  %v6817_v43 = vld [vmem:[#allocation31_spill] sm:$0xff]  ;;  %v6819_v6 = vld [vmem:[#allocation33_spill] sm:$0xff] }
 0x246   :  { %3286 = vst [vmem:[%s5994_s2 + $0x78] sm:$0xff] %v3185_v13  ;;  %v2994_v51 = vpop.f32.mrf.mxu0  ;;  %v3190_v54 = vadd.f32 %v3189_v62, %v2981_v50  ;;  %v6800_v13 = vld [vmem:[#allocation18_spill] sm:$0xff]  ;;  %v6801_v62 = vld [vmem:[#allocation72_spill] sm:$0xff] }
 0x247   :  { %v3191_v29 = vpop.f32.mrf.mxu1  ;;  %v2995_v25 = vadd.f32 %v2994_v51, %v2704_v39  ;;  %v2504_v40 = vadd.f32 %v6801_v62, %v6800_v13  ;;  %v6822_v13 = vld [vmem:[#allocation39_spill] sm:$0xff] }
 0x248   :  { %3289 = vst [vmem:[%s5994_s2 + $0x90] sm:$0xff] %v3190_v54  ;;  %v2996_v42 = vpop.f32.mrf.mxu0  ;;  %v3192_v22 = vadd.f32 %v3191_v29, %v2983_v10  ;;  %v2733_v10 = vadd.f32 %v6802_v3, %v2498_v55  ;;  %v6820_v55 = vld [vmem:[#allocation51_spill] sm:$0xff] }
 0x249   :  { %v3196_v53 = vpop.f32.mrf.mxu1  ;;  %v2997_v8 = vadd.f32 %v2996_v42, %v2706_v30  ;;  %v6808_v30 = vld [vmem:[#allocation83_spill] sm:$0xff] }
 0x24a   :  { %3290 = vst [vmem:[%s5994_s2 + $0x98] sm:$0xff] %v3192_v22  ;;  %v3001_v49 = vpop.f32.mrf.mxu0  ;;  %v3197_v61 = vadd.f32 %v3196_v53, %v2988_v21  ;;  %v6804_v21 = vld [vmem:[#allocation21_spill] sm:$0xff]  ;;  %v6805_v22 = vld [vmem:[#allocation82_spill] sm:$0xff] }
 0x24b   :  { %v3198_v2 = vpop.f32.mrf.mxu1  ;;  %v3002_v59 = vadd.f32 %v3001_v49, %v2713_v38  ;;  %v2506_v42 = vadd.f32 %v6804_v21, %v6803_v15  ;;  %v2740_v53 = vadd.f32 %v6805_v22, %v2504_v40  ;;  %v6809_v38 = vld [vmem:[#allocation62_spill] sm:$0xff]  ;;  %v6823_v40 = vld [vmem:[#allocation92_spill] sm:$0xff]  ;;  %v6825_v15 = vld [vmem:[#allocation49_spill] sm:$0xff] }
 0x24c   :  { %3293 = vst [vmem:[%s5994_s2 + $0xb0] sm:$0xff] %v3197_v61  ;;  %v3003_v46 = vpop.f32.mrf.mxu0  ;;  %v3199_v14 = vadd.f32 %v3198_v2, %v2990_v36  ;;  %v6806_v61 = vld [vmem:[#allocation7_spill] sm:$0xff]  ;;  %v6807_v2 = vld [vmem:[#allocation80_spill] sm:$0xff] }
 0x24d   :  { %v3203_v1 = vpop.f32.mrf.mxu1  ;;  %v3004_v9 = vadd.f32 %v3003_v46, %v2715_v35  ;;  %v2512_v52 = vadd.f32 %v6807_v2, %v6806_v61  ;;  %v6828_v61 = vld [vmem:[#allocation36_spill] sm:$0xff] }
 0x24e   :  { %3294 = vst [vmem:[%s5994_s2 + $0xb8] sm:$0xff] %v3199_v14  ;;  %v3008_v63 = vpop.f32.mrf.mxu0  ;;  %v3204_v41 = vadd.f32 %v3203_v1, %v2995_v25  ;;  %v2742_v25 = vadd.f32 %v6808_v30, %v2506_v42  ;;  %v6826_v42 = vld [vmem:[#allocation37_spill] sm:$0xff] }
 0x24f   :  { %v3205_v23 = vpop.f32.mrf.mxu1  ;;  %v3009_v27 = vadd.f32 %v3008_v63, %v2722_v26 }
 0x250   :  { %3297 = vst [vmem:[%s5994_s2 + $0xd0] sm:$0xff] %v3204_v41  ;;  %v3010_v18 = vpop.f32.mrf.mxu0  ;;  %v3206_v37 = vadd.f32 %v3205_v23, %v2997_v8  ;;  %v6810_v8 = vld [vmem:[#allocation79_spill] sm:$0xff]  ;;  %v6811_v41 = vld [vmem:[#allocation28_spill] sm:$0xff] }
 0x251   :  { %v3210_v44 = vpop.f32.mrf.mxu1  ;;  %v3011_v47 = vadd.f32 %v3010_v18, %v2724_v0  ;;  %v2514_v63 = vadd.f32 %v6810_v8, %v6809_v38  ;;  %v2749_v23 = vadd.f32 %v6811_v41, %v2512_v52  ;;  %v6829_v52 = vld [vmem:[#allocation59_spill] sm:$0xff] }
 0x252   :  { %3298 = vst [vmem:[%s5994_s2 + $0xd8] sm:$0xff] %v3206_v37  ;;  %v3015_v17 = vpop.f32.mrf.mxu0  ;;  %v3211_v5 = vadd.f32 %v3210_v44, %v3002_v59  ;;  %v6812_v37 = vld [vmem:[#allocation3_spill] sm:$0xff]  ;;  %v6813_v44 = vld [vmem:[#allocation81_spill] sm:$0xff] }
 0x253   :  { %v3212_v4 = vpop.f32.mrf.mxu1  ;;  %v3016_v51 = vadd.f32 %v3015_v17, %v2731_v11  ;;  %v2520_v31 = vadd.f32 %v6813_v44, %v6812_v37  ;;  %v2751_v24 = vadd.f32 %v6814_v20, %v2514_v63  ;;  %v6831_v38 = vld [vmem:[#allocation55_spill] sm:$0xff]  ;;  %v6832_v63 = vld [vmem:[#allocation38_spill] sm:$0xff] }
 0x254   :  { %3301 = vst [vmem:[%s5994_s2 + $0xf0] sm:$0xff] %v3211_v5  ;;  %v3017_v48 = vpop.f32.mrf.mxu0  ;;  %v3213_v60 = vadd.f32 %v3212_v4, %v3004_v9  ;;  %v6815_v4 = vld [vmem:[#allocation4_spill] sm:$0xff]  ;;  %v6835_v44 = vld [vmem:[#allocation94_spill] sm:$0xff] }
 0x255   :  { %v3217_v12 = vpop.f32.mrf.mxu1  ;;  %v3018_v7 = vadd.f32 %v3017_v48, %v2733_v10  ;;  %v2522_v28 = vadd.f32 %v6816_v19, %v6815_v4  ;;  %v2758_v34 = vadd.f32 %v6817_v43, %v2520_v31 }
 0x256   :  { %3302 = vst [vmem:[%s5994_s2 + $0xf8] sm:$0xff] %v3213_v60  ;;  %v3022_v57 = vpop.f32.mrf.mxu0  ;;  %v3218_v50 = vadd.f32 %v3217_v12, %v3009_v27  ;;  %v6818_v12 = vld [vmem:[#allocation24_spill] sm:$0xff] }
 0x257   :  { %v3219_v45 = vpop.f32.mrf.mxu1  ;;  %v3023_v46 = vadd.f32 %v3022_v57, %v2740_v53  ;;  %v2528_v56 = vadd.f32 %v6819_v6, %v6818_v12  ;;  %v2760_v58 = vadd.f32 %v6820_v55, %v2522_v28 }
 0x258   :  { %3305 = vst [vmem:[%s5994_s2 + $0x110] sm:$0xff] %v3218_v50  ;;  %v3024_v54 = vpop.f32.mrf.mxu0  ;;  %v3220_v29 = vadd.f32 %v3219_v45, %v3011_v47  ;;  %v6821_v45 = vld [vmem:[#allocation64_spill] sm:$0xff] }
 0x259   :  { %v3224_v16 = vpop.f32.mrf.mxu1  ;;  %v3025_v33 = vadd.f32 %v3024_v54, %v2742_v25  ;;  %v2530_v62 = vadd.f32 %v6822_v13, %v6821_v45  ;;  %v2767_v3 = vadd.f32 %v6823_v40, %v2528_v56 }
 0x25a   :  { %3306 = vst [vmem:[%s5994_s2 + $0x118] sm:$0xff] %v3220_v29  ;;  %v3029_v39 = vpop.f32.mrf.mxu0  ;;  %v3225_v36 = vadd.f32 %v3224_v16, %v3016_v51  ;;  %v6824_v16 = vld [vmem:[#allocation23_spill] sm:$0xff] }
 0x25b   :  { %v3226_v49 = vpop.f32.mrf.mxu1  ;;  %v3030_v26 = vadd.f32 %v3029_v39, %v2749_v23  ;;  %v2536_v21 = vadd.f32 %v6825_v15, %v6824_v16  ;;  %v2769_v22 = vadd.f32 %v6826_v42, %v2530_v62 }
 0x25c   :  { %3309 = vst [vmem:[%s5994_s2 + $0x130] sm:$0xff] %v3225_v36  ;;  %v3031_v14 = vpop.f32.mrf.mxu0  ;;  %v3227_v1 = vadd.f32 %v3226_v49, %v3018_v7  ;;  %v6827_v49 = vld [vmem:[#allocation69_spill] sm:$0xff] }
 0x25d   :  { %v3231_v32 = vpop.f32.mrf.mxu1  ;;  %v3032_v0 = vadd.f32 %v3031_v14, %v2751_v24  ;;  %v2538_v2 = vadd.f32 %v6828_v61, %v6827_v49  ;;  %v2776_v30 = vadd.f32 %v6829_v52, %v2536_v21 }
 0x25e   :  { %3310 = vst [vmem:[%s5994_s2 + $0x138] sm:$0xff] %v3227_v1  ;;  %v3036_v35 = vpop.f32.mrf.mxu0  ;;  %v3232_v59 = vadd.f32 %v3231_v32, %v3023_v46  ;;  %v6830_v32 = vld [vmem:[#allocation15_spill] sm:$0xff] }
 0x25f   :  { %v3233_v18 = vpop.f32.mrf.mxu1  ;;  %v3037_v11 = vadd.f32 %v3036_v35, %v2758_v34  ;;  %v2544_v8 = vadd.f32 %v6831_v38, %v6830_v32  ;;  %v2778_v41 = vadd.f32 %v6832_v63, %v2538_v2 }
 0x260   :  { %3313 = vst [vmem:[%s5994_s2 + $0x150] sm:$0xff] %v3232_v59  ;;  %v3038_v9 = vpop.f32.mrf.mxu0  ;;  %v3234_v17 = vadd.f32 %v3233_v18, %v3025_v33  ;;  %v6833_v59 = vld [vmem:[#allocation85_spill] sm:$0xff] }
 0x261   :  { %v3238_v5 = vpop.f32.mrf.mxu1  ;;  %v3039_v10 = vadd.f32 %v3038_v9, %v2760_v58  ;;  %v6834_v18 = vld [vmem:[#allocation93_spill] sm:$0xff]  ;;  %v2785_v31 = vadd.f32 %v6835_v44, %v2544_v8 }
 0x262   :  { %3314 = vst [vmem:[%s5994_s2 + $0x158] sm:$0xff] %v3234_v17  ;;  %v3043_v27 = vpop.f32.mrf.mxu0  ;;  %v3239_v48 = vadd.f32 %v3238_v5, %v3030_v26  ;;  %v2546_v37 = vadd.f32 %v6834_v18, %v6833_v59  ;;  %v6836_v17 = vld [vmem:[#allocation63_spill] sm:$0xff] }
 0x263   :  { %v3240_v60 = vpop.f32.mrf.mxu1  ;;  %v3044_v53 = vadd.f32 %v3043_v27, %v2767_v3 }
 0x264   :  { %3317 = vst [vmem:[%s5994_s2 + $0x170] sm:$0xff] %v3239_v48  ;;  %v3045_v47 = vpop.f32.mrf.mxu0  ;;  %v3241_v57 = vadd.f32 %v3240_v60, %v3032_v0  ;;  %v2787_v5 = vadd.f32 %v6836_v17, %v2546_v37 }
 0x265   :  { %v3245_v50 = vpop.f32.mrf.mxu1  ;;  %v3046_v25 = vadd.f32 %v3045_v47, %v2769_v22 }
 0x266   :  { %3318 = vst [vmem:[%s5994_s2 + $0x178] sm:$0xff] %v3241_v57  ;;  %v3050_v51 = vpop.f32.mrf.mxu0  ;;  %v3246_v54 = vadd.f32 %v3245_v50, %v3037_v11 }
 0x267   :  { %v3247_v29 = vpop.f32.mrf.mxu1  ;;  %v3051_v23 = vadd.f32 %v3050_v51, %v2776_v30 }
 0x268   :  { %3321 = vst [vmem:[%s5994_s2 + $0x190] sm:$0xff] %v3246_v54  ;;  %v3052_v7 = vpop.f32.mrf.mxu0  ;;  %v3248_v39 = vadd.f32 %v3247_v29, %v3039_v10 }
 0x269   :  { %v3252_v36 = vpop.f32.mrf.mxu1  ;;  %v3053_v20 = vadd.f32 %v3052_v7, %v2778_v41 }
 0x26a   :  { %3322 = vst [vmem:[%s5994_s2 + $0x198] sm:$0xff] %v3248_v39  ;;  %v3253_v46 = vadd.f32 %v3252_v36, %v3044_v53  ;;  %v3057_v14 = vpop.f32.mrf.mxu0 }
 0x26b   :  { %v3254_v1 = vpop.f32.mrf.mxu1  ;;  %v3058_v4 = vadd.f32 %v3057_v14, %v2785_v31 }
 0x26c   :  { %3325 = vst [vmem:[%s5994_s2 + $0x1b0] sm:$0xff] %v3253_v46  ;;  %v3255_v33 = vadd.f32 %v3254_v1, %v3046_v25  ;;  %v3059_v26 = vpop.f32.mrf.mxu0 }
 0x26d   :  { %v3259_v35 = vpop.f32.mrf.mxu1  ;;  %v3060_v43 = vadd.f32 %v3059_v26, %v2787_v5 }
 0x26e   :  { %3326 = vst [vmem:[%s5994_s2 + $0x1b8] sm:$0xff] %v3255_v33  ;;  %v3260_v24 = vadd.f32 %v3259_v35, %v3051_v23 }
 0x26f   :  { %v3261_v9 = vpop.f32.mrf.mxu1 }
 0x270   :  { %3329 = vst [vmem:[%s5994_s2 + $0x1d0] sm:$0xff] %v3260_v24  ;;  %v3262_v19 = vadd.f32 %v3261_v9, %v3053_v20 }
 0x271   :  { %v3266_v28 = vpop.f32.mrf.mxu1 }
 0x272   :  { %3330 = vst [vmem:[%s5994_s2 + $0x1d8] sm:$0xff] %v3262_v19  ;;  %v3267_v34 = vadd.f32 %v3266_v28, %v3058_v4 }
 0x273   :  { %v3268_v0 = vpop.f32.mrf.mxu1 }
 0x274   :  { %3333 = vst [vmem:[%s5994_s2 + $0x1f0] sm:$0xff] %v3267_v34  ;;  %v3269_v27 = vadd.f32 %v3268_v0, %v3060_v43 }
 0x276   :  { %3334 = vst [vmem:[%s5994_s2 + $0x1f8] sm:$0xff] %v3269_v27 }

</bundles_post_ra>
